<compile_context>
chip_gen: v6e
topology: v6e:2x2x1
jax: 0.10.0
libtpu: 0.0.40
codegen_flags: <defaults>
</compile_context>

<pallas_src>
import jax
import jax.numpy as jnp
from jax.experimental import pallas as pl
from jax.experimental.pallas import tpu as pltpu

EPS = 1e-5
D = 1024


def _bn_relu(h, gamma, beta):
    mean = jnp.mean(h, axis=0, keepdims=True)
    var = jnp.mean((h - mean) ** 2, axis=0, keepdims=True)   # biased var
    h = (h - mean) * jax.lax.rsqrt(var + EPS) * gamma + beta
    return jnp.maximum(h, 0.0)


def _decoder_kernel(x_ref, vecs_ref, b3_ref, w1_hbm, w2_hbm, w3_hbm,
                    o_ref,
                    w1_vmem, w2_vmem, w3_vmem, sem):
    # Issue the fc1 / fc2 weight streams (HBM -> VMEM) immediately at body
    # entry so they fully overlap with each other and with the fc1 compute.
    cp_w1 = pltpu.make_async_copy(w1_hbm, w1_vmem, sem.at[0])
    cp_w2 = pltpu.make_async_copy(w2_hbm, w2_vmem, sem.at[1])
    cp_w3 = pltpu.make_async_copy(w3_hbm, w3_vmem, sem.at[2])
    cp_w1.start()
    cp_w2.start()

    # Packed per-feature vectors: rows 0-2 = b1/g1/be1, rows 3-5 = b2/g2/be2.
    b1, g1, be1 = vecs_ref[0:1, :], vecs_ref[1:2, :], vecs_ref[2:3, :]
    b2, g2, be2 = vecs_ref[3:4, :], vecs_ref[4:5, :], vecs_ref[5:6, :]

    # ---- fc1 + bn1 (training stats) + relu --------------------------------
    x = x_ref[...].astype(jnp.bfloat16)                         # (B, 1024)
    cp_w1.wait()
    h = jnp.dot(x, w1_vmem[...], preferred_element_type=jnp.float32) + b1
    h = _bn_relu(h, g1, be1)

    # ---- fc2 + bn2 (training stats) + relu --------------------------------
    cp_w2.wait()
    # Start the (small) w3 stream only after w2 has landed so it never
    # competes with w2 for HBM bandwidth; it overlaps with fc2 compute.
    cp_w3.start()
    h = jnp.dot(h.astype(jnp.bfloat16), w2_vmem[...],
                preferred_element_type=jnp.float32) + b2
    h = _bn_relu(h, g2, be2)

    # ---- fc3 (output features zero-padded to a 128-lane multiple) ---------
    cp_w3.wait()
    out = jnp.dot(h.astype(jnp.bfloat16), w3_vmem[...],
                  preferred_element_type=jnp.float32) + b3_ref[...]
    o_ref[...] = out.astype(o_ref.dtype)


def decoder_forward(x, params, n):
    """x: (B, 1024) float32 -> (B, 3, n) float32."""
    B = x.shape[0]
    w1, w2, w3p, vecs, b3p = params
    out_dim = 3 * n
    pad_out = w3p.shape[1]

    full = lambda shape: pl.BlockSpec(shape, lambda: (0,) * len(shape))
    hbm = pl.BlockSpec(memory_space=pl.ANY)

    out_pad = pl.pallas_call(
        _decoder_kernel,
        out_shape=jax.ShapeDtypeStruct((B, pad_out), jnp.float32),
        grid=(),
        in_specs=[
            full(x.shape),        # x          -> VMEM (auto DMA, tiny)
            full(vecs.shape),     # packed b/gamma/beta vectors -> VMEM
            full(b3p.shape),      # b3 (padded) -> VMEM
            hbm,                  # w1 stays in HBM, streamed manually
            hbm,                  # w2 stays in HBM, streamed manually
            hbm,                  # w3 stays in HBM, streamed manually
        ],
        out_specs=full((B, pad_out)),
        scratch_shapes=[
            pltpu.VMEM(w1.shape, w1.dtype),     # w1 landing buffer
            pltpu.VMEM(w2.shape, w2.dtype),     # w2 landing buffer
            pltpu.VMEM(w3p.shape, w3p.dtype),   # w3 landing buffer
            pltpu.SemaphoreType.DMA((3,)),
        ],
        compiler_params=pltpu.CompilerParams(vmem_limit_bytes=32 << 20),
    )(x, vecs, b3p, w1, w2, w3p)

    return out_pad[:, :out_dim].reshape(B, 3, n)


def init_params(key, n):
    """Deterministic synthetic parameters (torch Linear-style fan-in init)."""
    ks = jax.random.split(key, 6)
    out_dim = 3 * n
    pad_out = max(128, ((out_dim + 127) // 128) * 128)

    def linear(kw, kb, fan_in, fan_out):
        bound = 1.0 / jnp.sqrt(fan_in)
        w = jax.random.uniform(kw, (fan_in, fan_out), jnp.float32, -bound, bound)
        b = jax.random.uniform(kb, (1, fan_out), jnp.float32, -bound, bound)
        return w, b

    w1, b1 = linear(ks[0], ks[1], D, D)
    w2, b2 = linear(ks[2], ks[3], D, D)
    w3, b3 = linear(ks[4], ks[5], D, out_dim)

    # BatchNorm1d default init: gamma = 1, beta = 0.
    g1 = jnp.ones((1, D), jnp.float32)
    be1 = jnp.zeros((1, D), jnp.float32)
    g2 = jnp.ones((1, D), jnp.float32)
    be2 = jnp.zeros((1, D), jnp.float32)

    # Pack the six tiny (1, 1024) vectors into one (8, 1024) array.
    vecs = jnp.concatenate(
        [b1, g1, be1, b2, g2, be2, jnp.zeros((2, D), jnp.float32)], axis=0)

    # Zero-pad fc3 weight/bias to a full 128-lane output width.
    w3p = jnp.pad(w3, ((0, 0), (0, pad_out - out_dim)))
    b3p = jnp.pad(b3, ((0, 0), (0, pad_out - out_dim)))

    return (w1.astype(jnp.bfloat16),
            w2.astype(jnp.bfloat16),
            w3p.astype(jnp.bfloat16),
            vecs,
            b3p)


def _reference(x, params, n):
    """Pure-JAX reference using identical (bf16-weight) numerics."""
    w1, w2, w3p, vecs, b3p = params
    b1, g1, be1 = vecs[0:1], vecs[1:2], vecs[2:3]
    b2, g2, be2 = vecs[3:4], vecs[4:5], vecs[5:6]

    def bn_relu(h, g, be):
        m = jnp.mean(h, axis=0, keepdims=True)
        v = jnp.mean((h - m) ** 2, axis=0, keepdims=True)
        return jnp.maximum((h - m) * jax.lax.rsqrt(v + EPS) * g + be, 0.0)

    dot = lambda a, w: jnp.dot(a.astype(jnp.bfloat16), w,
                               preferred_element_type=jnp.float32)

    h = bn_relu(dot(x, w1) + b1, g1, be1)
    h = bn_relu(dot(h, w2) + b2, g2, be2)
    out = dot(h, w3p) + b3p
    return out[:, :3 * n].reshape(x.shape[0], 3, n)


if __name__ == "__main__":
    n = 32           # Decoder(n=32) -> output (B, 3, 32)
    B = 8            # small batch, multiple of 8 sublanes
    key = jax.random.PRNGKey(0)
    kx, kp = jax.random.split(key)

    x = jax.random.normal(kx, (B, 1024), jnp.float32)
    params = init_params(kp, n)

    out = decoder_forward(x, params, n)
    out = jax.block_until_ready(out)

    ref = _reference(x, params, n)
    assert out.shape == (B, 3, n), out.shape
    assert jnp.allclose(out, ref, atol=2e-3, rtol=2e-3), "mismatch vs reference"

    print("KERNEL_OK")
</pallas_src>

<mosaic_0001>
module attributes {stable_mosaic.version = 11 : i64} {
  func.func @_decoder_kernel(%arg0: memref<8x1024xf32, #tpu.memory_space<vmem>>, %arg1: memref<8x1024xf32, #tpu.memory_space<vmem>>, %arg2: memref<1x128xf32, #tpu.memory_space<vmem>>, %arg3: memref<1024x1024xbf16, #tpu.memory_space<any>>, %arg4: memref<1024x1024xbf16, #tpu.memory_space<any>>, %arg5: memref<1024x128xbf16, #tpu.memory_space<any>>, %arg6: memref<8x128xf32, #tpu.memory_space<vmem>>, %arg7: memref<1024x1024xbf16, #tpu.memory_space<vmem>>, %arg8: memref<1024x1024xbf16, #tpu.memory_space<vmem>>, %arg9: memref<1024x128xbf16, #tpu.memory_space<vmem>>, %arg10: memref<3x!tpu.dma_semaphore, #tpu.memory_space<semaphore_mem>>) attributes {dimension_semantics = [], scalar_prefetch = 0 : i64, scratch_operands = 4 : i64, tpu.core_type = #tpu.core_type<tc>} {
    %c0_i32 = arith.constant 0 : i32
    %0 = tpu.memref_slice %arg10[%c0_i32] : memref<3x!tpu.dma_semaphore, #tpu.memory_space<semaphore_mem>> -> memref<1x!tpu.dma_semaphore, #tpu.memory_space<semaphore_mem>>
    %1 = tpu.memref_squeeze %0 : memref<1x!tpu.dma_semaphore, #tpu.memory_space<semaphore_mem>> -> memref<!tpu.dma_semaphore, #tpu.memory_space<semaphore_mem>>
    tpu.enqueue_dma source(%arg3 : memref<1024x1024xbf16, #tpu.memory_space<any>>) target(%arg7 : memref<1024x1024xbf16, #tpu.memory_space<vmem>>) target_semaphore(%1 : memref<!tpu.dma_semaphore, #tpu.memory_space<semaphore_mem>>)
    %c1_i32 = arith.constant 1 : i32
    %2 = tpu.memref_slice %arg10[%c1_i32] : memref<3x!tpu.dma_semaphore, #tpu.memory_space<semaphore_mem>> -> memref<1x!tpu.dma_semaphore, #tpu.memory_space<semaphore_mem>>
    %3 = tpu.memref_squeeze %2 : memref<1x!tpu.dma_semaphore, #tpu.memory_space<semaphore_mem>> -> memref<!tpu.dma_semaphore, #tpu.memory_space<semaphore_mem>>
    tpu.enqueue_dma source(%arg4 : memref<1024x1024xbf16, #tpu.memory_space<any>>) target(%arg8 : memref<1024x1024xbf16, #tpu.memory_space<vmem>>) target_semaphore(%3 : memref<!tpu.dma_semaphore, #tpu.memory_space<semaphore_mem>>)
    %c0 = arith.constant 0 : index
    %c0_0 = arith.constant 0 : index
    %4 = vector.load %arg1[%c0, %c0_0] : memref<8x1024xf32, #tpu.memory_space<vmem>>, vector<1x1024xf32>
    %c1 = arith.constant 1 : index
    %c0_1 = arith.constant 0 : index
    %5 = vector.load %arg1[%c1, %c0_1] : memref<8x1024xf32, #tpu.memory_space<vmem>>, vector<1x1024xf32>
    %c2 = arith.constant 2 : index
    %c0_2 = arith.constant 0 : index
    %6 = vector.load %arg1[%c2, %c0_2] : memref<8x1024xf32, #tpu.memory_space<vmem>>, vector<1x1024xf32>
    %c3 = arith.constant 3 : index
    %c0_3 = arith.constant 0 : index
    %7 = vector.load %arg1[%c3, %c0_3] : memref<8x1024xf32, #tpu.memory_space<vmem>>, vector<1x1024xf32>
    %c4 = arith.constant 4 : index
    %c0_4 = arith.constant 0 : index
    %8 = vector.load %arg1[%c4, %c0_4] : memref<8x1024xf32, #tpu.memory_space<vmem>>, vector<1x1024xf32>
    %c5 = arith.constant 5 : index
    %c0_5 = arith.constant 0 : index
    %9 = vector.load %arg1[%c5, %c0_5] : memref<8x1024xf32, #tpu.memory_space<vmem>>, vector<1x1024xf32>
    %c0_6 = arith.constant 0 : index
    %c0_7 = arith.constant 0 : index
    %10 = vector.load %arg0[%c0_6, %c0_7] : memref<8x1024xf32, #tpu.memory_space<vmem>>, vector<8x1024xf32>
    %11 = arith.truncf %10 : vector<8x1024xf32> to vector<8x1024xbf16>
    %c0_i32_8 = arith.constant 0 : i32
    %12 = tpu.memref_slice %arg10[%c0_i32_8] : memref<3x!tpu.dma_semaphore, #tpu.memory_space<semaphore_mem>> -> memref<1x!tpu.dma_semaphore, #tpu.memory_space<semaphore_mem>>
    %13 = tpu.memref_squeeze %12 : memref<1x!tpu.dma_semaphore, #tpu.memory_space<semaphore_mem>> -> memref<!tpu.dma_semaphore, #tpu.memory_space<semaphore_mem>>
    tpu.wait_dma2 semaphore(%13 : memref<!tpu.dma_semaphore, #tpu.memory_space<semaphore_mem>>) src(%arg3 : memref<1024x1024xbf16, #tpu.memory_space<any>>) dst(%arg7 : memref<1024x1024xbf16, #tpu.memory_space<vmem>>)
    %c0_9 = arith.constant 0 : index
    %c0_10 = arith.constant 0 : index
    %14 = vector.load %arg7[%c0_9, %c0_10] : memref<1024x1024xbf16, #tpu.memory_space<vmem>>, vector<1024x1024xbf16>
    %cst = arith.constant dense<0.000000e+00> : vector<8x1024xf32>
    %15 = tpu.matmul %11, %14, %cst {dimension_numbers = #tpu.dot_dimension_numbers<[1], [0], [0], [1], [0, 0, 1, 1], [], []>} : vector<8x1024xbf16>, vector<1024x1024xbf16>, vector<8x1024xf32> -> vector<8x1024xf32>
    %16 = vector.broadcast %4 : vector<1x1024xf32> to vector<8x1024xf32>
    %17 = arith.addf %15, %16 : vector<8x1024xf32>
    %cst_11 = arith.constant dense<0.000000e+00> : vector<1024xf32>
    %18 = vector.multi_reduction <add>, %17, %cst_11 [0] : vector<8x1024xf32> to vector<1024xf32>
    %19 = vector.shape_cast %18 : vector<1024xf32> to vector<1x1024xf32>
    %cst_12 = arith.constant 8.000000e+00 : f32
    %20 = vector.broadcast %cst_12 : f32 to vector<1x1024xf32>
    %21 = arith.divf %19, %20 : vector<1x1024xf32>
    %22 = vector.broadcast %21 : vector<1x1024xf32> to vector<8x1024xf32>
    %23 = arith.subf %17, %22 : vector<8x1024xf32>
    %24 = arith.mulf %23, %23 : vector<8x1024xf32>
    %cst_13 = arith.constant dense<0.000000e+00> : vector<1024xf32>
    %25 = vector.multi_reduction <add>, %24, %cst_13 [0] : vector<8x1024xf32> to vector<1024xf32>
    %26 = vector.shape_cast %25 : vector<1024xf32> to vector<1x1024xf32>
    %cst_14 = arith.constant 8.000000e+00 : f32
    %27 = vector.broadcast %cst_14 : f32 to vector<1x1024xf32>
    %28 = arith.divf %26, %27 : vector<1x1024xf32>
    %29 = vector.broadcast %21 : vector<1x1024xf32> to vector<8x1024xf32>
    %30 = arith.subf %17, %29 : vector<8x1024xf32>
    %cst_15 = arith.constant 9.99999974E-6 : f32
    %31 = vector.broadcast %cst_15 : f32 to vector<1x1024xf32>
    %32 = arith.addf %28, %31 : vector<1x1024xf32>
    %33 = math.rsqrt %32 : vector<1x1024xf32>
    %34 = vector.broadcast %33 : vector<1x1024xf32> to vector<8x1024xf32>
    %35 = arith.mulf %30, %34 : vector<8x1024xf32>
    %36 = vector.broadcast %5 : vector<1x1024xf32> to vector<8x1024xf32>
    %37 = arith.mulf %35, %36 : vector<8x1024xf32>
    %38 = vector.broadcast %6 : vector<1x1024xf32> to vector<8x1024xf32>
    %39 = arith.addf %37, %38 : vector<8x1024xf32>
    %cst_16 = arith.constant 0.000000e+00 : f32
    %40 = vector.broadcast %cst_16 : f32 to vector<8x1024xf32>
    %41 = arith.maximumf %39, %40 : vector<8x1024xf32>
    %c1_i32_17 = arith.constant 1 : i32
    %42 = tpu.memref_slice %arg10[%c1_i32_17] : memref<3x!tpu.dma_semaphore, #tpu.memory_space<semaphore_mem>> -> memref<1x!tpu.dma_semaphore, #tpu.memory_space<semaphore_mem>>
    %43 = tpu.memref_squeeze %42 : memref<1x!tpu.dma_semaphore, #tpu.memory_space<semaphore_mem>> -> memref<!tpu.dma_semaphore, #tpu.memory_space<semaphore_mem>>
    tpu.wait_dma2 semaphore(%43 : memref<!tpu.dma_semaphore, #tpu.memory_space<semaphore_mem>>) src(%arg4 : memref<1024x1024xbf16, #tpu.memory_space<any>>) dst(%arg8 : memref<1024x1024xbf16, #tpu.memory_space<vmem>>)
    %c2_i32 = arith.constant 2 : i32
    %44 = tpu.memref_slice %arg10[%c2_i32] : memref<3x!tpu.dma_semaphore, #tpu.memory_space<semaphore_mem>> -> memref<1x!tpu.dma_semaphore, #tpu.memory_space<semaphore_mem>>
    %45 = tpu.memref_squeeze %44 : memref<1x!tpu.dma_semaphore, #tpu.memory_space<semaphore_mem>> -> memref<!tpu.dma_semaphore, #tpu.memory_space<semaphore_mem>>
    tpu.enqueue_dma source(%arg5 : memref<1024x128xbf16, #tpu.memory_space<any>>) target(%arg9 : memref<1024x128xbf16, #tpu.memory_space<vmem>>) target_semaphore(%45 : memref<!tpu.dma_semaphore, #tpu.memory_space<semaphore_mem>>)
    %46 = arith.truncf %41 : vector<8x1024xf32> to vector<8x1024xbf16>
    %c0_18 = arith.constant 0 : index
    %c0_19 = arith.constant 0 : index
    %47 = vector.load %arg8[%c0_18, %c0_19] : memref<1024x1024xbf16, #tpu.memory_space<vmem>>, vector<1024x1024xbf16>
    %cst_20 = arith.constant dense<0.000000e+00> : vector<8x1024xf32>
    %48 = tpu.matmul %46, %47, %cst_20 {dimension_numbers = #tpu.dot_dimension_numbers<[1], [0], [0], [1], [0, 0, 1, 1], [], []>} : vector<8x1024xbf16>, vector<1024x1024xbf16>, vector<8x1024xf32> -> vector<8x1024xf32>
    %49 = vector.broadcast %7 : vector<1x1024xf32> to vector<8x1024xf32>
    %50 = arith.addf %48, %49 : vector<8x1024xf32>
    %cst_21 = arith.constant dense<0.000000e+00> : vector<1024xf32>
    %51 = vector.multi_reduction <add>, %50, %cst_21 [0] : vector<8x1024xf32> to vector<1024xf32>
    %52 = vector.shape_cast %51 : vector<1024xf32> to vector<1x1024xf32>
    %cst_22 = arith.constant 8.000000e+00 : f32
    %53 = vector.broadcast %cst_22 : f32 to vector<1x1024xf32>
    %54 = arith.divf %52, %53 : vector<1x1024xf32>
    %55 = vector.broadcast %54 : vector<1x1024xf32> to vector<8x1024xf32>
    %56 = arith.subf %50, %55 : vector<8x1024xf32>
    %57 = arith.mulf %56, %56 : vector<8x1024xf32>
    %cst_23 = arith.constant dense<0.000000e+00> : vector<1024xf32>
    %58 = vector.multi_reduction <add>, %57, %cst_23 [0] : vector<8x1024xf32> to vector<1024xf32>
    %59 = vector.shape_cast %58 : vector<1024xf32> to vector<1x1024xf32>
    %cst_24 = arith.constant 8.000000e+00 : f32
    %60 = vector.broadcast %cst_24 : f32 to vector<1x1024xf32>
    %61 = arith.divf %59, %60 : vector<1x1024xf32>
    %62 = vector.broadcast %54 : vector<1x1024xf32> to vector<8x1024xf32>
    %63 = arith.subf %50, %62 : vector<8x1024xf32>
    %cst_25 = arith.constant 9.99999974E-6 : f32
    %64 = vector.broadcast %cst_25 : f32 to vector<1x1024xf32>
    %65 = arith.addf %61, %64 : vector<1x1024xf32>
    %66 = math.rsqrt %65 : vector<1x1024xf32>
    %67 = vector.broadcast %66 : vector<1x1024xf32> to vector<8x1024xf32>
    %68 = arith.mulf %63, %67 : vector<8x1024xf32>
    %69 = vector.broadcast %8 : vector<1x1024xf32> to vector<8x1024xf32>
    %70 = arith.mulf %68, %69 : vector<8x1024xf32>
    %71 = vector.broadcast %9 : vector<1x1024xf32> to vector<8x1024xf32>
    %72 = arith.addf %70, %71 : vector<8x1024xf32>
    %cst_26 = arith.constant 0.000000e+00 : f32
    %73 = vector.broadcast %cst_26 : f32 to vector<8x1024xf32>
    %74 = arith.maximumf %72, %73 : vector<8x1024xf32>
    %c2_i32_27 = arith.constant 2 : i32
    %75 = tpu.memref_slice %arg10[%c2_i32_27] : memref<3x!tpu.dma_semaphore, #tpu.memory_space<semaphore_mem>> -> memref<1x!tpu.dma_semaphore, #tpu.memory_space<semaphore_mem>>
    %76 = tpu.memref_squeeze %75 : memref<1x!tpu.dma_semaphore, #tpu.memory_space<semaphore_mem>> -> memref<!tpu.dma_semaphore, #tpu.memory_space<semaphore_mem>>
    tpu.wait_dma2 semaphore(%76 : memref<!tpu.dma_semaphore, #tpu.memory_space<semaphore_mem>>) src(%arg5 : memref<1024x128xbf16, #tpu.memory_space<any>>) dst(%arg9 : memref<1024x128xbf16, #tpu.memory_space<vmem>>)
    %77 = arith.truncf %74 : vector<8x1024xf32> to vector<8x1024xbf16>
    %c0_28 = arith.constant 0 : index
    %c0_29 = arith.constant 0 : index
    %78 = vector.load %arg9[%c0_28, %c0_29] : memref<1024x128xbf16, #tpu.memory_space<vmem>>, vector<1024x128xbf16>
    %cst_30 = arith.constant dense<0.000000e+00> : vector<8x128xf32>
    %79 = tpu.matmul %77, %78, %cst_30 {dimension_numbers = #tpu.dot_dimension_numbers<[1], [0], [0], [1], [0, 0, 1, 1], [], []>} : vector<8x1024xbf16>, vector<1024x128xbf16>, vector<8x128xf32> -> vector<8x128xf32>
    %c0_31 = arith.constant 0 : index
    %c0_32 = arith.constant 0 : index
    %80 = vector.load %arg2[%c0_31, %c0_32] : memref<1x128xf32, #tpu.memory_space<vmem>>, vector<1x128xf32>
    %81 = vector.broadcast %80 : vector<1x128xf32> to vector<8x128xf32>
    %82 = arith.addf %79, %81 : vector<8x128xf32>
    %c0_33 = arith.constant 0 : index
    %c0_34 = arith.constant 0 : index
    %83 = vector.load %arg6[%c0_33, %c0_34] : memref<8x128xf32, #tpu.memory_space<vmem>>, vector<8x128xf32>
    tpu.vector_store %arg6[%c0_33, %c0_34], %82 {strides = array<i32>} : memref<8x128xf32, #tpu.memory_space<vmem>>, vector<8x128xf32>,
    return
  }
}

</mosaic_0001>

<bundles_post_ra>
// kernel: tpu_custom_call.1
= control target key start
LH: loop header
LB: loop body
LE: loop exit
PB: predicated region body
PF: predicated region fallthrough
CT: control target
= control target key end

     0   :  { %11 = vsyncpa [#allocation7], 0  ;;  %s10852_s0 = inlined_call_operand.hbm [shape: f32[8,1024], index: 0, kind: input, shape index: {}]   ;;  %s10853_s1 = inlined_call_operand.hbm [shape: f32[8,1024], index: 1, kind: input, shape index: {}]   ;;  %s10854_s2 = inlined_call_operand.hbm [shape: f32[1,128], index: 2, kind: input, shape index: {}]   ;;  %s10855_s3 = inlined_call_operand.hbm [shape: bf16[1024,1024], index: 3, kind: input, shape index: {}]   ;;  %s10856_s4 = inlined_call_operand.hbm [shape: bf16[1024,1024], index: 4, kind: input, shape index: {}]   ;;  %s10857_s5 = inlined_call_operand.hbm [shape: bf16[1024,128], index: 5, kind: input, shape index: {}]   ;;  %s10858_s6 = inlined_call_operand.hbm [shape: f32[8,128], index: 6, kind: output, shape index: {}]  }
   0x1   :  { %12 = vsyncpa [#allocation10], 0 }
   0x2   :  { %13 = vsyncpa [#allocation8], 0  ;;  %s10359_s21 = smov [#allocation9]   ;;  %s10360_s23 = smov [#allocation6]  }
   0x3   :  { %s30_s22 = sshll.u32 %s10359_s21, 4  ;;  %s20_s24 = sshll.u32 %s10360_s23, 4  ;;  %s31_s22 = int_to_ptr.vmem [resolvable:$true] %s30_s22  ;;  %s21_s24 = int_to_ptr.vmem [resolvable:$true] %s20_s24 }
   0x4   :  { %s10215_s25 = scalar_lea.vmem %s31_s22, 1024  ;;  %p10220_p1 = scmp.lt.s32.totalorder %s31_s22, %s31_s22 }
   0x5   :  { %p10216_p0 = scmp.ne.s32.totalorder %s31_s22, %s10215_s25  ;;  %p10221_p2 = scmp.lt.s32.totalorder %s10215_s25, %s10215_s25 }
   0x7   :  { %p10222_p3 = por %p10221_p2, %p10220_p1 }
   0x9   :  { %p10223_p4 = pnand %p10222_p3, %p10216_p0 }
   0xb   :  { %10226 = shalt.err (!%p10223_p4)
}
   0xc   :  { %33 = dma.hbm_to_vmem [thread:$0]  %s10853_s1, 1024, %s31_s22, [#allocation10]  }
   0xd   :  { %s10235_s28 = scalar_lea.vmem %s21_s24, 1024  ;;  %p10240_p6 = scmp.lt.s32.totalorder %s21_s24, %s21_s24 }
   0xe   :  { %p10236_p5 = scmp.ne.s32.totalorder %s21_s24, %s10235_s28  ;;  %p10241_p7 = scmp.lt.s32.totalorder %s10235_s28, %s10235_s28 }
  0x10   :  { %p10242_p8 = por %p10241_p7, %p10240_p6 }
  0x12   :  { %p10243_p9 = pnand %p10242_p8, %p10236_p5 }
  0x14   :  { %10246 = shalt.err (!%p10243_p9)
}
  0x15   :  { %23 = dma.hbm_to_vmem [thread:$0]  %s10852_s0, 1024, %s21_s24, [#allocation7]  }
  0x16   :  { %s10361_s7 = smov [#allocation11]  }
  0x17   :  { %s40_s8 = sshll.u32 %s10361_s7, 4  ;;  %s41_s8 = int_to_ptr.vmem [resolvable:$true] %s40_s8 }
  0x18   :  { %s10255_s9 = scalar_lea.vmem %s41_s8, 16  ;;  %s10259_s10 = scalar_lea.vmem %s41_s8, 32 }
  0x19   :  { %p10256_p10 = scmp.ne.s32.totalorder %s41_s8, %s10255_s9  ;;  %p10260_p11 = scmp.lt.s32.totalorder %s41_s8, %s41_s8 }
  0x1a   :  { %p10261_p12 = scmp.lt.s32.totalorder %s10259_s10, %s10255_s9 }
  0x1c   :  { %p10262_p13 = por %p10261_p12, %p10260_p11 }
  0x1e   :  { %p10263_p0 = pnand %p10262_p13, %p10256_p10 }
  0x20   :  { %10266 = shalt.err (!%p10263_p0)
}
  0x21   :  { %43 = dma.hbm_to_vmem [thread:$0]  %s10854_s2, 16, %s41_s8, [#allocation10]  }
  0x22   :  { %10347 = dma.done.wait [#allocation7], 1024  }
  0x23   :  { %10348 = vsyncadd [#allocation7], 4294966272 }
  0x24   :  { %10349 = dma.done.wait [#allocation10], 1040  }
  0x25   :  { %10350 = vsyncadd [#allocation10], 4294966256  ;;  %s10362_s0 = smov [#allocation2]   ;;  %s10363_s13 = smov [#allocation3]  }
  0x26   :  { %s61_s12 = sshll.u32 %s10362_s0, 4  ;;  %s73_s14 = sshll.u32 %s10363_s13, 4  ;;  %s62_s12 = int_to_ptr.vmem [resolvable:$true] %s61_s12  ;;  %s74_s14 = int_to_ptr.vmem [resolvable:$true] %s73_s14 }
  0x27   :  { %s10275_s15 = scalar_lea.vmem %s62_s12, 65536  ;;  %p10280_p2 = scmp.lt.s32.totalorder %s62_s12, %s62_s12 }
  0x28   :  { %p10276_p1 = scmp.ne.s32.totalorder %s62_s12, %s10275_s15  ;;  %p10281_p3 = scmp.lt.s32.totalorder %s10275_s15, %s10275_s15 }
  0x2a   :  { %p10282_p4 = por %p10281_p3, %p10280_p2 }
  0x2c   :  { %p10283_p5 = pnand %p10282_p4, %p10276_p1 }
  0x2e   :  { %10286 = shalt.err (!%p10283_p5)  }
  0x2f   :  { %64 = dma.hbm_to_vmem [thread:$0]  %s10855_s3, 65536, %s62_s12, [#allocation5] }
  0x30   :  { %s10295_s2 = scalar_lea.vmem %s74_s14, 65536  ;;  %p10300_p7 = scmp.lt.s32.totalorder %s74_s14, %s74_s14 }
  0x31   :  { %p10296_p6 = scmp.ne.s32.totalorder %s74_s14, %s10295_s2  ;;  %p10301_p8 = scmp.lt.s32.totalorder %s10295_s2, %s10295_s2 }
  0x33   :  { %p10302_p9 = por %p10301_p8, %p10300_p7 }
  0x35   :  { %p10303_p10 = pnand %p10302_p9, %p10296_p6 }
  0x37   :  { %10306 = shalt.err (!%p10303_p10)  }
  0x38   :  { %76 = dma.hbm_to_vmem [thread:$0]  %s10856_s4, 65536, %s74_s14, [#allocation5 + $0x1]  ;;  %v77_v0 = vld [vmem:[#allocation9] ss:$8 sm:$0xf] }
  0x39   :  { %v78_v1 = vld [vmem:[#allocation9] ss:$8 sm:$0xf0]  ;;  %v81_v3 = vld [vmem:[#allocation9 + $0x1] ss:$8 sm:$0xf] }
  0x3a   :  { %v10416_v2 = vor.u32 %v78_v1, %v77_v0  ;;  %v82_v4 = vld [vmem:[#allocation9 + $0x1] ss:$8 sm:$0xf0]  ;;  %v85_v6 = vld [vmem:[#allocation9 + $0x2] ss:$8 sm:$0xf] }
  0x3b   :  { %v10418_v5 = vor.u32 %v82_v4, %v81_v3  ;;  %v86_v7 = vld [vmem:[#allocation9 + $0x2] ss:$8 sm:$0xf0]  ;;  %v89_v9 = vld [vmem:[#allocation9 + $0x3] ss:$8 sm:$0xf] }
  0x3c   :  { %v10420_v8 = vor.u32 %v86_v7, %v85_v6  ;;  %v90_v10 = vld [vmem:[#allocation9 + $0x3] ss:$8 sm:$0xf0]  ;;  %v93_v12 = vld [vmem:[#allocation9 + $0x4] ss:$8 sm:$0xf] }
  0x3d   :  { %v10422_v11 = vor.u32 %v90_v10, %v89_v9  ;;  %v94_v13 = vld [vmem:[#allocation9 + $0x4] ss:$8 sm:$0xf0]  ;;  %v97_v15 = vld [vmem:[#allocation9 + $0x5] ss:$8 sm:$0xf] }
  0x3e   :  { %v10424_v14 = vor.u32 %v94_v13, %v93_v12  ;;  %v98_v16 = vld [vmem:[#allocation9 + $0x5] ss:$8 sm:$0xf0] }
  0x3f   :  { %v10426_v17 = vor.u32 %v98_v16, %v97_v15  ;;  %v100_v18 = vld [vmem:[#allocation6] sm:$0xff]  ;;  %v101_v19 = vld [vmem:[#allocation6 + $0x8] sm:$0xff]  ;;  %v102_v20 = vld [vmem:[#allocation6 + $0x10] sm:$0xff] }
  0x40   :  { %v103_v21 = vld [vmem:[#allocation6 + $0x18] sm:$0xff]  ;;  %v104_v22 = vld [vmem:[#allocation6 + $0x20] sm:$0xff]  ;;  %v105_v23 = vld [vmem:[#allocation6 + $0x28] sm:$0xff]  ;;  %v10428_v24 = vpack.c.bf16 %v100_v18, %v100_v18  ;;  %v10430_v25 = vpack.c.bf16 %v101_v19, %v101_v19  ;;  %v10432_v26 = vpack.c.bf16 %v102_v20, %v102_v20 }
  0x41   :  { %v106_v27 = vld [vmem:[#allocation6 + $0x30] sm:$0xff]  ;;  %v107_v28 = vld [vmem:[#allocation6 + $0x38] sm:$0xff]  ;;  %v10434_v29 = vpack.c.bf16 %v103_v21, %v103_v21  ;;  %v10436_v30 = vpack.c.bf16 %v104_v22, %v104_v22  ;;  %v10438_v31 = vpack.c.bf16 %v105_v23, %v105_v23 }
  0x42   :  { %v10440_v32 = vpack.c.bf16 %v106_v27, %v106_v27  ;;  %v10442_v33 = vpack.c.bf16 %v107_v28, %v107_v28 }
  0x43   :  { %10351 = dma.done.wait [#allocation5], 65536 }
  0x44   :  { %10352 = vsyncadd [#allocation5], 4294901760  ;;  %3265 = vmatprep.mubr.bf16.mxu0 %v10430_v25  ;;  %3306 = vmatprep.mubr.bf16.mxu1 %v10434_v29  ;;  %v176_v34 = vld [vmem:[#allocation2 + $0x1c0] sm:$0xff] }
  0x45   :  { %v180_v35 = vld [vmem:[#allocation2 + $0x1e0] sm:$0xff] }
  0x46   :  { %v304_v36 = vld [vmem:[#allocation2 + $0x5c0] sm:$0xff]  ;;  %v8981_v37 = vcombine.high %v176_v34, %v180_v35  ;;  %v8980_v39 = vcombine.low %v176_v34, %v180_v35 }
  0x47   :  { %v308_v38 = vld [vmem:[#allocation2 + $0x5e0] sm:$0xff] }
  0x48   :  { %v168_v40 = vld [vmem:[#allocation2 + $0x180] sm:$0xff]  ;;  %v9109_v42 = vcombine.high %v304_v36, %v308_v38  ;;  %v9108_v43 = vcombine.low %v304_v36, %v308_v38  ;;  %3233 = vmatprep.subr.bf16.mxu0 %v8981_v37 }
  0x49   :  { %v172_v41 = vld [vmem:[#allocation2 + $0x1a0] sm:$0xff]  ;;  %3234 = vmatpush1.bf16.msra.mxu0 %v8980_v39 }
  0x4a   :  { %v8973_v44 = vcombine.high %v168_v40, %v172_v41  ;;  %v296_v45 = vld [vmem:[#allocation2 + $0x580] sm:$0xff]  ;;  %3274 = vmatprep.subr.bf16.mxu1 %v9109_v42  ;;  %v8972_v52 = vcombine.low %v168_v40, %v172_v41 }
  0x4b   :  { %v300_v46 = vld [vmem:[#allocation2 + $0x5a0] sm:$0xff]  ;;  %3275 = vmatpush1.bf16.msra.mxu1 %v9108_v43 }
  0x4c   :  { %v160_v47 = vld [vmem:[#allocation2 + $0x140] sm:$0xff]  ;;  %v9101_v48 = vcombine.high %v296_v45, %v300_v46  ;;  %3235 = vmatprep.subr.bf16.mxu0 %v8973_v44  ;;  %v9100_v53 = vcombine.low %v296_v45, %v300_v46 }
  0x4d   :  { %v164_v49 = vld [vmem:[#allocation2 + $0x160] sm:$0xff]  ;;  %3236 = vmatpush1.bf16.msra.mxu0 %v8972_v52 }
  0x4e   :  { %v288_v50 = vld [vmem:[#allocation2 + $0x540] sm:$0xff]  ;;  %v8965_v54 = vcombine.high %v160_v47, %v164_v49  ;;  %3276 = vmatprep.subr.bf16.mxu1 %v9101_v48  ;;  %v8964_v60 = vcombine.low %v160_v47, %v164_v49 }
  0x4f   :  { %v292_v51 = vld [vmem:[#allocation2 + $0x560] sm:$0xff]  ;;  %3277 = vmatpush1.bf16.msra.mxu1 %v9100_v53 }
  0x50   :  { %v9093_v55 = vcombine.high %v288_v50, %v292_v51  ;;  %v152_v56 = vld [vmem:[#allocation2 + $0x100] sm:$0xff]  ;;  %3237 = vmatprep.subr.bf16.mxu0 %v8965_v54  ;;  %v9092_v61 = vcombine.low %v288_v50, %v292_v51 }
  0x51   :  { %v156_v57 = vld [vmem:[#allocation2 + $0x120] sm:$0xff]  ;;  %3238 = vmatpush1.bf16.msra.mxu0 %v8964_v60 }
  0x52   :  { %v280_v58 = vld [vmem:[#allocation2 + $0x500] sm:$0xff]  ;;  %v8957_v62 = vcombine.high %v152_v56, %v156_v57  ;;  %3278 = vmatprep.subr.bf16.mxu1 %v9093_v55  ;;  %v8956_v6 = vcombine.low %v152_v56, %v156_v57 }
  0x53   :  { %v284_v59 = vld [vmem:[#allocation2 + $0x520] sm:$0xff]  ;;  %3279 = vmatpush1.bf16.msra.mxu1 %v9092_v61 }
  0x54   :  { %v9085_v63 = vcombine.high %v280_v58, %v284_v59  ;;  %v144_v0 = vld [vmem:[#allocation2 + $0xc0] sm:$0xff]  ;;  %3239 = vmatprep.subr.bf16.mxu0 %v8957_v62  ;;  %v9084_v7 = vcombine.low %v280_v58, %v284_v59 }
  0x55   :  { %v148_v1 = vld [vmem:[#allocation2 + $0xe0] sm:$0xff]  ;;  %3240 = vmatpush1.bf16.msra.mxu0 %v8956_v6 }
  0x56   :  { %v272_v3 = vld [vmem:[#allocation2 + $0x4c0] sm:$0xff]  ;;  %v8949_v9 = vcombine.high %v144_v0, %v148_v1  ;;  %3280 = vmatprep.subr.bf16.mxu1 %v9085_v63  ;;  %v8948_v18 = vcombine.low %v144_v0, %v148_v1 }
  0x57   :  { %v276_v4 = vld [vmem:[#allocation2 + $0x4e0] sm:$0xff]  ;;  %3281 = vmatpush1.bf16.msra.mxu1 %v9084_v7 }
  0x58   :  { %v9077_v10 = vcombine.high %v272_v3, %v276_v4  ;;  %v136_v12 = vld [vmem:[#allocation2 + $0x80] sm:$0xff]  ;;  %3241 = vmatprep.subr.bf16.mxu0 %v8949_v9  ;;  %v9076_v19 = vcombine.low %v272_v3, %v276_v4 }
  0x59   :  { %v140_v13 = vld [vmem:[#allocation2 + $0xa0] sm:$0xff]  ;;  %3242 = vmatpush1.bf16.msra.mxu0 %v8948_v18 }
  0x5a   :  { %v264_v15 = vld [vmem:[#allocation2 + $0x480] sm:$0xff]  ;;  %v8941_v20 = vcombine.high %v136_v12, %v140_v13  ;;  %3282 = vmatprep.subr.bf16.mxu1 %v9077_v10  ;;  %v8940_v34 = vcombine.low %v136_v12, %v140_v13 }
  0x5b   :  { %v268_v16 = vld [vmem:[#allocation2 + $0x4a0] sm:$0xff]  ;;  %3283 = vmatpush1.bf16.msra.mxu1 %v9076_v19 }
  0x5c   :  { %v9069_v21 = vcombine.high %v264_v15, %v268_v16  ;;  %v128_v22 = vld [vmem:[#allocation2 + $0x40] sm:$0xff]  ;;  %3243 = vmatprep.subr.bf16.mxu0 %v8941_v20  ;;  %v9068_v35 = vcombine.low %v264_v15, %v268_v16 }
  0x5d   :  { %v132_v23 = vld [vmem:[#allocation2 + $0x60] sm:$0xff]  ;;  %3244 = vmatpush1.bf16.msra.mxu0 %v8940_v34 }
  0x5e   :  { %v256_v27 = vld [vmem:[#allocation2 + $0x440] sm:$0xff]  ;;  %v8933_v36 = vcombine.high %v128_v22, %v132_v23  ;;  %3284 = vmatprep.subr.bf16.mxu1 %v9069_v21  ;;  %v8932_v42 = vcombine.low %v128_v22, %v132_v23 }
  0x5f   :  { %v260_v28 = vld [vmem:[#allocation2 + $0x460] sm:$0xff]  ;;  %3285 = vmatpush1.bf16.msra.mxu1 %v9068_v35 }
  0x60   :  { %v9061_v37 = vcombine.high %v256_v27, %v260_v28  ;;  %v120_v38 = vld [vmem:[#allocation2] sm:$0xff]  ;;  %3245 = vmatprep.subr.bf16.mxu0 %v8933_v36  ;;  %v9060_v43 = vcombine.low %v256_v27, %v260_v28 }
  0x61   :  { %v124_v39 = vld [vmem:[#allocation2 + $0x20] sm:$0xff]  ;;  %3246 = vmatpush1.bf16.msra.mxu0 %v8932_v42 }
  0x62   :  { %v248_v40 = vld [vmem:[#allocation2 + $0x400] sm:$0xff]  ;;  %v8925_v44 = vcombine.high %v120_v38, %v124_v39  ;;  %3286 = vmatprep.subr.bf16.mxu1 %v9061_v37  ;;  %v8924_v50 = vcombine.low %v120_v38, %v124_v39 }
  0x63   :  { %v252_v41 = vld [vmem:[#allocation2 + $0x420] sm:$0xff]  ;;  %3287 = vmatpush1.bf16.msra.mxu1 %v9060_v43 }
  0x64   :  { %v9053_v45 = vcombine.high %v248_v40, %v252_v41  ;;  %v240_v46 = vld [vmem:[#allocation2 + $0x3c0] sm:$0xff]  ;;  %3247 = vmatprep.subr.bf16.mxu0 %v8925_v44  ;;  %v9052_v51 = vcombine.low %v248_v40, %v252_v41 }
  0x65   :  { %v244_v47 = vld [vmem:[#allocation2 + $0x3e0] sm:$0xff]  ;;  %3248 = vmatpush1.bf16.msra.mxu0 %v8924_v50 }
  0x66   :  { %v368_v48 = vld [vmem:[#allocation2 + $0x7c0] sm:$0xff]  ;;  %v9045_v52 = vcombine.high %v240_v46, %v244_v47  ;;  %3288 = vmatprep.subr.bf16.mxu1 %v9053_v45  ;;  %v9044_v58 = vcombine.low %v240_v46, %v244_v47 }
  0x67   :  { %v372_v49 = vld [vmem:[#allocation2 + $0x7e0] sm:$0xff]  ;;  %3289 = vmatpush1.bf16.msra.mxu1 %v9052_v51 }
  0x68   :  { %v9173_v53 = vcombine.high %v368_v48, %v372_v49  ;;  %v232_v54 = vld [vmem:[#allocation2 + $0x380] sm:$0xff]  ;;  %3249 = vmatprep.subr.bf16.mxu0 %v9045_v52  ;;  %v9172_v59 = vcombine.low %v368_v48, %v372_v49 }
  0x69   :  { %v236_v55 = vld [vmem:[#allocation2 + $0x3a0] sm:$0xff]  ;;  %3250 = vmatpush2.bf16.msra.mxu0 %v9044_v58 }
  0x6a   :  { %v360_v56 = vld [vmem:[#allocation2 + $0x780] sm:$0xff]  ;;  %v9037_v60 = vcombine.high %v232_v54, %v236_v55  ;;  %3290 = vmatprep.subr.bf16.mxu1 %v9173_v53  ;;  %v9036_v3 = vcombine.low %v232_v54, %v236_v55 }
  0x6b   :  { %v364_v57 = vld [vmem:[#allocation2 + $0x7a0] sm:$0xff]  ;;  %3291 = vmatpush2.bf16.msra.mxu1 %v9172_v59 }
  0x6c   :  { %v9165_v61 = vcombine.high %v360_v56, %v364_v57  ;;  %v224_v62 = vld [vmem:[#allocation2 + $0x340] sm:$0xff]  ;;  %3251 = vmatprep.subr.bf16.mxu0 %v9037_v60  ;;  %v9164_v4 = vcombine.low %v360_v56, %v364_v57 }
  0x6d   :  { %v228_v63 = vld [vmem:[#allocation2 + $0x360] sm:$0xff]  ;;  %3252 = vmatpush2.bf16.msra.mxu0 %v9036_v3 }
  0x6e   :  { %v352_v0 = vld [vmem:[#allocation2 + $0x740] sm:$0xff]  ;;  %v9029_v6 = vcombine.high %v224_v62, %v228_v63  ;;  %3292 = vmatprep.subr.bf16.mxu1 %v9165_v61  ;;  %v9028_v15 = vcombine.low %v224_v62, %v228_v63 }
  0x6f   :  { %v356_v1 = vld [vmem:[#allocation2 + $0x760] sm:$0xff]  ;;  %3293 = vmatpush2.bf16.msra.mxu1 %v9164_v4 }
  0x70   :  { %v9157_v7 = vcombine.high %v352_v0, %v356_v1  ;;  %v216_v9 = vld [vmem:[#allocation2 + $0x300] sm:$0xff]  ;;  %3253 = vmatprep.subr.bf16.mxu0 %v9029_v6  ;;  %v9156_v16 = vcombine.low %v352_v0, %v356_v1 }
  0x71   :  { %v220_v10 = vld [vmem:[#allocation2 + $0x320] sm:$0xff]  ;;  %3254 = vmatpush2.bf16.msra.mxu0 %v9028_v15 }
  0x72   :  { %v344_v12 = vld [vmem:[#allocation2 + $0x700] sm:$0xff]  ;;  %v9021_v18 = vcombine.high %v216_v9, %v220_v10  ;;  %3294 = vmatprep.subr.bf16.mxu1 %v9157_v7  ;;  %v9020_v27 = vcombine.low %v216_v9, %v220_v10 }
  0x73   :  { %v348_v13 = vld [vmem:[#allocation2 + $0x720] sm:$0xff]  ;;  %3295 = vmatpush2.bf16.msra.mxu1 %v9156_v16 }
  0x74   :  { %v9149_v19 = vcombine.high %v344_v12, %v348_v13  ;;  %v208_v20 = vld [vmem:[#allocation2 + $0x2c0] sm:$0xff]  ;;  %3255 = vmatprep.subr.bf16.mxu0 %v9021_v18  ;;  %v9148_v28 = vcombine.low %v344_v12, %v348_v13 }
  0x75   :  { %v212_v21 = vld [vmem:[#allocation2 + $0x2e0] sm:$0xff]  ;;  %3256 = vmatpush2.bf16.msra.mxu0 %v9020_v27 }
  0x76   :  { %v336_v22 = vld [vmem:[#allocation2 + $0x6c0] sm:$0xff]  ;;  %v9013_v34 = vcombine.high %v208_v20, %v212_v21  ;;  %3296 = vmatprep.subr.bf16.mxu1 %v9149_v19  ;;  %v9012_v40 = vcombine.low %v208_v20, %v212_v21 }
  0x77   :  { %v340_v23 = vld [vmem:[#allocation2 + $0x6e0] sm:$0xff]  ;;  %3297 = vmatpush2.bf16.msra.mxu1 %v9148_v28 }
  0x78   :  { %v9141_v35 = vcombine.high %v336_v22, %v340_v23  ;;  %v200_v36 = vld [vmem:[#allocation2 + $0x280] sm:$0xff]  ;;  %3257 = vmatprep.subr.bf16.mxu0 %v9013_v34  ;;  %v9140_v41 = vcombine.low %v336_v22, %v340_v23 }
  0x79   :  { %v204_v37 = vld [vmem:[#allocation2 + $0x2a0] sm:$0xff]  ;;  %3258 = vmatpush2.bf16.msra.mxu0 %v9012_v40 }
  0x7a   :  { %v328_v38 = vld [vmem:[#allocation2 + $0x680] sm:$0xff]  ;;  %v9005_v42 = vcombine.high %v200_v36, %v204_v37  ;;  %3298 = vmatprep.subr.bf16.mxu1 %v9141_v35  ;;  %v9004_v48 = vcombine.low %v200_v36, %v204_v37 }
  0x7b   :  { %v332_v39 = vld [vmem:[#allocation2 + $0x6a0] sm:$0xff]  ;;  %3299 = vmatpush2.bf16.msra.mxu1 %v9140_v41 }
  0x7c   :  { %v9133_v43 = vcombine.high %v328_v38, %v332_v39  ;;  %v192_v44 = vld [vmem:[#allocation2 + $0x240] sm:$0xff]  ;;  %3259 = vmatprep.subr.bf16.mxu0 %v9005_v42  ;;  %v9132_v49 = vcombine.low %v328_v38, %v332_v39 }
  0x7d   :  { %v196_v45 = vld [vmem:[#allocation2 + $0x260] sm:$0xff]  ;;  %3260 = vmatpush2.bf16.msra.mxu0 %v9004_v48 }
  0x7e   :  { %v320_v46 = vld [vmem:[#allocation2 + $0x640] sm:$0xff]  ;;  %v8997_v50 = vcombine.high %v192_v44, %v196_v45  ;;  %3300 = vmatprep.subr.bf16.mxu1 %v9133_v43  ;;  %v8996_v56 = vcombine.low %v192_v44, %v196_v45 }
  0x7f   :  { %v324_v47 = vld [vmem:[#allocation2 + $0x660] sm:$0xff]  ;;  %3301 = vmatpush2.bf16.msra.mxu1 %v9132_v49 }
  0x80   :  { %v9125_v51 = vcombine.high %v320_v46, %v324_v47  ;;  %v184_v52 = vld [vmem:[#allocation2 + $0x200] sm:$0xff]  ;;  %3261 = vmatprep.subr.bf16.mxu0 %v8997_v50  ;;  %v9124_v57 = vcombine.low %v320_v46, %v324_v47 }
  0x81   :  { %v188_v53 = vld [vmem:[#allocation2 + $0x220] sm:$0xff]  ;;  %3262 = vmatpush2.bf16.msra.mxu0 %v8996_v56 }
  0x82   :  { %v312_v54 = vld [vmem:[#allocation2 + $0x600] sm:$0xff]  ;;  %v8989_v58 = vcombine.high %v184_v52, %v188_v53  ;;  %3302 = vmatprep.subr.bf16.mxu1 %v9125_v51  ;;  %v8988_v0 = vcombine.low %v184_v52, %v188_v53 }
  0x83   :  { %v316_v55 = vld [vmem:[#allocation2 + $0x620] sm:$0xff]  ;;  %3303 = vmatpush2.bf16.msra.mxu1 %v9124_v57 }
  0x84   :  { %v9117_v59 = vcombine.high %v312_v54, %v316_v55  ;;  %v432_v60 = vld [vmem:[#allocation2 + $0x9c0] sm:$0xff]  ;;  %3263 = vmatprep.subr.bf16.mxu0 %v8989_v58  ;;  %v9116_v1 = vcombine.low %v312_v54, %v316_v55 }
  0x85   :  { %v436_v61 = vld [vmem:[#allocation2 + $0x9e0] sm:$0xff]  ;;  %3264 = vmatpush2.bf16.msra.mxu0 %v8988_v0 }
  0x86   :  { %v560_v62 = vld [vmem:[#allocation2 + $0xdc0] sm:$0xff]  ;;  %v9237_v3 = vcombine.high %v432_v60, %v436_v61  ;;  %3304 = vmatprep.subr.bf16.mxu1 %v9117_v59  ;;  %v9236_v12 = vcombine.low %v432_v60, %v436_v61 }
  0x87   :  { %v564_v63 = vld [vmem:[#allocation2 + $0xde0] sm:$0xff]  ;;  %3305 = vmatpush2.bf16.msra.mxu1 %v9116_v1 }
  0x88   :  { %v9365_v4 = vcombine.high %v560_v62, %v564_v63  ;;  %v424_v6 = vld [vmem:[#allocation2 + $0x980] sm:$0xff]  ;;  %3315 = vmatprep.subr.bf16.mxu0 %v9237_v3  ;;  %v9364_v13 = vcombine.low %v560_v62, %v564_v63  ;;  %3266 = vmatmul.mubr.bf16.vlgmr.msra.gmra.mxu0 %v10428_v24 }
  0x89   :  { %v428_v7 = vld [vmem:[#allocation2 + $0x9a0] sm:$0xff]  ;;  %3316 = vmatpush1.bf16.msra.mxu0 %v9236_v12  ;;  %3347 = vmatprep.mubr.bf16.mxu0 %v10438_v31 }
  0x8a   :  { %v552_v9 = vld [vmem:[#allocation2 + $0xd80] sm:$0xff]  ;;  %v9229_v15 = vcombine.high %v424_v6, %v428_v7  ;;  %3356 = vmatprep.subr.bf16.mxu1 %v9365_v4  ;;  %3307 = vmatmul.mubr.bf16.vlgmr.msra.gmra.mxu1 %v10432_v26  ;;  %v9228_v22 = vcombine.low %v424_v6, %v428_v7 }
  0x8b   :  { %v556_v10 = vld [vmem:[#allocation2 + $0xda0] sm:$0xff]  ;;  %3357 = vmatpush1.bf16.msra.mxu1 %v9364_v13  ;;  %3388 = vmatprep.mubr.bf16.mxu1 %v10442_v33 }
  0x8c   :  { %v9357_v16 = vcombine.high %v552_v9, %v556_v10  ;;  %v416_v18 = vld [vmem:[#allocation2 + $0x940] sm:$0xff]  ;;  %3317 = vmatprep.subr.bf16.mxu0 %v9229_v15  ;;  %v9356_v23 = vcombine.low %v552_v9, %v556_v10 }
  0x8d   :  { %v420_v19 = vld [vmem:[#allocation2 + $0x960] sm:$0xff]  ;;  %3318 = vmatpush1.bf16.msra.mxu0 %v9228_v22 }
  0x8e   :  { %v544_v20 = vld [vmem:[#allocation2 + $0xd40] sm:$0xff]  ;;  %v9221_v27 = vcombine.high %v416_v18, %v420_v19  ;;  %3358 = vmatprep.subr.bf16.mxu1 %v9357_v16  ;;  %v9220_v38 = vcombine.low %v416_v18, %v420_v19 }
  0x8f   :  { %v548_v21 = vld [vmem:[#allocation2 + $0xd60] sm:$0xff]  ;;  %3359 = vmatpush1.bf16.msra.mxu1 %v9356_v23 }
  0x90   :  { %v9349_v28 = vcombine.high %v544_v20, %v548_v21  ;;  %v408_v34 = vld [vmem:[#allocation2 + $0x900] sm:$0xff]  ;;  %3319 = vmatprep.subr.bf16.mxu0 %v9221_v27  ;;  %v9348_v39 = vcombine.low %v544_v20, %v548_v21 }
  0x91   :  { %v412_v35 = vld [vmem:[#allocation2 + $0x920] sm:$0xff]  ;;  %3320 = vmatpush1.bf16.msra.mxu0 %v9220_v38 }
  0x92   :  { %v536_v36 = vld [vmem:[#allocation2 + $0xd00] sm:$0xff]  ;;  %v9213_v40 = vcombine.high %v408_v34, %v412_v35  ;;  %3360 = vmatprep.subr.bf16.mxu1 %v9349_v28  ;;  %v9212_v46 = vcombine.low %v408_v34, %v412_v35 }
  0x93   :  { %v540_v37 = vld [vmem:[#allocation2 + $0xd20] sm:$0xff]  ;;  %3361 = vmatpush1.bf16.msra.mxu1 %v9348_v39 }
  0x94   :  { %v9341_v41 = vcombine.high %v536_v36, %v540_v37  ;;  %v400_v42 = vld [vmem:[#allocation2 + $0x8c0] sm:$0xff]  ;;  %3321 = vmatprep.subr.bf16.mxu0 %v9213_v40  ;;  %v9340_v47 = vcombine.low %v536_v36, %v540_v37 }
  0x95   :  { %v404_v43 = vld [vmem:[#allocation2 + $0x8e0] sm:$0xff]  ;;  %3322 = vmatpush1.bf16.msra.mxu0 %v9212_v46 }
  0x96   :  { %v528_v44 = vld [vmem:[#allocation2 + $0xcc0] sm:$0xff]  ;;  %v9205_v48 = vcombine.high %v400_v42, %v404_v43  ;;  %3362 = vmatprep.subr.bf16.mxu1 %v9341_v41  ;;  %v9204_v54 = vcombine.low %v400_v42, %v404_v43 }
  0x97   :  { %v532_v45 = vld [vmem:[#allocation2 + $0xce0] sm:$0xff]  ;;  %3363 = vmatpush1.bf16.msra.mxu1 %v9340_v47 }
  0x98   :  { %v9333_v49 = vcombine.high %v528_v44, %v532_v45  ;;  %v392_v50 = vld [vmem:[#allocation2 + $0x880] sm:$0xff]  ;;  %3323 = vmatprep.subr.bf16.mxu0 %v9205_v48  ;;  %v9332_v55 = vcombine.low %v528_v44, %v532_v45 }
  0x99   :  { %v396_v51 = vld [vmem:[#allocation2 + $0x8a0] sm:$0xff]  ;;  %3324 = vmatpush1.bf16.msra.mxu0 %v9204_v54 }
  0x9a   :  { %v520_v52 = vld [vmem:[#allocation2 + $0xc80] sm:$0xff]  ;;  %v9197_v56 = vcombine.high %v392_v50, %v396_v51  ;;  %3364 = vmatprep.subr.bf16.mxu1 %v9333_v49  ;;  %v9196_v62 = vcombine.low %v392_v50, %v396_v51 }
  0x9b   :  { %v524_v53 = vld [vmem:[#allocation2 + $0xca0] sm:$0xff]  ;;  %3365 = vmatpush1.bf16.msra.mxu1 %v9332_v55 }
  0x9c   :  { %v9325_v57 = vcombine.high %v520_v52, %v524_v53  ;;  %v384_v58 = vld [vmem:[#allocation2 + $0x840] sm:$0xff]  ;;  %3325 = vmatprep.subr.bf16.mxu0 %v9197_v56  ;;  %v9324_v63 = vcombine.low %v520_v52, %v524_v53 }
  0x9d   :  { %v388_v59 = vld [vmem:[#allocation2 + $0x860] sm:$0xff]  ;;  %3326 = vmatpush1.bf16.msra.mxu0 %v9196_v62 }
  0x9e   :  { %v512_v60 = vld [vmem:[#allocation2 + $0xc40] sm:$0xff]  ;;  %v9189_v0 = vcombine.high %v384_v58, %v388_v59  ;;  %3366 = vmatprep.subr.bf16.mxu1 %v9325_v57  ;;  %v9188_v9 = vcombine.low %v384_v58, %v388_v59 }
  0x9f   :  { %v516_v61 = vld [vmem:[#allocation2 + $0xc60] sm:$0xff]  ;;  %3367 = vmatpush1.bf16.msra.mxu1 %v9324_v63 }
  0xa0   :  { %v9317_v1 = vcombine.high %v512_v60, %v516_v61  ;;  %v376_v3 = vld [vmem:[#allocation2 + $0x800] sm:$0xff]  ;;  %3327 = vmatprep.subr.bf16.mxu0 %v9189_v0  ;;  %v9316_v10 = vcombine.low %v512_v60, %v516_v61 }
  0xa1   :  { %v380_v4 = vld [vmem:[#allocation2 + $0x820] sm:$0xff]  ;;  %3328 = vmatpush1.bf16.msra.mxu0 %v9188_v9 }
  0xa2   :  { %v504_v6 = vld [vmem:[#allocation2 + $0xc00] sm:$0xff]  ;;  %v9181_v12 = vcombine.high %v376_v3, %v380_v4  ;;  %3368 = vmatprep.subr.bf16.mxu1 %v9317_v1  ;;  %v9180_v20 = vcombine.low %v376_v3, %v380_v4 }
  0xa3   :  { %v508_v7 = vld [vmem:[#allocation2 + $0xc20] sm:$0xff]  ;;  %3369 = vmatpush1.bf16.msra.mxu1 %v9316_v10 }
  0xa4   :  { %v9309_v13 = vcombine.high %v504_v6, %v508_v7  ;;  %v496_v15 = vld [vmem:[#allocation2 + $0xbc0] sm:$0xff]  ;;  %3329 = vmatprep.subr.bf16.mxu0 %v9181_v12  ;;  %v9308_v21 = vcombine.low %v504_v6, %v508_v7 }
  0xa5   :  { %v500_v16 = vld [vmem:[#allocation2 + $0xbe0] sm:$0xff]  ;;  %3330 = vmatpush1.bf16.msra.mxu0 %v9180_v20 }
  0xa6   :  { %v624_v18 = vld [vmem:[#allocation2 + $0xfc0] sm:$0xff]  ;;  %v9301_v22 = vcombine.high %v496_v15, %v500_v16  ;;  %3370 = vmatprep.subr.bf16.mxu1 %v9309_v13  ;;  %v9300_v36 = vcombine.low %v496_v15, %v500_v16 }
  0xa7   :  { %v628_v19 = vld [vmem:[#allocation2 + $0xfe0] sm:$0xff]  ;;  %3371 = vmatpush1.bf16.msra.mxu1 %v9308_v21 }
  0xa8   :  { %v9429_v23 = vcombine.high %v624_v18, %v628_v19  ;;  %v488_v27 = vld [vmem:[#allocation2 + $0xb80] sm:$0xff]  ;;  %3331 = vmatprep.subr.bf16.mxu0 %v9301_v22  ;;  %v9428_v37 = vcombine.low %v624_v18, %v628_v19 }
  0xa9   :  { %v492_v28 = vld [vmem:[#allocation2 + $0xba0] sm:$0xff]  ;;  %3332 = vmatpush2.bf16.msra.mxu0 %v9300_v36 }
  0xaa   :  { %v616_v34 = vld [vmem:[#allocation2 + $0xf80] sm:$0xff]  ;;  %v9293_v38 = vcombine.high %v488_v27, %v492_v28  ;;  %3372 = vmatprep.subr.bf16.mxu1 %v9429_v23  ;;  %v9292_v44 = vcombine.low %v488_v27, %v492_v28 }
  0xab   :  { %v620_v35 = vld [vmem:[#allocation2 + $0xfa0] sm:$0xff]  ;;  %3373 = vmatpush2.bf16.msra.mxu1 %v9428_v37 }
  0xac   :  { %v9421_v39 = vcombine.high %v616_v34, %v620_v35  ;;  %v480_v40 = vld [vmem:[#allocation2 + $0xb40] sm:$0xff]  ;;  %3333 = vmatprep.subr.bf16.mxu0 %v9293_v38  ;;  %v9420_v45 = vcombine.low %v616_v34, %v620_v35  ;;  %v177_v38 = vld [vmem:[#allocation2 + $0x1c8] sm:$0xff] }
  0xad   :  { %v484_v41 = vld [vmem:[#allocation2 + $0xb60] sm:$0xff]  ;;  %3334 = vmatpush2.bf16.msra.mxu0 %v9292_v44 }
  0xae   :  { %v608_v42 = vld [vmem:[#allocation2 + $0xf40] sm:$0xff]  ;;  %v9285_v46 = vcombine.high %v480_v40, %v484_v41  ;;  %3374 = vmatprep.subr.bf16.mxu1 %v9421_v39  ;;  %v9284_v52 = vcombine.low %v480_v40, %v484_v41  ;;  %v181_v39 = vld [vmem:[#allocation2 + $0x1e8] sm:$0xff] }
  0xaf   :  { %v612_v43 = vld [vmem:[#allocation2 + $0xf60] sm:$0xff]  ;;  %3375 = vmatpush2.bf16.msra.mxu1 %v9420_v45  ;;  %v305_v40 = vld [vmem:[#allocation2 + $0x5c8] sm:$0xff]  ;;  %v8983_v44 = vcombine.high %v177_v38, %v181_v39 }
  0xb0   :  { %v9413_v47 = vcombine.high %v608_v42, %v612_v43  ;;  %v472_v48 = vld [vmem:[#allocation2 + $0xb00] sm:$0xff]  ;;  %3335 = vmatprep.subr.bf16.mxu0 %v9285_v46  ;;  %v9412_v53 = vcombine.low %v608_v42, %v612_v43  ;;  %v309_v41 = vld [vmem:[#allocation2 + $0x5e8] sm:$0xff] }
  0xb1   :  { %v476_v49 = vld [vmem:[#allocation2 + $0xb20] sm:$0xff]  ;;  %3336 = vmatpush2.bf16.msra.mxu0 %v9284_v52  ;;  %v9111_v45 = vcombine.high %v305_v40, %v309_v41  ;;  %v169_v46 = vld [vmem:[#allocation2 + $0x188] sm:$0xff] }
  0xb2   :  { %v600_v50 = vld [vmem:[#allocation2 + $0xf00] sm:$0xff]  ;;  %v9277_v54 = vcombine.high %v472_v48, %v476_v49  ;;  %3376 = vmatprep.subr.bf16.mxu1 %v9413_v47  ;;  %v9276_v60 = vcombine.low %v472_v48, %v476_v49  ;;  %v173_v47 = vld [vmem:[#allocation2 + $0x1a8] sm:$0xff] }
  0xb3   :  { %v604_v51 = vld [vmem:[#allocation2 + $0xf20] sm:$0xff]  ;;  %3377 = vmatpush2.bf16.msra.mxu1 %v9412_v53  ;;  %v297_v48 = vld [vmem:[#allocation2 + $0x588] sm:$0xff]  ;;  %v8975_v52 = vcombine.high %v169_v46, %v173_v47 }
  0xb4   :  { %v9405_v55 = vcombine.high %v600_v50, %v604_v51  ;;  %v464_v56 = vld [vmem:[#allocation2 + $0xac0] sm:$0xff]  ;;  %3337 = vmatprep.subr.bf16.mxu0 %v9277_v54  ;;  %v9404_v61 = vcombine.low %v600_v50, %v604_v51  ;;  %v301_v49 = vld [vmem:[#allocation2 + $0x5a8] sm:$0xff]  ;;  %v8982_v50 = vcombine.low %v177_v38, %v181_v39  ;;  %v9110_v51 = vcombine.low %v305_v40, %v309_v41 }
  0xb5   :  { %v468_v57 = vld [vmem:[#allocation2 + $0xae0] sm:$0xff]  ;;  %3338 = vmatpush2.bf16.msra.mxu0 %v9276_v60  ;;  %v9103_v53 = vcombine.high %v297_v48, %v301_v49  ;;  %v161_v54 = vld [vmem:[#allocation2 + $0x148] sm:$0xff] }
  0xb6   :  { %v592_v58 = vld [vmem:[#allocation2 + $0xec0] sm:$0xff]  ;;  %v9269_v62 = vcombine.high %v464_v56, %v468_v57  ;;  %3378 = vmatprep.subr.bf16.mxu1 %v9405_v55  ;;  %v9268_v6 = vcombine.low %v464_v56, %v468_v57  ;;  %v165_v55 = vld [vmem:[#allocation2 + $0x168] sm:$0xff] }
  0xb7   :  { %v596_v59 = vld [vmem:[#allocation2 + $0xee0] sm:$0xff]  ;;  %3379 = vmatpush2.bf16.msra.mxu1 %v9404_v61  ;;  %v289_v56 = vld [vmem:[#allocation2 + $0x548] sm:$0xff]  ;;  %v8967_v60 = vcombine.high %v161_v54, %v165_v55 }
  0xb8   :  { %v9397_v63 = vcombine.high %v592_v58, %v596_v59  ;;  %v456_v0 = vld [vmem:[#allocation2 + $0xa80] sm:$0xff]  ;;  %3339 = vmatprep.subr.bf16.mxu0 %v9269_v62  ;;  %v9396_v7 = vcombine.low %v592_v58, %v596_v59  ;;  %v293_v57 = vld [vmem:[#allocation2 + $0x568] sm:$0xff]  ;;  %v8974_v58 = vcombine.low %v169_v46, %v173_v47  ;;  %v9102_v59 = vcombine.low %v297_v48, %v301_v49 }
  0xb9   :  { %v460_v1 = vld [vmem:[#allocation2 + $0xaa0] sm:$0xff]  ;;  %3340 = vmatpush2.bf16.msra.mxu0 %v9268_v6  ;;  %v9095_v61 = vcombine.high %v289_v56, %v293_v57  ;;  %v153_v62 = vld [vmem:[#allocation2 + $0x108] sm:$0xff] }
  0xba   :  { %v584_v3 = vld [vmem:[#allocation2 + $0xe80] sm:$0xff]  ;;  %v9261_v9 = vcombine.high %v456_v0, %v460_v1  ;;  %3380 = vmatprep.subr.bf16.mxu1 %v9397_v63  ;;  %v9260_v18 = vcombine.low %v456_v0, %v460_v1  ;;  %v157_v63 = vld [vmem:[#allocation2 + $0x128] sm:$0xff] }
  0xbb   :  { %v588_v4 = vld [vmem:[#allocation2 + $0xea0] sm:$0xff]  ;;  %3381 = vmatpush2.bf16.msra.mxu1 %v9396_v7  ;;  %v281_v0 = vld [vmem:[#allocation2 + $0x508] sm:$0xff]  ;;  %v8959_v6 = vcombine.high %v153_v62, %v157_v63 }
  0xbc   :  { %v9389_v10 = vcombine.high %v584_v3, %v588_v4  ;;  %v448_v12 = vld [vmem:[#allocation2 + $0xa40] sm:$0xff]  ;;  %3341 = vmatprep.subr.bf16.mxu0 %v9261_v9  ;;  %v9388_v19 = vcombine.low %v584_v3, %v588_v4  ;;  %v285_v1 = vld [vmem:[#allocation2 + $0x528] sm:$0xff]  ;;  %v8966_v3 = vcombine.low %v161_v54, %v165_v55  ;;  %v9094_v4 = vcombine.low %v289_v56, %v293_v57 }
  0xbd   :  { %v452_v13 = vld [vmem:[#allocation2 + $0xa60] sm:$0xff]  ;;  %3342 = vmatpush2.bf16.msra.mxu0 %v9260_v18  ;;  %v9087_v7 = vcombine.high %v281_v0, %v285_v1  ;;  %v145_v9 = vld [vmem:[#allocation2 + $0xc8] sm:$0xff] }
  0xbe   :  { %v576_v15 = vld [vmem:[#allocation2 + $0xe40] sm:$0xff]  ;;  %v9253_v20 = vcombine.high %v448_v12, %v452_v13  ;;  %3382 = vmatprep.subr.bf16.mxu1 %v9389_v10  ;;  %v9252_v34 = vcombine.low %v448_v12, %v452_v13  ;;  %v149_v10 = vld [vmem:[#allocation2 + $0xe8] sm:$0xff] }
  0xbf   :  { %v580_v16 = vld [vmem:[#allocation2 + $0xe60] sm:$0xff]  ;;  %3383 = vmatpush2.bf16.msra.mxu1 %v9388_v19  ;;  %v273_v12 = vld [vmem:[#allocation2 + $0x4c8] sm:$0xff]  ;;  %v8951_v18 = vcombine.high %v145_v9, %v149_v10 }
  0xc0   :  { %v9381_v21 = vcombine.high %v576_v15, %v580_v16  ;;  %v440_v22 = vld [vmem:[#allocation2 + $0xa00] sm:$0xff]  ;;  %3343 = vmatprep.subr.bf16.mxu0 %v9253_v20  ;;  %v9380_v35 = vcombine.low %v576_v15, %v580_v16  ;;  %v277_v13 = vld [vmem:[#allocation2 + $0x4e8] sm:$0xff]  ;;  %v8958_v15 = vcombine.low %v153_v62, %v157_v63  ;;  %v9086_v16 = vcombine.low %v281_v0, %v285_v1 }
  0xc1   :  { %v444_v23 = vld [vmem:[#allocation2 + $0xa20] sm:$0xff]  ;;  %3344 = vmatpush2.bf16.msra.mxu0 %v9252_v34  ;;  %v9079_v19 = vcombine.high %v273_v12, %v277_v13  ;;  %v137_v20 = vld [vmem:[#allocation2 + $0x88] sm:$0xff] }
  0xc2   :  { %v568_v27 = vld [vmem:[#allocation2 + $0xe00] sm:$0xff]  ;;  %v9245_v36 = vcombine.high %v440_v22, %v444_v23  ;;  %3384 = vmatprep.subr.bf16.mxu1 %v9381_v21  ;;  %v9244_v42 = vcombine.low %v440_v22, %v444_v23  ;;  %v141_v21 = vld [vmem:[#allocation2 + $0xa8] sm:$0xff] }
  0xc3   :  { %v572_v28 = vld [vmem:[#allocation2 + $0xe20] sm:$0xff]  ;;  %3385 = vmatpush2.bf16.msra.mxu1 %v9380_v35  ;;  %v265_v22 = vld [vmem:[#allocation2 + $0x488] sm:$0xff]  ;;  %v8943_v34 = vcombine.high %v137_v20, %v141_v21  ;;  %v8942_v40 = vcombine.low %v137_v20, %v141_v21 }
  0xc4   :  { %v9373_v37 = vcombine.high %v568_v27, %v572_v28  ;;  %3345 = vmatprep.subr.bf16.mxu0 %v9245_v36  ;;  %v9372_v43 = vcombine.low %v568_v27, %v572_v28  ;;  %v269_v23 = vld [vmem:[#allocation2 + $0x4a8] sm:$0xff]  ;;  %v8950_v27 = vcombine.low %v145_v9, %v149_v10  ;;  %v9078_v28 = vcombine.low %v273_v12, %v277_v13 }
  0xc5   :  { %3346 = vmatpush2.bf16.msra.mxu0 %v9244_v42  ;;  %v9071_v35 = vcombine.high %v265_v22, %v269_v23  ;;  %v129_v36 = vld [vmem:[#allocation2 + $0x48] sm:$0xff]  ;;  %v9070_v41 = vcombine.low %v265_v22, %v269_v23 }
  0xc6   :  { %3386 = vmatprep.subr.bf16.mxu1 %v9373_v37  ;;  %3397 = vmatprep.subr.bf16.mxu0 %v8983_v44  ;;  %v133_v37 = vld [vmem:[#allocation2 + $0x68] sm:$0xff] }
  0xc7   :  { %3387 = vmatpush2.bf16.msra.mxu1 %v9372_v43  ;;  %v257_v38 = vld [vmem:[#allocation2 + $0x448] sm:$0xff]  ;;  %v8935_v42 = vcombine.high %v129_v36, %v133_v37  ;;  %v8934_v48 = vcombine.low %v129_v36, %v133_v37 }
  0xc8   :  { %3438 = vmatprep.subr.bf16.mxu1 %v9111_v45  ;;  %3348 = vmatmul.mubr.bf16.vlgmr.msra.gmra.mxu0 %v10436_v30  ;;  %v261_v39 = vld [vmem:[#allocation2 + $0x468] sm:$0xff] }
  0xc9   :  { %3398 = vmatpush1.bf16.msra.mxu0 %v8982_v50  ;;  %3429 = vmatprep.mubr.bf16.mxu0 %v10430_v25  ;;  %v9063_v43 = vcombine.high %v257_v38, %v261_v39  ;;  %v121_v44 = vld [vmem:[#allocation2 + $0x8] sm:$0xff]  ;;  %v9062_v49 = vcombine.low %v257_v38, %v261_v39 }
  0xca   :  { %3389 = vmatmul.mubr.bf16.vlgmr.msra.gmra.mxu1 %v10440_v32  ;;  %3399 = vmatprep.subr.bf16.mxu0 %v8975_v52  ;;  %v125_v45 = vld [vmem:[#allocation2 + $0x28] sm:$0xff] }
  0xcb   :  { %3439 = vmatpush1.bf16.msra.mxu1 %v9110_v51  ;;  %3470 = vmatprep.mubr.bf16.mxu1 %v10434_v29  ;;  %v249_v46 = vld [vmem:[#allocation2 + $0x408] sm:$0xff]  ;;  %v8927_v50 = vcombine.high %v121_v44, %v125_v45  ;;  %v8926_v56 = vcombine.low %v121_v44, %v125_v45 }
  0xcc   :  { %3440 = vmatprep.subr.bf16.mxu1 %v9103_v53  ;;  %v253_v47 = vld [vmem:[#allocation2 + $0x428] sm:$0xff] }
  0xcd   :  { %3400 = vmatpush1.bf16.msra.mxu0 %v8974_v58  ;;  %v9055_v51 = vcombine.high %v249_v46, %v253_v47  ;;  %v241_v52 = vld [vmem:[#allocation2 + $0x3c8] sm:$0xff]  ;;  %v9054_v57 = vcombine.low %v249_v46, %v253_v47 }
  0xce   :  { %3401 = vmatprep.subr.bf16.mxu0 %v8967_v60  ;;  %v245_v53 = vld [vmem:[#allocation2 + $0x3e8] sm:$0xff] }
  0xcf   :  { %3441 = vmatpush1.bf16.msra.mxu1 %v9102_v59  ;;  %v369_v54 = vld [vmem:[#allocation2 + $0x7c8] sm:$0xff]  ;;  %v9047_v58 = vcombine.high %v241_v52, %v245_v53  ;;  %v9046_v0 = vcombine.low %v241_v52, %v245_v53 }
  0xd0   :  { %3442 = vmatprep.subr.bf16.mxu1 %v9095_v61  ;;  %v373_v55 = vld [vmem:[#allocation2 + $0x7e8] sm:$0xff] }
  0xd1   :  { %3402 = vmatpush1.bf16.msra.mxu0 %v8966_v3  ;;  %v9175_v59 = vcombine.high %v369_v54, %v373_v55  ;;  %v233_v60 = vld [vmem:[#allocation2 + $0x388] sm:$0xff]  ;;  %v9174_v1 = vcombine.low %v369_v54, %v373_v55 }
  0xd2   :  { %3403 = vmatprep.subr.bf16.mxu0 %v8959_v6  ;;  %v237_v61 = vld [vmem:[#allocation2 + $0x3a8] sm:$0xff] }
  0xd3   :  { %3443 = vmatpush1.bf16.msra.mxu1 %v9094_v4  ;;  %v361_v62 = vld [vmem:[#allocation2 + $0x788] sm:$0xff]  ;;  %v9039_v3 = vcombine.high %v233_v60, %v237_v61  ;;  %v9038_v12 = vcombine.low %v233_v60, %v237_v61 }
  0xd4   :  { %3444 = vmatprep.subr.bf16.mxu1 %v9087_v7  ;;  %v365_v63 = vld [vmem:[#allocation2 + $0x7a8] sm:$0xff] }
  0xd5   :  { %3404 = vmatpush1.bf16.msra.mxu0 %v8958_v15  ;;  %v9167_v4 = vcombine.high %v361_v62, %v365_v63  ;;  %v225_v6 = vld [vmem:[#allocation2 + $0x348] sm:$0xff]  ;;  %v9166_v13 = vcombine.low %v361_v62, %v365_v63 }
  0xd6   :  { %3405 = vmatprep.subr.bf16.mxu0 %v8951_v18  ;;  %v229_v7 = vld [vmem:[#allocation2 + $0x368] sm:$0xff] }
  0xd7   :  { %3445 = vmatpush1.bf16.msra.mxu1 %v9086_v16  ;;  %v353_v9 = vld [vmem:[#allocation2 + $0x748] sm:$0xff]  ;;  %v9031_v15 = vcombine.high %v225_v6, %v229_v7  ;;  %v9030_v22 = vcombine.low %v225_v6, %v229_v7 }
  0xd8   :  { %3446 = vmatprep.subr.bf16.mxu1 %v9079_v19  ;;  %v357_v10 = vld [vmem:[#allocation2 + $0x768] sm:$0xff] }
  0xd9   :  { %3406 = vmatpush1.bf16.msra.mxu0 %v8950_v27  ;;  %v9159_v16 = vcombine.high %v353_v9, %v357_v10  ;;  %v217_v18 = vld [vmem:[#allocation2 + $0x308] sm:$0xff]  ;;  %v9158_v23 = vcombine.low %v353_v9, %v357_v10 }
  0xda   :  { %3407 = vmatprep.subr.bf16.mxu0 %v8943_v34  ;;  %v221_v19 = vld [vmem:[#allocation2 + $0x328] sm:$0xff] }
  0xdb   :  { %3447 = vmatpush1.bf16.msra.mxu1 %v9078_v28  ;;  %v345_v20 = vld [vmem:[#allocation2 + $0x708] sm:$0xff]  ;;  %v9023_v27 = vcombine.high %v217_v18, %v221_v19  ;;  %v9022_v38 = vcombine.low %v217_v18, %v221_v19 }
  0xdc   :  { %3448 = vmatprep.subr.bf16.mxu1 %v9071_v35  ;;  %v349_v21 = vld [vmem:[#allocation2 + $0x728] sm:$0xff] }
  0xdd   :  { %3408 = vmatpush1.bf16.msra.mxu0 %v8942_v40  ;;  %v9151_v28 = vcombine.high %v345_v20, %v349_v21  ;;  %v209_v34 = vld [vmem:[#allocation2 + $0x2c8] sm:$0xff]  ;;  %v9150_v39 = vcombine.low %v345_v20, %v349_v21 }
  0xde   :  { %3409 = vmatprep.subr.bf16.mxu0 %v8935_v42  ;;  %v213_v35 = vld [vmem:[#allocation2 + $0x2e8] sm:$0xff] }
  0xdf   :  { %3449 = vmatpush1.bf16.msra.mxu1 %v9070_v41  ;;  %v337_v36 = vld [vmem:[#allocation2 + $0x6c8] sm:$0xff]  ;;  %v9015_v40 = vcombine.high %v209_v34, %v213_v35  ;;  %v9014_v46 = vcombine.low %v209_v34, %v213_v35 }
  0xe0   :  { %3450 = vmatprep.subr.bf16.mxu1 %v9063_v43  ;;  %v341_v37 = vld [vmem:[#allocation2 + $0x6e8] sm:$0xff] }
  0xe1   :  { %3410 = vmatpush1.bf16.msra.mxu0 %v8934_v48  ;;  %v9143_v41 = vcombine.high %v337_v36, %v341_v37  ;;  %v201_v42 = vld [vmem:[#allocation2 + $0x288] sm:$0xff]  ;;  %v9142_v47 = vcombine.low %v337_v36, %v341_v37 }
  0xe2   :  { %3411 = vmatprep.subr.bf16.mxu0 %v8927_v50  ;;  %v205_v43 = vld [vmem:[#allocation2 + $0x2a8] sm:$0xff] }
  0xe3   :  { %3451 = vmatpush1.bf16.msra.mxu1 %v9062_v49  ;;  %v329_v44 = vld [vmem:[#allocation2 + $0x688] sm:$0xff]  ;;  %v9007_v48 = vcombine.high %v201_v42, %v205_v43  ;;  %v9006_v54 = vcombine.low %v201_v42, %v205_v43 }
  0xe4   :  { %3452 = vmatprep.subr.bf16.mxu1 %v9055_v51  ;;  %v333_v45 = vld [vmem:[#allocation2 + $0x6a8] sm:$0xff] }
  0xe5   :  { %3412 = vmatpush1.bf16.msra.mxu0 %v8926_v56  ;;  %v9135_v49 = vcombine.high %v329_v44, %v333_v45  ;;  %v193_v50 = vld [vmem:[#allocation2 + $0x248] sm:$0xff]  ;;  %v9134_v55 = vcombine.low %v329_v44, %v333_v45 }
  0xe6   :  { %3413 = vmatprep.subr.bf16.mxu0 %v9047_v58  ;;  %v197_v51 = vld [vmem:[#allocation2 + $0x268] sm:$0xff] }
  0xe7   :  { %3453 = vmatpush1.bf16.msra.mxu1 %v9054_v57  ;;  %v321_v52 = vld [vmem:[#allocation2 + $0x648] sm:$0xff]  ;;  %v8999_v56 = vcombine.high %v193_v50, %v197_v51  ;;  %v8998_v62 = vcombine.low %v193_v50, %v197_v51 }
  0xe8   :  { %3454 = vmatprep.subr.bf16.mxu1 %v9175_v59  ;;  %v325_v53 = vld [vmem:[#allocation2 + $0x668] sm:$0xff] }
  0xe9   :  { %3414 = vmatpush2.bf16.msra.mxu0 %v9046_v0  ;;  %v9127_v57 = vcombine.high %v321_v52, %v325_v53  ;;  %v185_v58 = vld [vmem:[#allocation2 + $0x208] sm:$0xff]  ;;  %v9126_v63 = vcombine.low %v321_v52, %v325_v53 }
  0xea   :  { %3415 = vmatprep.subr.bf16.mxu0 %v9039_v3  ;;  %v189_v59 = vld [vmem:[#allocation2 + $0x228] sm:$0xff] }
  0xeb   :  { %3455 = vmatpush2.bf16.msra.mxu1 %v9174_v1  ;;  %v313_v60 = vld [vmem:[#allocation2 + $0x608] sm:$0xff]  ;;  %v8991_v0 = vcombine.high %v185_v58, %v189_v59  ;;  %v8990_v9 = vcombine.low %v185_v58, %v189_v59 }
  0xec   :  { %3456 = vmatprep.subr.bf16.mxu1 %v9167_v4  ;;  %v317_v61 = vld [vmem:[#allocation2 + $0x628] sm:$0xff] }
  0xed   :  { %3416 = vmatpush2.bf16.msra.mxu0 %v9038_v12  ;;  %v9119_v1 = vcombine.high %v313_v60, %v317_v61  ;;  %v433_v3 = vld [vmem:[#allocation2 + $0x9c8] sm:$0xff]  ;;  %v9118_v10 = vcombine.low %v313_v60, %v317_v61 }
  0xee   :  { %3417 = vmatprep.subr.bf16.mxu0 %v9031_v15  ;;  %v437_v4 = vld [vmem:[#allocation2 + $0x9e8] sm:$0xff] }
  0xef   :  { %3457 = vmatpush2.bf16.msra.mxu1 %v9166_v13  ;;  %v561_v6 = vld [vmem:[#allocation2 + $0xdc8] sm:$0xff]  ;;  %v9239_v12 = vcombine.high %v433_v3, %v437_v4  ;;  %v9238_v20 = vcombine.low %v433_v3, %v437_v4 }
  0xf0   :  { %3458 = vmatprep.subr.bf16.mxu1 %v9159_v16  ;;  %v565_v7 = vld [vmem:[#allocation2 + $0xde8] sm:$0xff] }
  0xf1   :  { %3418 = vmatpush2.bf16.msra.mxu0 %v9030_v22  ;;  %v9367_v13 = vcombine.high %v561_v6, %v565_v7  ;;  %v425_v15 = vld [vmem:[#allocation2 + $0x988] sm:$0xff]  ;;  %v9366_v21 = vcombine.low %v561_v6, %v565_v7 }
  0xf2   :  { %3419 = vmatprep.subr.bf16.mxu0 %v9023_v27  ;;  %v429_v16 = vld [vmem:[#allocation2 + $0x9a8] sm:$0xff] }
  0xf3   :  { %3459 = vmatpush2.bf16.msra.mxu1 %v9158_v23  ;;  %v553_v18 = vld [vmem:[#allocation2 + $0xd88] sm:$0xff]  ;;  %v9231_v22 = vcombine.high %v425_v15, %v429_v16  ;;  %v9230_v36 = vcombine.low %v425_v15, %v429_v16 }
  0xf4   :  { %3460 = vmatprep.subr.bf16.mxu1 %v9151_v28  ;;  %v557_v19 = vld [vmem:[#allocation2 + $0xda8] sm:$0xff] }
  0xf5   :  { %3420 = vmatpush2.bf16.msra.mxu0 %v9022_v38  ;;  %v9359_v23 = vcombine.high %v553_v18, %v557_v19  ;;  %v417_v27 = vld [vmem:[#allocation2 + $0x948] sm:$0xff]  ;;  %v9358_v37 = vcombine.low %v553_v18, %v557_v19 }
  0xf6   :  { %3421 = vmatprep.subr.bf16.mxu0 %v9015_v40  ;;  %v421_v28 = vld [vmem:[#allocation2 + $0x968] sm:$0xff] }
  0xf7   :  { %3461 = vmatpush2.bf16.msra.mxu1 %v9150_v39  ;;  %v545_v34 = vld [vmem:[#allocation2 + $0xd48] sm:$0xff]  ;;  %v9223_v38 = vcombine.high %v417_v27, %v421_v28  ;;  %v9222_v44 = vcombine.low %v417_v27, %v421_v28 }
  0xf8   :  { %3462 = vmatprep.subr.bf16.mxu1 %v9143_v41  ;;  %v549_v35 = vld [vmem:[#allocation2 + $0xd68] sm:$0xff] }
  0xf9   :  { %3422 = vmatpush2.bf16.msra.mxu0 %v9014_v46  ;;  %v9351_v39 = vcombine.high %v545_v34, %v549_v35  ;;  %v409_v40 = vld [vmem:[#allocation2 + $0x908] sm:$0xff]  ;;  %v9350_v45 = vcombine.low %v545_v34, %v549_v35 }
  0xfa   :  { %3423 = vmatprep.subr.bf16.mxu0 %v9007_v48  ;;  %v413_v41 = vld [vmem:[#allocation2 + $0x928] sm:$0xff] }
  0xfb   :  { %3463 = vmatpush2.bf16.msra.mxu1 %v9142_v47  ;;  %v537_v42 = vld [vmem:[#allocation2 + $0xd08] sm:$0xff]  ;;  %v9215_v46 = vcombine.high %v409_v40, %v413_v41  ;;  %v9214_v52 = vcombine.low %v409_v40, %v413_v41 }
  0xfc   :  { %3464 = vmatprep.subr.bf16.mxu1 %v9135_v49  ;;  %v541_v43 = vld [vmem:[#allocation2 + $0xd28] sm:$0xff] }
  0xfd   :  { %3424 = vmatpush2.bf16.msra.mxu0 %v9006_v54  ;;  %v9343_v47 = vcombine.high %v537_v42, %v541_v43  ;;  %v401_v48 = vld [vmem:[#allocation2 + $0x8c8] sm:$0xff]  ;;  %v9342_v53 = vcombine.low %v537_v42, %v541_v43 }
  0xfe   :  { %3425 = vmatprep.subr.bf16.mxu0 %v8999_v56  ;;  %v405_v49 = vld [vmem:[#allocation2 + $0x8e8] sm:$0xff] }
  0xff   :  { %3465 = vmatpush2.bf16.msra.mxu1 %v9134_v55  ;;  %v529_v50 = vld [vmem:[#allocation2 + $0xcc8] sm:$0xff]  ;;  %v9207_v54 = vcombine.high %v401_v48, %v405_v49  ;;  %v9206_v60 = vcombine.low %v401_v48, %v405_v49 }
 0x100   :  { %3466 = vmatprep.subr.bf16.mxu1 %v9127_v57  ;;  %v533_v51 = vld [vmem:[#allocation2 + $0xce8] sm:$0xff] }
 0x101   :  { %3426 = vmatpush2.bf16.msra.mxu0 %v8998_v62  ;;  %v9335_v55 = vcombine.high %v529_v50, %v533_v51  ;;  %v393_v56 = vld [vmem:[#allocation2 + $0x888] sm:$0xff]  ;;  %v9334_v61 = vcombine.low %v529_v50, %v533_v51 }
 0x102   :  { %3427 = vmatprep.subr.bf16.mxu0 %v8991_v0  ;;  %v397_v57 = vld [vmem:[#allocation2 + $0x8a8] sm:$0xff] }
 0x103   :  { %3467 = vmatpush2.bf16.msra.mxu1 %v9126_v63  ;;  %v521_v58 = vld [vmem:[#allocation2 + $0xc88] sm:$0xff]  ;;  %v9199_v62 = vcombine.high %v393_v56, %v397_v57  ;;  %v9198_v6 = vcombine.low %v393_v56, %v397_v57 }
 0x104   :  { %3468 = vmatprep.subr.bf16.mxu1 %v9119_v1  ;;  %v525_v59 = vld [vmem:[#allocation2 + $0xca8] sm:$0xff] }
 0x105   :  { %3428 = vmatpush2.bf16.msra.mxu0 %v8990_v9  ;;  %v9327_v63 = vcombine.high %v521_v58, %v525_v59  ;;  %v385_v0 = vld [vmem:[#allocation2 + $0x848] sm:$0xff]  ;;  %v9326_v7 = vcombine.low %v521_v58, %v525_v59 }
 0x106   :  { %3479 = vmatprep.subr.bf16.mxu0 %v9239_v12  ;;  %v389_v1 = vld [vmem:[#allocation2 + $0x868] sm:$0xff] }
 0x107   :  { %3469 = vmatpush2.bf16.msra.mxu1 %v9118_v10  ;;  %v513_v3 = vld [vmem:[#allocation2 + $0xc48] sm:$0xff]  ;;  %v9191_v9 = vcombine.high %v385_v0, %v389_v1  ;;  %v9190_v18 = vcombine.low %v385_v0, %v389_v1 }
 0x108   :  { %3520 = vmatprep.subr.bf16.mxu1 %v9367_v13  ;;  %3430 = vmatmul.mubr.bf16.vlgmr.msra.gmra.mxu0 %v10428_v24  ;;  %v517_v4 = vld [vmem:[#allocation2 + $0xc68] sm:$0xff] }
 0x109   :  { %3480 = vmatpush1.bf16.msra.mxu0 %v9238_v20  ;;  %3511 = vmatprep.mubr.bf16.mxu0 %v10438_v31  ;;  %v9319_v10 = vcombine.high %v513_v3, %v517_v4  ;;  %v377_v12 = vld [vmem:[#allocation2 + $0x808] sm:$0xff]  ;;  %v9318_v19 = vcombine.low %v513_v3, %v517_v4 }
 0x10a   :  { %3471 = vmatmul.mubr.bf16.vlgmr.msra.gmra.mxu1 %v10432_v26  ;;  %3481 = vmatprep.subr.bf16.mxu0 %v9231_v22  ;;  %v381_v13 = vld [vmem:[#allocation2 + $0x828] sm:$0xff] }
 0x10b   :  { %3521 = vmatpush1.bf16.msra.mxu1 %v9366_v21  ;;  %3552 = vmatprep.mubr.bf16.mxu1 %v10442_v33  ;;  %v505_v15 = vld [vmem:[#allocation2 + $0xc08] sm:$0xff]  ;;  %v9183_v20 = vcombine.high %v377_v12, %v381_v13  ;;  %v9182_v34 = vcombine.low %v377_v12, %v381_v13 }
 0x10c   :  { %3522 = vmatprep.subr.bf16.mxu1 %v9359_v23  ;;  %v509_v16 = vld [vmem:[#allocation2 + $0xc28] sm:$0xff] }
 0x10d   :  { %3482 = vmatpush1.bf16.msra.mxu0 %v9230_v36  ;;  %v9311_v21 = vcombine.high %v505_v15, %v509_v16  ;;  %v497_v22 = vld [vmem:[#allocation2 + $0xbc8] sm:$0xff]  ;;  %v9310_v35 = vcombine.low %v505_v15, %v509_v16 }
 0x10e   :  { %3483 = vmatprep.subr.bf16.mxu0 %v9223_v38  ;;  %v501_v23 = vld [vmem:[#allocation2 + $0xbe8] sm:$0xff] }
 0x10f   :  { %3523 = vmatpush1.bf16.msra.mxu1 %v9358_v37  ;;  %v625_v27 = vld [vmem:[#allocation2 + $0xfc8] sm:$0xff]  ;;  %v9303_v36 = vcombine.high %v497_v22, %v501_v23  ;;  %v9302_v42 = vcombine.low %v497_v22, %v501_v23 }
 0x110   :  { %3524 = vmatprep.subr.bf16.mxu1 %v9351_v39  ;;  %v629_v28 = vld [vmem:[#allocation2 + $0xfe8] sm:$0xff] }
 0x111   :  { %3484 = vmatpush1.bf16.msra.mxu0 %v9222_v44  ;;  %v9431_v37 = vcombine.high %v625_v27, %v629_v28  ;;  %v489_v38 = vld [vmem:[#allocation2 + $0xb88] sm:$0xff]  ;;  %v9430_v43 = vcombine.low %v625_v27, %v629_v28  ;;  %v633_v28 = vlaneseq }
 0x112   :  { %3485 = vmatprep.subr.bf16.mxu0 %v9215_v46  ;;  %v493_v39 = vld [vmem:[#allocation2 + $0xba8] sm:$0xff] }
 0x113   :  { %3525 = vmatpush1.bf16.msra.mxu1 %v9350_v45  ;;  %v617_v40 = vld [vmem:[#allocation2 + $0xf88] sm:$0xff]  ;;  %v9295_v44 = vcombine.high %v489_v38, %v493_v39  ;;  %v9294_v50 = vcombine.low %v489_v38, %v493_v39 }
 0x114   :  { %3526 = vmatprep.subr.bf16.mxu1 %v9343_v47  ;;  %v621_v41 = vld [vmem:[#allocation2 + $0xfa8] sm:$0xff] }
 0x115   :  { %3486 = vmatpush1.bf16.msra.mxu0 %v9214_v52  ;;  %v9423_v45 = vcombine.high %v617_v40, %v621_v41  ;;  %v481_v46 = vld [vmem:[#allocation2 + $0xb48] sm:$0xff]  ;;  %v9422_v51 = vcombine.low %v617_v40, %v621_v41 }
 0x116   :  { %3487 = vmatprep.subr.bf16.mxu0 %v9207_v54  ;;  %v485_v47 = vld [vmem:[#allocation2 + $0xb68] sm:$0xff] }
 0x117   :  { %3527 = vmatpush1.bf16.msra.mxu1 %v9342_v53  ;;  %v609_v48 = vld [vmem:[#allocation2 + $0xf48] sm:$0xff]  ;;  %v9287_v52 = vcombine.high %v481_v46, %v485_v47  ;;  %v9286_v58 = vcombine.low %v481_v46, %v485_v47  ;;  %v178_v46 = vld [vmem:[#allocation2 + $0x1d0] sm:$0xff] }
 0x118   :  { %3528 = vmatprep.subr.bf16.mxu1 %v9335_v55  ;;  %v613_v49 = vld [vmem:[#allocation2 + $0xf68] sm:$0xff]  ;;  %v182_v47 = vld [vmem:[#allocation2 + $0x1f0] sm:$0xff] }
 0x119   :  { %3488 = vmatpush1.bf16.msra.mxu0 %v9206_v60  ;;  %v9415_v53 = vcombine.high %v609_v48, %v613_v49  ;;  %v473_v54 = vld [vmem:[#allocation2 + $0xb08] sm:$0xff]  ;;  %v9414_v59 = vcombine.low %v609_v48, %v613_v49  ;;  %v306_v48 = vld [vmem:[#allocation2 + $0x5d0] sm:$0xff] }
 0x11a   :  { %3489 = vmatprep.subr.bf16.mxu0 %v9199_v62  ;;  %v477_v55 = vld [vmem:[#allocation2 + $0xb28] sm:$0xff]  ;;  %v310_v49 = vld [vmem:[#allocation2 + $0x5f0] sm:$0xff] }
 0x11b   :  { %3529 = vmatpush1.bf16.msra.mxu1 %v9334_v61  ;;  %v601_v56 = vld [vmem:[#allocation2 + $0xf08] sm:$0xff]  ;;  %v9279_v60 = vcombine.high %v473_v54, %v477_v55  ;;  %v9278_v3 = vcombine.low %v473_v54, %v477_v55  ;;  %v9113_v54 = vcombine.high %v306_v48, %v310_v49 }
 0x11c   :  { %3530 = vmatprep.subr.bf16.mxu1 %v9327_v63  ;;  %v605_v57 = vld [vmem:[#allocation2 + $0xf28] sm:$0xff] }
 0x11d   :  { %3490 = vmatpush1.bf16.msra.mxu0 %v9198_v6  ;;  %v9407_v61 = vcombine.high %v601_v56, %v605_v57  ;;  %v465_v62 = vld [vmem:[#allocation2 + $0xac8] sm:$0xff]  ;;  %v9406_v4 = vcombine.low %v601_v56, %v605_v57  ;;  %v170_v56 = vld [vmem:[#allocation2 + $0x190] sm:$0xff] }
 0x11e   :  { %3491 = vmatprep.subr.bf16.mxu0 %v9191_v9  ;;  %v469_v63 = vld [vmem:[#allocation2 + $0xae8] sm:$0xff]  ;;  %v174_v57 = vld [vmem:[#allocation2 + $0x1b0] sm:$0xff] }
 0x11f   :  { %3531 = vmatpush1.bf16.msra.mxu1 %v9326_v7  ;;  %v593_v0 = vld [vmem:[#allocation2 + $0xec8] sm:$0xff]  ;;  %v9271_v6 = vcombine.high %v465_v62, %v469_v63  ;;  %v9270_v15 = vcombine.low %v465_v62, %v469_v63  ;;  %v9112_v62 = vcombine.low %v306_v48, %v310_v49  ;;  %v8977_v63 = vcombine.high %v170_v56, %v174_v57  ;;  %v278_v48 = vld [vmem:[#allocation2 + $0x4f0] sm:$0xff] }
 0x120   :  { %3532 = vmatprep.subr.bf16.mxu1 %v9319_v10  ;;  %v597_v1 = vld [vmem:[#allocation2 + $0xee8] sm:$0xff] }
 0x121   :  { %3492 = vmatpush1.bf16.msra.mxu0 %v9190_v18  ;;  %v9399_v7 = vcombine.high %v593_v0, %v597_v1  ;;  %v457_v9 = vld [vmem:[#allocation2 + $0xa88] sm:$0xff]  ;;  %v9398_v16 = vcombine.low %v593_v0, %v597_v1 }
 0x122   :  { %3493 = vmatprep.subr.bf16.mxu0 %v9183_v20  ;;  %v461_v10 = vld [vmem:[#allocation2 + $0xaa8] sm:$0xff] }
 0x123   :  { %3533 = vmatpush1.bf16.msra.mxu1 %v9318_v19  ;;  %v585_v12 = vld [vmem:[#allocation2 + $0xe88] sm:$0xff]  ;;  %v9263_v18 = vcombine.high %v457_v9, %v461_v10  ;;  %v9262_v27 = vcombine.low %v457_v9, %v461_v10  ;;  %v294_v9 = vld [vmem:[#allocation2 + $0x570] sm:$0xff] }
 0x124   :  { %3534 = vmatprep.subr.bf16.mxu1 %v9311_v21  ;;  %v589_v13 = vld [vmem:[#allocation2 + $0xea8] sm:$0xff] }
 0x125   :  { %3494 = vmatpush1.bf16.msra.mxu0 %v9182_v34  ;;  %v9391_v19 = vcombine.high %v585_v12, %v589_v13  ;;  %v449_v20 = vld [vmem:[#allocation2 + $0xa48] sm:$0xff]  ;;  %v9390_v34 = vcombine.low %v585_v12, %v589_v13  ;;  %v8976_v13 = vcombine.low %v170_v56, %v174_v57  ;;  %v142_v56 = vld [vmem:[#allocation2 + $0xb0] sm:$0xff] }
 0x126   :  { %3495 = vmatprep.subr.bf16.mxu0 %v9303_v36  ;;  %v453_v21 = vld [vmem:[#allocation2 + $0xa68] sm:$0xff]  ;;  %v266_v57 = vld [vmem:[#allocation2 + $0x490] sm:$0xff] }
 0x127   :  { %3535 = vmatpush1.bf16.msra.mxu1 %v9310_v35  ;;  %v577_v22 = vld [vmem:[#allocation2 + $0xe48] sm:$0xff]  ;;  %v9255_v35 = vcombine.high %v449_v20, %v453_v21  ;;  %v9254_v41 = vcombine.low %v449_v20, %v453_v21 }
 0x128   :  { %3536 = vmatprep.subr.bf16.mxu1 %v9431_v37  ;;  %v581_v23 = vld [vmem:[#allocation2 + $0xe68] sm:$0xff] }
 0x129   :  { %3496 = vmatpush2.bf16.msra.mxu0 %v9302_v42  ;;  %v9383_v36 = vcombine.high %v577_v22, %v581_v23  ;;  %v441_v37 = vld [vmem:[#allocation2 + $0xa08] sm:$0xff]  ;;  %v10458_v42 = vshrl.u32 %v633_v28, 7 }
 0x12a   :  { %3497 = vmatprep.subr.bf16.mxu0 %v9295_v44  ;;  %v445_v38 = vld [vmem:[#allocation2 + $0xa28] sm:$0xff] }
 0x12b   :  { %3537 = vmatpush2.bf16.msra.mxu1 %v9430_v43  ;;  %v569_v39 = vld [vmem:[#allocation2 + $0xe08] sm:$0xff]  ;;  %v9382_v43 = vcombine.low %v577_v22, %v581_v23  ;;  %v9247_v44 = vcombine.high %v441_v37, %v445_v38  ;;  %v10464_v55 = vsub.s32 1, %v10458_v42  ;;  %v154_v23 = vld [vmem:[#allocation2 + $0x110] sm:$0xff] }
 0x12c   :  { %3538 = vmatprep.subr.bf16.mxu1 %v9423_v45  ;;  %v573_v40 = vld [vmem:[#allocation2 + $0xe28] sm:$0xff] }
 0x12d   :  { %3498 = vmatpush2.bf16.msra.mxu0 %v9294_v50  ;;  %v9375_v45 = vcombine.high %v569_v39, %v573_v40  ;;  %v9246_v50 = vcombine.low %v441_v37, %v445_v38  ;;  %v640_v0 = vrot.slane %v10416_v2, %v10464_v55 }
 0x12e   :  { %3499 = vmatprep.subr.bf16.mxu0 %v9287_v52  ;;  %v9374_v52 = vcombine.low %v569_v39, %v573_v40 }
 0x12f   :  { %3539 = vmatpush2.bf16.msra.mxu1 %v9422_v51  ;;  %v10461_v51 = vsub.s32 0, %v10458_v42 }
 0x130   :  { %3540 = vmatprep.subr.bf16.mxu1 %v9415_v53  ;;  %v8985_v53 = vcombine.high %v178_v46, %v182_v47 }
 0x131   :  { %3500 = vmatpush2.bf16.msra.mxu0 %v9286_v58  ;;  %v298_v58 = vld [vmem:[#allocation2 + $0x590] sm:$0xff] }
 0x132   :  { %3501 = vmatprep.subr.bf16.mxu0 %v9279_v60  ;;  %v636_v60 = vrot.slane %v10416_v2, %v10461_v51 }
 0x133   :  { %3541 = vmatpush2.bf16.msra.mxu1 %v9414_v59  ;;  %v302_v59 = vld [vmem:[#allocation2 + $0x5b0] sm:$0xff] }
 0x134   :  { %3542 = vmatprep.subr.bf16.mxu1 %v9407_v61  ;;  %v8984_v61 = vcombine.low %v178_v46, %v182_v47  ;;  %v9105_v1 = vcombine.high %v298_v58, %v302_v59  ;;  %v150_v46 = vld [vmem:[#allocation2 + $0xf0] sm:$0xff] }
 0x135   :  { %3502 = vmatpush2.bf16.msra.mxu0 %v9278_v3  ;;  %v162_v3 = vld [vmem:[#allocation2 + $0x150] sm:$0xff] }
 0x136   :  { %3503 = vmatprep.subr.bf16.mxu0 %v9271_v6  ;;  %v274_v47 = vld [vmem:[#allocation2 + $0x4d0] sm:$0xff] }
 0x137   :  { %3543 = vmatpush2.bf16.msra.mxu1 %v9406_v4  ;;  %v166_v4 = vld [vmem:[#allocation2 + $0x170] sm:$0xff] }
 0x138   :  { %3544 = vmatprep.subr.bf16.mxu1 %v9399_v7  ;;  %v290_v7 = vld [vmem:[#allocation2 + $0x550] sm:$0xff]  ;;  %v8968_v38 = vcombine.low %v162_v3, %v166_v4 }
 0x139   :  { %3504 = vmatpush2.bf16.msra.mxu0 %v9270_v15  ;;  %v9097_v22 = vcombine.high %v290_v7, %v294_v9  ;;  %v9096_v40 = vcombine.low %v290_v7, %v294_v9 }
 0x13a   :  { %3505 = vmatprep.subr.bf16.mxu0 %v9263_v18  ;;  %v8969_v18 = vcombine.high %v162_v3, %v166_v4  ;;  %v262_v3 = vld [vmem:[#allocation2 + $0x470] sm:$0xff] }
 0x13b   :  { %3545 = vmatpush2.bf16.msra.mxu1 %v9398_v16  ;;  %v9104_v16 = vcombine.low %v298_v58, %v302_v59  ;;  %v270_v58 = vld [vmem:[#allocation2 + $0x4b0] sm:$0xff] }
 0x13c   :  { %3546 = vmatprep.subr.bf16.mxu1 %v9391_v19 }
 0x13d   :  { %3506 = vmatpush2.bf16.msra.mxu0 %v9262_v27  ;;  %v158_v27 = vld [vmem:[#allocation2 + $0x130] sm:$0xff] }
 0x13e   :  { %3507 = vmatprep.subr.bf16.mxu0 %v9255_v35  ;;  %v286_v35 = vld [vmem:[#allocation2 + $0x530] sm:$0xff]  ;;  %v8960_v49 = vcombine.low %v154_v23, %v158_v27 }
 0x13f   :  { %3547 = vmatpush2.bf16.msra.mxu1 %v9390_v34  ;;  %v282_v34 = vld [vmem:[#allocation2 + $0x510] sm:$0xff] }
 0x140   :  { %3548 = vmatprep.subr.bf16.mxu1 %v9383_v36 }
 0x141   :  { %3508 = vmatpush2.bf16.msra.mxu0 %v9254_v41  ;;  %v8961_v41 = vcombine.high %v154_v23, %v158_v27  ;;  %v246_v23 = vld [vmem:[#allocation2 + $0x3f0] sm:$0xff] }
 0x142   :  { %3509 = vmatprep.subr.bf16.mxu0 %v9247_v44  ;;  %v9089_v44 = vcombine.high %v282_v34, %v286_v35  ;;  %v370_v27 = vld [vmem:[#allocation2 + $0x7d0] sm:$0xff] }
 0x143   :  { %3549 = vmatpush2.bf16.msra.mxu1 %v9382_v43 }
 0x144   :  { %3550 = vmatprep.subr.bf16.mxu1 %v9375_v45  ;;  %v146_v45 = vld [vmem:[#allocation2 + $0xd0] sm:$0xff] }
 0x145   :  { %3510 = vmatpush2.bf16.msra.mxu0 %v9246_v50  ;;  %v9088_v50 = vcombine.low %v282_v34, %v286_v35  ;;  %v8952_v59 = vcombine.low %v146_v45, %v150_v46 }
 0x146   :  { %3561 = vmatprep.subr.bf16.mxu0 %v8985_v53  ;;  %v9081_v53 = vcombine.high %v274_v47, %v278_v48 }
 0x147   :  { %3551 = vmatpush2.bf16.msra.mxu1 %v9374_v52  ;;  %v8953_v52 = vcombine.high %v146_v45, %v150_v46 }
 0x148   :  { %3602 = vmatprep.subr.bf16.mxu1 %v9113_v54  ;;  %v3267_v6 = vpop.f32.mrf.mxu0  ;;  %3512 = vmatmul.mubr.bf16.vlgmr.msra.gmra.mxu0 %v10436_v30  ;;  %v138_v54 = vld [vmem:[#allocation2 + $0x90] sm:$0xff] }
 0x149   :  { %v3268_v10 = vadd.f32 %v3267_v6, %v636_v60  ;;  %3562 = vmatpush1.bf16.msra.mxu0 %v8984_v61  ;;  %3593 = vmatprep.mubr.bf16.mxu0 %v10430_v25  ;;  %v9080_v60 = vcombine.low %v274_v47, %v278_v48  ;;  %v8945_v61 = vcombine.high %v138_v54, %v142_v56  ;;  %v226_v48 = vld [vmem:[#allocation2 + $0x350] sm:$0xff] }
 0x14a   :  { %v3308_v12 = vpop.f32.mrf.mxu1  ;;  %3553 = vmatmul.mubr.bf16.vlgmr.msra.gmra.mxu1 %v10440_v32  ;;  %v3269_v15 = vpop.f32.mrf.mxu0  ;;  %3563 = vmatprep.subr.bf16.mxu0 %v8977_v63  ;;  %v130_v63 = vld [vmem:[#allocation2 + $0x50] sm:$0xff]  ;;  %v8944_v4 = vcombine.low %v138_v54, %v142_v56  ;;  %v9072_v6 = vcombine.low %v266_v57, %v270_v58 }
 0x14b   :  { %3603 = vmatpush1.bf16.msra.mxu1 %v9112_v62  ;;  %v10472_v19 = vadd.f32 %v3308_v12, %v3268_v10  ;;  %v3270_v20 = vadd.f32 %v3269_v15, %v640_v0  ;;  %3634 = vmatprep.mubr.bf16.mxu1 %v10434_v29  ;;  %v9073_v62 = vcombine.high %v266_v57, %v270_v58  ;;  %v134_v0 = vld [vmem:[#allocation2 + $0x70] sm:$0xff] }
 0x14c   :  { %v3310_v21 = vpop.f32.mrf.mxu1  ;;  %3604 = vmatprep.subr.bf16.mxu1 %v9105_v1  ;;  %v3271_v28 = vpop.f32.mrf.mxu0  ;;  %v258_v1 = vld [vmem:[#allocation2 + $0x450] sm:$0xff]  ;;  %v8937_v7 = vcombine.high %v130_v63, %v134_v0 }
 0x14d   :  { %v10476_v36 = vadd.f32 %v3310_v21, %v3270_v20  ;;  %3564 = vmatpush1.bf16.msra.mxu0 %v8976_v13  ;;  %v9065_v9 = vcombine.high %v258_v1, %v262_v3  ;;  %v122_v10 = vld [vmem:[#allocation2 + $0x10] sm:$0xff] }
 0x14e   :  { %v3312_v37 = vpop.f32.mrf.mxu1  ;;  %v3272_v39 = vpop.f32.mrf.mxu0  ;;  %3565 = vmatprep.subr.bf16.mxu0 %v8969_v18  ;;  %v126_v12 = vld [vmem:[#allocation2 + $0x30] sm:$0xff]  ;;  %v9064_v18 = vcombine.low %v258_v1, %v262_v3 }
 0x14f   :  { %3605 = vmatpush1.bf16.msra.mxu1 %v9104_v16  ;;  %v250_v13 = vld [vmem:[#allocation2 + $0x410] sm:$0xff]  ;;  %v8936_v16 = vcombine.low %v130_v63, %v134_v0  ;;  %v8929_v20 = vcombine.high %v122_v10, %v126_v12  ;;  %v8928_v34 = vcombine.low %v122_v10, %v126_v12 }
 0x150   :  { %v3313_v43 = vpop.f32.mrf.mxu1  ;;  %3606 = vmatprep.subr.bf16.mxu1 %v9097_v22  ;;  %v254_v15 = vld [vmem:[#allocation2 + $0x430] sm:$0xff] }
 0x151   :  { %3566 = vmatpush1.bf16.msra.mxu0 %v8968_v38  ;;  %v9057_v21 = vcombine.high %v250_v13, %v254_v15  ;;  %v242_v22 = vld [vmem:[#allocation2 + $0x3d0] sm:$0xff]  ;;  %v9056_v35 = vcombine.low %v250_v13, %v254_v15 }
 0x152   :  { %3567 = vmatprep.subr.bf16.mxu0 %v8961_v41  ;;  %v374_v28 = vld [vmem:[#allocation2 + $0x7f0] sm:$0xff]  ;;  %v9049_v37 = vcombine.high %v242_v22, %v246_v23 }
 0x153   :  { %3607 = vmatpush1.bf16.msra.mxu1 %v9096_v40  ;;  %v9177_v38 = vcombine.high %v370_v27, %v374_v28  ;;  %v234_v39 = vld [vmem:[#allocation2 + $0x390] sm:$0xff]  ;;  %v9176_v45 = vcombine.low %v370_v27, %v374_v28 }
 0x154   :  { %3608 = vmatprep.subr.bf16.mxu1 %v9089_v44  ;;  %v238_v40 = vld [vmem:[#allocation2 + $0x3b0] sm:$0xff]  ;;  %v9048_v44 = vcombine.low %v242_v22, %v246_v23 }
 0x155   :  { %3568 = vmatpush1.bf16.msra.mxu0 %v8960_v49  ;;  %v362_v41 = vld [vmem:[#allocation2 + $0x790] sm:$0xff]  ;;  %v9041_v46 = vcombine.high %v234_v39, %v238_v40 }
 0x156   :  { %3569 = vmatprep.subr.bf16.mxu0 %v8953_v52  ;;  %v366_v43 = vld [vmem:[#allocation2 + $0x7b0] sm:$0xff] }
 0x157   :  { %3609 = vmatpush1.bf16.msra.mxu1 %v9088_v50  ;;  %v9169_v47 = vcombine.high %v362_v41, %v366_v43  ;;  %v230_v49 = vld [vmem:[#allocation2 + $0x370] sm:$0xff]  ;;  %v9168_v54 = vcombine.low %v362_v41, %v366_v43 }
 0x158   :  { %3610 = vmatprep.subr.bf16.mxu1 %v9081_v53  ;;  %v354_v50 = vld [vmem:[#allocation2 + $0x750] sm:$0xff]  ;;  %v9040_v53 = vcombine.low %v234_v39, %v238_v40  ;;  %v9033_v56 = vcombine.high %v226_v48, %v230_v49 }
 0x159   :  { %3570 = vmatpush1.bf16.msra.mxu0 %v8952_v59  ;;  %v358_v52 = vld [vmem:[#allocation2 + $0x770] sm:$0xff] }
 0x15a   :  { %3571 = vmatprep.subr.bf16.mxu0 %v8945_v61  ;;  %v9161_v57 = vcombine.high %v354_v50, %v358_v52  ;;  %v218_v58 = vld [vmem:[#allocation2 + $0x310] sm:$0xff]  ;;  %v9160_v63 = vcombine.low %v354_v50, %v358_v52 }
 0x15b   :  { %3611 = vmatpush1.bf16.msra.mxu1 %v9080_v60  ;;  %v222_v59 = vld [vmem:[#allocation2 + $0x330] sm:$0xff] }
 0x15c   :  { %3612 = vmatprep.subr.bf16.mxu1 %v9073_v62  ;;  %v346_v60 = vld [vmem:[#allocation2 + $0x710] sm:$0xff]  ;;  %v9032_v62 = vcombine.low %v226_v48, %v230_v49  ;;  %v9025_v0 = vcombine.high %v218_v58, %v222_v59 }
 0x15d   :  { %3572 = vmatpush1.bf16.msra.mxu0 %v8944_v4  ;;  %v350_v61 = vld [vmem:[#allocation2 + $0x730] sm:$0xff] }
 0x15e   :  { %3573 = vmatprep.subr.bf16.mxu0 %v8937_v7  ;;  %v9153_v1 = vcombine.high %v346_v60, %v350_v61  ;;  %v210_v3 = vld [vmem:[#allocation2 + $0x2d0] sm:$0xff]  ;;  %v9152_v10 = vcombine.low %v346_v60, %v350_v61 }
 0x15f   :  { %3613 = vmatpush1.bf16.msra.mxu1 %v9072_v6  ;;  %v214_v4 = vld [vmem:[#allocation2 + $0x2f0] sm:$0xff] }
 0x160   :  { %3614 = vmatprep.subr.bf16.mxu1 %v9065_v9  ;;  %v338_v6 = vld [vmem:[#allocation2 + $0x6d0] sm:$0xff]  ;;  %v9024_v9 = vcombine.low %v218_v58, %v222_v59  ;;  %v9017_v12 = vcombine.high %v210_v3, %v214_v4 }
 0x161   :  { %3574 = vmatpush1.bf16.msra.mxu0 %v8936_v16  ;;  %v342_v7 = vld [vmem:[#allocation2 + $0x6f0] sm:$0xff] }
 0x162   :  { %3575 = vmatprep.subr.bf16.mxu0 %v8929_v20  ;;  %v9145_v13 = vcombine.high %v338_v6, %v342_v7  ;;  %v202_v15 = vld [vmem:[#allocation2 + $0x290] sm:$0xff]  ;;  %v9144_v22 = vcombine.low %v338_v6, %v342_v7 }
 0x163   :  { %3615 = vmatpush1.bf16.msra.mxu1 %v9064_v18  ;;  %v206_v16 = vld [vmem:[#allocation2 + $0x2b0] sm:$0xff] }
 0x164   :  { %3616 = vmatprep.subr.bf16.mxu1 %v9057_v21  ;;  %v330_v18 = vld [vmem:[#allocation2 + $0x690] sm:$0xff]  ;;  %v9016_v21 = vcombine.low %v210_v3, %v214_v4  ;;  %v9009_v23 = vcombine.high %v202_v15, %v206_v16 }
 0x165   :  { %3576 = vmatpush1.bf16.msra.mxu0 %v8928_v34  ;;  %v334_v20 = vld [vmem:[#allocation2 + $0x6b0] sm:$0xff] }
 0x166   :  { %3577 = vmatprep.subr.bf16.mxu0 %v9049_v37  ;;  %v9137_v27 = vcombine.high %v330_v18, %v334_v20  ;;  %v194_v28 = vld [vmem:[#allocation2 + $0x250] sm:$0xff]  ;;  %v9136_v39 = vcombine.low %v330_v18, %v334_v20 }
 0x167   :  { %3617 = vmatpush1.bf16.msra.mxu1 %v9056_v35  ;;  %v198_v34 = vld [vmem:[#allocation2 + $0x270] sm:$0xff] }
 0x168   :  { %3618 = vmatprep.subr.bf16.mxu1 %v9177_v38  ;;  %v322_v35 = vld [vmem:[#allocation2 + $0x650] sm:$0xff]  ;;  %v9008_v38 = vcombine.low %v202_v15, %v206_v16  ;;  %v9001_v40 = vcombine.high %v194_v28, %v198_v34 }
 0x169   :  { %3578 = vmatpush2.bf16.msra.mxu0 %v9048_v44  ;;  %v326_v37 = vld [vmem:[#allocation2 + $0x670] sm:$0xff] }
 0x16a   :  { %3579 = vmatprep.subr.bf16.mxu0 %v9041_v46  ;;  %v9129_v41 = vcombine.high %v322_v35, %v326_v37  ;;  %v186_v43 = vld [vmem:[#allocation2 + $0x210] sm:$0xff]  ;;  %v9128_v48 = vcombine.low %v322_v35, %v326_v37 }
 0x16b   :  { %3619 = vmatpush2.bf16.msra.mxu1 %v9176_v45  ;;  %v190_v44 = vld [vmem:[#allocation2 + $0x230] sm:$0xff] }
 0x16c   :  { %3620 = vmatprep.subr.bf16.mxu1 %v9169_v47  ;;  %v314_v45 = vld [vmem:[#allocation2 + $0x610] sm:$0xff]  ;;  %v9000_v47 = vcombine.low %v194_v28, %v198_v34  ;;  %v8993_v49 = vcombine.high %v186_v43, %v190_v44 }
 0x16d   :  { %3580 = vmatpush2.bf16.msra.mxu0 %v9040_v53  ;;  %v318_v46 = vld [vmem:[#allocation2 + $0x630] sm:$0xff] }
 0x16e   :  { %3581 = vmatprep.subr.bf16.mxu0 %v9033_v56  ;;  %v9121_v50 = vcombine.high %v314_v45, %v318_v46  ;;  %v434_v52 = vld [vmem:[#allocation2 + $0x9d0] sm:$0xff]  ;;  %v9120_v58 = vcombine.low %v314_v45, %v318_v46 }
 0x16f   :  { %3621 = vmatpush2.bf16.msra.mxu1 %v9168_v54  ;;  %v438_v53 = vld [vmem:[#allocation2 + $0x9f0] sm:$0xff] }
 0x170   :  { %3622 = vmatprep.subr.bf16.mxu1 %v9161_v57  ;;  %v562_v54 = vld [vmem:[#allocation2 + $0xdd0] sm:$0xff]  ;;  %v8992_v57 = vcombine.low %v186_v43, %v190_v44  ;;  %v9241_v59 = vcombine.high %v434_v52, %v438_v53 }
 0x171   :  { %3582 = vmatpush2.bf16.msra.mxu0 %v9032_v62  ;;  %v566_v56 = vld [vmem:[#allocation2 + $0xdf0] sm:$0xff] }
 0x172   :  { %3583 = vmatprep.subr.bf16.mxu0 %v9025_v0  ;;  %v9369_v60 = vcombine.high %v562_v54, %v566_v56  ;;  %v426_v61 = vld [vmem:[#allocation2 + $0x990] sm:$0xff]  ;;  %v9368_v3 = vcombine.low %v562_v54, %v566_v56 }
 0x173   :  { %3623 = vmatpush2.bf16.msra.mxu1 %v9160_v63  ;;  %v430_v62 = vld [vmem:[#allocation2 + $0x9b0] sm:$0xff] }
 0x174   :  { %3624 = vmatprep.subr.bf16.mxu1 %v9153_v1  ;;  %v554_v63 = vld [vmem:[#allocation2 + $0xd90] sm:$0xff]  ;;  %v9240_v1 = vcombine.low %v434_v52, %v438_v53  ;;  %v9233_v4 = vcombine.high %v426_v61, %v430_v62  ;;  %v9232_v18 = vcombine.low %v426_v61, %v430_v62 }
 0x175   :  { %3584 = vmatpush2.bf16.msra.mxu0 %v9024_v9  ;;  %v558_v0 = vld [vmem:[#allocation2 + $0xdb0] sm:$0xff] }
 0x176   :  { %3585 = vmatprep.subr.bf16.mxu0 %v9017_v12  ;;  %v9361_v6 = vcombine.high %v554_v63, %v558_v0  ;;  %v418_v7 = vld [vmem:[#allocation2 + $0x950] sm:$0xff] }
 0x177   :  { %3625 = vmatpush2.bf16.msra.mxu1 %v9152_v10  ;;  %v422_v9 = vld [vmem:[#allocation2 + $0x970] sm:$0xff] }
 0x178   :  { %3626 = vmatprep.subr.bf16.mxu1 %v9145_v13  ;;  %v546_v12 = vld [vmem:[#allocation2 + $0xd50] sm:$0xff]  ;;  %v9224_v44 = vcombine.low %v418_v7, %v422_v9 }
 0x179   :  { %3586 = vmatpush2.bf16.msra.mxu0 %v9016_v21  ;;  %v550_v13 = vld [vmem:[#allocation2 + $0xd70] sm:$0xff]  ;;  %v9360_v21 = vcombine.low %v554_v63, %v558_v0 }
 0x17a   :  { %3587 = vmatprep.subr.bf16.mxu0 %v9009_v23  ;;  %v9353_v34 = vcombine.high %v546_v12, %v550_v13  ;;  %v410_v35 = vld [vmem:[#allocation2 + $0x910] sm:$0xff]  ;;  %v9352_v45 = vcombine.low %v546_v12, %v550_v13 }
 0x17b   :  { %3627 = vmatpush2.bf16.msra.mxu1 %v9144_v22  ;;  %v9225_v22 = vcombine.high %v418_v7, %v422_v9  ;;  %v414_v37 = vld [vmem:[#allocation2 + $0x930] sm:$0xff] }
 0x17c   :  { %3628 = vmatprep.subr.bf16.mxu1 %v9137_v27  ;;  %v9217_v46 = vcombine.high %v410_v35, %v414_v37  ;;  %v402_v52 = vld [vmem:[#allocation2 + $0x8d0] sm:$0xff] }
 0x17d   :  { %3588 = vmatpush2.bf16.msra.mxu0 %v9008_v38  ;;  %v538_v38 = vld [vmem:[#allocation2 + $0xd10] sm:$0xff] }
 0x17e   :  { %3589 = vmatprep.subr.bf16.mxu0 %v9001_v40  ;;  %v406_v53 = vld [vmem:[#allocation2 + $0x8f0] sm:$0xff] }
 0x17f   :  { %3629 = vmatpush2.bf16.msra.mxu1 %v9136_v39  ;;  %v542_v39 = vld [vmem:[#allocation2 + $0xd30] sm:$0xff]  ;;  %v9209_v61 = vcombine.high %v402_v52, %v406_v53 }
 0x180   :  { %3630 = vmatprep.subr.bf16.mxu1 %v9129_v41  ;;  %v530_v54 = vld [vmem:[#allocation2 + $0xcd0] sm:$0xff] }
 0x181   :  { %3590 = vmatpush2.bf16.msra.mxu0 %v9000_v47  ;;  %v534_v56 = vld [vmem:[#allocation2 + $0xcf0] sm:$0xff] }
 0x182   :  { %3591 = vmatprep.subr.bf16.mxu0 %v8993_v49  ;;  %v9337_v0 = vcombine.high %v530_v54, %v534_v56  ;;  %v9336_v12 = vcombine.low %v530_v54, %v534_v56  ;;  %v498_v54 = vld [vmem:[#allocation2 + $0xbd0] sm:$0xff] }
 0x183   :  { %3631 = vmatpush2.bf16.msra.mxu1 %v9128_v48  ;;  %v502_v56 = vld [vmem:[#allocation2 + $0xbf0] sm:$0xff] }
 0x184   :  { %3632 = vmatprep.subr.bf16.mxu1 %v9121_v50  ;;  %v9345_v50 = vcombine.high %v538_v38, %v542_v39 }
 0x185   :  { %3592 = vmatpush2.bf16.msra.mxu0 %v8992_v57 }
 0x186   :  { %3643 = vmatprep.subr.bf16.mxu0 %v9241_v59  ;;  %v9216_v59 = vcombine.low %v410_v35, %v414_v37 }
 0x187   :  { %3633 = vmatpush2.bf16.msra.mxu1 %v9120_v58 }
 0x188   :  { %3684 = vmatprep.subr.bf16.mxu1 %v9369_v60  ;;  %v3349_v10 = vpop.f32.mrf.mxu0  ;;  %3594 = vmatmul.mubr.bf16.vlgmr.msra.gmra.mxu0 %v10428_v24  ;;  %v9344_v60 = vcombine.low %v538_v38, %v542_v39 }
 0x189   :  { %v3350_v15 = vadd.f32 %v3349_v10, %v10472_v19  ;;  %3644 = vmatpush1.bf16.msra.mxu0 %v9240_v1  ;;  %3675 = vmatprep.mubr.bf16.mxu0 %v10438_v31  ;;  %v394_v1 = vld [vmem:[#allocation2 + $0x890] sm:$0xff]  ;;  %v9208_v10 = vcombine.low %v402_v52, %v406_v53 }
 0x18a   :  { %v3390_v16 = vpop.f32.mrf.mxu1  ;;  %3635 = vmatmul.mubr.bf16.vlgmr.msra.gmra.mxu1 %v10432_v26  ;;  %v3351_v20 = vpop.f32.mrf.mxu0  ;;  %3645 = vmatprep.subr.bf16.mxu0 %v9233_v4  ;;  %v522_v4 = vld [vmem:[#allocation2 + $0xc90] sm:$0xff] }
 0x18b   :  { %3685 = vmatpush1.bf16.msra.mxu1 %v9368_v3  ;;  %v10481_v23 = vadd.f32 %v3390_v16, %v3350_v15  ;;  %v3352_v27 = vadd.f32 %v3351_v20, %v10476_v36  ;;  %3716 = vmatprep.mubr.bf16.mxu1 %v10442_v33  ;;  %v398_v3 = vld [vmem:[#allocation2 + $0x8b0] sm:$0xff] }
 0x18c   :  { %v3392_v28 = vpop.f32.mrf.mxu1  ;;  %3686 = vmatprep.subr.bf16.mxu1 %v9361_v6  ;;  %v3353_v19 = vpop.f32.mrf.mxu0  ;;  %v526_v6 = vld [vmem:[#allocation2 + $0xcb0] sm:$0xff]  ;;  %v9201_v13 = vcombine.high %v394_v1, %v398_v3  ;;  %v9200_v35 = vcombine.low %v394_v1, %v398_v3 }
 0x18d   :  { %v3889_v40 = vrot.slane %v10481_v23, 4  ;;  %v10487_v41 = vadd.f32 %v3392_v28, %v3352_v27  ;;  %3646 = vmatpush1.bf16.msra.mxu0 %v9232_v18  ;;  %v9329_v18 = vcombine.high %v522_v4, %v526_v6  ;;  %v386_v20 = vld [vmem:[#allocation2 + $0x850] sm:$0xff]  ;;  %v9328_v37 = vcombine.low %v522_v4, %v526_v6 }
 0x18e   :  { %v3394_v43 = vpop.f32.mrf.mxu1  ;;  %v3354_v36 = vpop.f32.mrf.mxu0  ;;  %3647 = vmatprep.subr.bf16.mxu0 %v9225_v22  ;;  %v514_v22 = vld [vmem:[#allocation2 + $0xc50] sm:$0xff] }
 0x18f   :  { %3687 = vmatpush1.bf16.msra.mxu1 %v9360_v21  ;;  %v3890_v47 = vadd.f32 %v3889_v40, %v10481_v23  ;;  %v3895_v48 = vrot.slane %v10487_v41, 4  ;;  %v390_v21 = vld [vmem:[#allocation2 + $0x870] sm:$0xff] }
 0x190   :  { %v3395_v49 = vpop.f32.mrf.mxu1  ;;  %3688 = vmatprep.subr.bf16.mxu1 %v9353_v34  ;;  %v518_v27 = vld [vmem:[#allocation2 + $0xc70] sm:$0xff]  ;;  %v9193_v19 = vcombine.high %v386_v20, %v390_v21 }
 0x191   :  { %v3891_v57 = vrot.slane %v3890_v47, 2  ;;  %v3896_v58 = vadd.f32 %v3895_v48, %v10487_v41  ;;  %3648 = vmatpush1.bf16.msra.mxu0 %v9224_v44  ;;  %v9321_v40 = vcombine.high %v514_v22, %v518_v27  ;;  %v378_v43 = vld [vmem:[#allocation2 + $0x810] sm:$0xff]  ;;  %v9192_v48 = vcombine.low %v386_v20, %v390_v21 }
 0x192   :  { %3649 = vmatprep.subr.bf16.mxu0 %v9217_v46  ;;  %v382_v44 = vld [vmem:[#allocation2 + $0x830] sm:$0xff]  ;;  %v9320_v49 = vcombine.low %v514_v22, %v518_v27 }
 0x193   :  { %3689 = vmatpush1.bf16.msra.mxu1 %v9352_v45  ;;  %v3892_v62 = vadd.f32 %v3891_v57, %v3890_v47  ;;  %v3897_v63 = vrot.slane %v3896_v58, 2  ;;  %v506_v36 = vld [vmem:[#allocation2 + $0xc10] sm:$0xff] }
 0x194   :  { %3690 = vmatprep.subr.bf16.mxu1 %v9345_v50  ;;  %v510_v45 = vld [vmem:[#allocation2 + $0xc30] sm:$0xff] }
 0x195   :  { %v3893_v7 = vrot.slane %v3892_v62, 1  ;;  %v3898_v9 = vadd.f32 %v3897_v63, %v3896_v58  ;;  %3650 = vmatpush1.bf16.msra.mxu0 %v9216_v59  ;;  %v9313_v53 = vcombine.high %v506_v36, %v510_v45  ;;  %v626_v57 = vld [vmem:[#allocation2 + $0xfd0] sm:$0xff] }
 0x196   :  { %3651 = vmatprep.subr.bf16.mxu0 %v9209_v61  ;;  %v630_v58 = vld [vmem:[#allocation2 + $0xff0] sm:$0xff]  ;;  %v9312_v61 = vcombine.low %v506_v36, %v510_v45 }
 0x197   :  { %3691 = vmatpush1.bf16.msra.mxu1 %v9344_v60  ;;  %v3894_v15 = vadd.f32 %v3893_v7, %v3892_v62  ;;  %v3899_v16 = vrot.slane %v3898_v9, 1  ;;  %v9305_v62 = vcombine.high %v498_v54, %v502_v56  ;;  %v9433_v1 = vcombine.high %v626_v57, %v630_v58  ;;  %v490_v3 = vld [vmem:[#allocation2 + $0xb90] sm:$0xff] }
 0x198   :  { %3692 = vmatprep.subr.bf16.mxu1 %v9337_v0  ;;  %v494_v4 = vld [vmem:[#allocation2 + $0xbb0] sm:$0xff] }
 0x199   :  { %v3938_v28 = vmul.f32 0.125, %v3894_v15  ;;  %v3900_v34 = vadd.f32 %v3899_v16, %v3898_v9  ;;  %3652 = vmatpush1.bf16.msra.mxu0 %v9208_v10  ;;  %v618_v6 = vld [vmem:[#allocation2 + $0xf90] sm:$0xff]  ;;  %v9297_v15 = vcombine.high %v490_v3, %v494_v4 }
 0x19a   :  { %3653 = vmatprep.subr.bf16.mxu0 %v9201_v13  ;;  %v622_v7 = vld [vmem:[#allocation2 + $0xfb0] sm:$0xff]  ;;  %v9432_v13 = vcombine.low %v626_v57, %v630_v58 }
 0x19b   :  { %3693 = vmatpush1.bf16.msra.mxu1 %v9336_v12  ;;  %v10493_v38 = vsub.f32 %v10481_v23, %v3938_v28  ;;  %v3939_v39 = vmul.f32 0.125, %v3900_v34  ;;  %v9185_v23 = vcombine.high %v378_v43, %v382_v44  ;;  %v9304_v12 = vcombine.low %v498_v54, %v502_v56  ;;  %v482_v21 = vld [vmem:[#allocation2 + $0xb50] sm:$0xff] }
 0x19c   :  { %3694 = vmatprep.subr.bf16.mxu1 %v9329_v18  ;;  %v9425_v20 = vcombine.high %v618_v6, %v622_v7  ;;  %v486_v22 = vld [vmem:[#allocation2 + $0xb70] sm:$0xff] }
 0x19d   :  { %v3954_v46 = vmul.f32 %v10493_v38, %v10493_v38  ;;  %v10498_v47 = vsub.f32 %v10487_v41, %v3939_v39  ;;  %3654 = vmatpush1.bf16.msra.mxu0 %v9200_v35  ;;  %v9184_v41 = vcombine.low %v378_v43, %v382_v44  ;;  %v610_v27 = vld [vmem:[#allocation2 + $0xf50] sm:$0xff]  ;;  %v9289_v39 = vcombine.high %v482_v21, %v486_v22 }
 0x19e   :  { %3655 = vmatprep.subr.bf16.mxu0 %v9193_v19  ;;  %v614_v28 = vld [vmem:[#allocation2 + $0xf70] sm:$0xff]  ;;  %v9424_v19 = vcombine.low %v618_v6, %v622_v7 }
 0x19f   :  { %3695 = vmatpush1.bf16.msra.mxu1 %v9328_v37  ;;  %v3962_v50 = vrot.slane %v3954_v46, 4  ;;  %v3955_v52 = vmul.f32 %v10498_v47, %v10498_v47  ;;  %v9296_v37 = vcombine.low %v490_v3, %v494_v4  ;;  %v9417_v44 = vcombine.high %v610_v27, %v614_v28  ;;  %v474_v36 = vld [vmem:[#allocation2 + $0xb10] sm:$0xff] }
 0x1a0   :  { %3696 = vmatprep.subr.bf16.mxu1 %v9321_v40  ;;  %v478_v45 = vld [vmem:[#allocation2 + $0xb30] sm:$0xff] }
 0x1a1   :  { %v3963_v59 = vadd.f32 %v3962_v50, %v3954_v46  ;;  %v3968_v60 = vrot.slane %v3955_v52, 4  ;;  %3656 = vmatpush1.bf16.msra.mxu0 %v9192_v48  ;;  %v602_v46 = vld [vmem:[#allocation2 + $0xf10] sm:$0xff]  ;;  %v9288_v50 = vcombine.low %v482_v21, %v486_v22  ;;  %v4046_v22 = vrot.slane %v10418_v5, %v10461_v51 }
 0x1a2   :  { %3657 = vmatprep.subr.bf16.mxu0 %v9185_v23  ;;  %v606_v48 = vld [vmem:[#allocation2 + $0xf30] sm:$0xff] }
 0x1a3   :  { %3697 = vmatpush1.bf16.msra.mxu1 %v9320_v49  ;;  %v3964_v63 = vrot.slane %v3963_v59, 2  ;;  %v3969_v0 = vadd.f32 %v3968_v60, %v3955_v52  ;;  %v9416_v52 = vcombine.low %v610_v27, %v614_v28  ;;  %v9409_v56 = vcombine.high %v602_v46, %v606_v48  ;;  %v466_v57 = vld [vmem:[#allocation2 + $0xad0] sm:$0xff] }
 0x1a4   :  { %3698 = vmatprep.subr.bf16.mxu1 %v9313_v53  ;;  %v9281_v53 = vcombine.high %v474_v36, %v478_v45  ;;  %v470_v58 = vld [vmem:[#allocation2 + $0xaf0] sm:$0xff] }
 0x1a5   :  { %v3965_v9 = vadd.f32 %v3964_v63, %v3963_v59  ;;  %v3970_v10 = vrot.slane %v3969_v0, 2  ;;  %3658 = vmatpush1.bf16.msra.mxu0 %v9184_v41  ;;  %v594_v59 = vld [vmem:[#allocation2 + $0xed0] sm:$0xff]  ;;  %v9280_v41 = vcombine.low %v474_v36, %v478_v45  ;;  %v9272_v6 = vcombine.low %v466_v57, %v470_v58 }
 0x1a6   :  { %3659 = vmatprep.subr.bf16.mxu0 %v9305_v62  ;;  %v598_v60 = vld [vmem:[#allocation2 + $0xef0] sm:$0xff]  ;;  %v9273_v62 = vcombine.high %v466_v57, %v470_v58 }
 0x1a7   :  { %3699 = vmatpush1.bf16.msra.mxu1 %v9312_v61  ;;  %v3966_v16 = vrot.slane %v3965_v9, 1  ;;  %v3971_v18 = vadd.f32 %v3970_v10, %v3969_v0  ;;  %v9408_v61 = vcombine.low %v602_v46, %v606_v48  ;;  %v9401_v63 = vcombine.high %v594_v59, %v598_v60  ;;  %v458_v0 = vld [vmem:[#allocation2 + $0xa90] sm:$0xff] }
 0x1a8   :  { %3700 = vmatprep.subr.bf16.mxu1 %v9433_v1  ;;  %v462_v1 = vld [vmem:[#allocation2 + $0xab0] sm:$0xff]  ;;  %v9400_v7 = vcombine.low %v594_v59, %v598_v60  ;;  %v4099_v48 = vrot.slane %v10420_v8, %v10464_v55  ;;  %v10515_v59 = vsub.s32 2, %v10458_v42 }
 0x1a9   :  { %v3967_v34 = vadd.f32 %v3966_v16, %v3965_v9  ;;  %v3972_v35 = vrot.slane %v3971_v18, 1  ;;  %3660 = vmatpush2.bf16.msra.mxu0 %v9304_v12  ;;  %v586_v3 = vld [vmem:[#allocation2 + $0xe90] sm:$0xff]  ;;  %v9265_v9 = vcombine.high %v458_v0, %v462_v1 }
 0x1aa   :  { %3661 = vmatprep.subr.bf16.mxu0 %v9297_v15  ;;  %v590_v4 = vld [vmem:[#allocation2 + $0xeb0] sm:$0xff] }
 0x1ab   :  { %3701 = vmatpush2.bf16.msra.mxu1 %v9432_v13  ;;  %v4010_v40 = vmul.f32 0.125, %v3967_v34  ;;  %v3973_v43 = vadd.f32 %v3972_v35, %v3971_v18  ;;  %v9393_v10 = vcombine.high %v586_v3, %v590_v4  ;;  %v450_v12 = vld [vmem:[#allocation2 + $0xa50] sm:$0xff]  ;;  %v9264_v18 = vcombine.low %v458_v0, %v462_v1  ;;  %v171_v0 = vld [vmem:[#allocation2 + $0x198] sm:$0xff] }
 0x1ac   :  { %3702 = vmatprep.subr.bf16.mxu1 %v9425_v20  ;;  %v454_v13 = vld [vmem:[#allocation2 + $0xa70] sm:$0xff]  ;;  %v9392_v20 = vcombine.low %v586_v3, %v590_v4  ;;  %v175_v1 = vld [vmem:[#allocation2 + $0x1b8] sm:$0xff] }
 0x1ad   :  { %v4018_v49 = vadd.f32 1e-05, %v4010_v40  ;;  %v4011_v23 = vmul.f32 0.125, %v3973_v43  ;;  %3662 = vmatpush2.bf16.msra.mxu0 %v9296_v37  ;;  %v578_v15 = vld [vmem:[#allocation2 + $0xe50] sm:$0xff]  ;;  %v9257_v21 = vcombine.high %v450_v12, %v454_v13  ;;  %v4050_v43 = vrot.slane %v10418_v5, %v10464_v55  ;;  %v299_v3 = vld [vmem:[#allocation2 + $0x598] sm:$0xff] }
 0x1ae   :  { %3663 = vmatprep.subr.bf16.mxu0 %v9289_v39  ;;  %v582_v16 = vld [vmem:[#allocation2 + $0xe70] sm:$0xff]  ;;  %v4095_v39 = vrot.slane %v10420_v8, %v10461_v51  ;;  %v303_v4 = vld [vmem:[#allocation2 + $0x5b8] sm:$0xff] }
 0x1af   :  { %3703 = vmatpush2.bf16.msra.mxu1 %v9424_v19  ;;  %10111 = vrsqrt.f32 %v4018_v49  ;;  %v4019_v54 = vadd.f32 1e-05, %v4011_v23  ;;  %v9385_v27 = vcombine.high %v578_v15, %v582_v16  ;;  %v442_v28 = vld [vmem:[#allocation2 + $0xa10] sm:$0xff]  ;;  %v9384_v45 = vcombine.low %v578_v15, %v582_v16  ;;  %v163_v16 = vld [vmem:[#allocation2 + $0x158] sm:$0xff] }
 0x1b0   :  { %3704 = vmatprep.subr.bf16.mxu1 %v9417_v44  ;;  %v446_v34 = vld [vmem:[#allocation2 + $0xa30] sm:$0xff]  ;;  %v9256_v44 = vcombine.low %v450_v12, %v454_v13  ;;  %v8979_v12 = vcombine.high %v171_v0, %v175_v1  ;;  %v9107_v15 = vcombine.high %v299_v3, %v303_v4 }
 0x1b1   :  { %10113 = vrsqrt.f32 %v4019_v54  ;;  %3664 = vmatpush2.bf16.msra.mxu0 %v9288_v50  ;;  %v570_v37 = vld [vmem:[#allocation2 + $0xe10] sm:$0xff]  ;;  %v9249_v46 = vcombine.high %v442_v28, %v446_v34  ;;  %v311_v54 = vld [vmem:[#allocation2 + $0x5f8] sm:$0xff]  ;;  %v9248_v58 = vcombine.low %v442_v28, %v446_v34  ;;  %v8978_v34 = vcombine.low %v171_v0, %v175_v1 }
 0x1b2   :  { %3665 = vmatprep.subr.bf16.mxu0 %v9281_v53  ;;  %v574_v19 = vld [vmem:[#allocation2 + $0xe30] sm:$0xff]  ;;  %v307_v53 = vld [vmem:[#allocation2 + $0x5d8] sm:$0xff] }
 0x1b3   :  { %3705 = vmatpush2.bf16.msra.mxu1 %v9416_v52  ;;  %v9377_v50 = vcombine.high %v570_v37, %v574_v19  ;;  %v179_v52 = vld [vmem:[#allocation2 + $0x1d8] sm:$0xff]  ;;  %v9376_v60 = vcombine.low %v570_v37, %v574_v19  ;;  %v9106_v37 = vcombine.low %v299_v3, %v303_v4 }
 0x1b4   :  { %3706 = vmatprep.subr.bf16.mxu1 %v9409_v56  ;;  %v139_v4 = vld [vmem:[#allocation2 + $0x98] sm:$0xff] }
 0x1b5   :  { %3666 = vmatpush2.bf16.msra.mxu0 %v9280_v41 }
 0x1b6   :  { %3667 = vmatprep.subr.bf16.mxu0 %v9273_v62  ;;  %v9115_v62 = vcombine.high %v307_v53, %v311_v54 }
 0x1b7   :  { %3707 = vmatpush2.bf16.msra.mxu1 %v9408_v61 }
 0x1b8   :  { %3708 = vmatprep.subr.bf16.mxu1 %v9401_v63  ;;  %v10521_v63 = vsub.s32 3, %v10458_v42 }
 0x1b9   :  { %3668 = vmatpush2.bf16.msra.mxu0 %v9272_v6 }
 0x1ba   :  { %3669 = vmatprep.subr.bf16.mxu0 %v9265_v9  ;;  %v648_v13 = vrot.slane %v10416_v2, %v10521_v63 }
 0x1bb   :  { %3709 = vmatpush2.bf16.msra.mxu1 %v9400_v7  ;;  %v644_v7 = vrot.slane %v10416_v2, %v10515_v59 }
 0x1bc   :  { %3710 = vmatprep.subr.bf16.mxu1 %v9393_v10  ;;  %v10112_v35 = vpop.eup %10111  ;;  %v9114_v10 = vcombine.low %v307_v53, %v311_v54 }
 0x1bd   :  { %v4034_v40 = vmul.f32 %v10112_v35, %v10493_v38  ;;  %3670 = vmatpush2.bf16.msra.mxu0 %v9264_v18  ;;  %v183_v38 = vld [vmem:[#allocation2 + $0x1f8] sm:$0xff] }
 0x1be   :  { %v10114_v36 = vpop.eup %10113  ;;  %3671 = vmatprep.subr.bf16.mxu0 %v9257_v21  ;;  %v8987_v41 = vcombine.high %v179_v52, %v183_v38  ;;  %v8986_v9 = vcombine.low %v179_v52, %v183_v38  ;;  %v167_v18 = vld [vmem:[#allocation2 + $0x178] sm:$0xff] }
 0x1bf   :  { %3711 = vmatpush2.bf16.msra.mxu1 %v9392_v20  ;;  %v4083_v49 = vmul.f32 %v4046_v22, %v4034_v40  ;;  %v4035_v23 = vmul.f32 %v10114_v36, %v10498_v47  ;;  %v291_v21 = vld [vmem:[#allocation2 + $0x558] sm:$0xff]  ;;  %v8971_v19 = vcombine.high %v163_v16, %v167_v18  ;;  %v8970_v52 = vcombine.low %v163_v16, %v167_v18 }
 0x1c0   :  { %3712 = vmatprep.subr.bf16.mxu1 %v9385_v27  ;;  %v295_v22 = vld [vmem:[#allocation2 + $0x578] sm:$0xff] }
 0x1c1   :  { %v10512_v56 = vadd.f32 %v4095_v39, %v4083_v49  ;;  %v4084_v57 = vmul.f32 %v4050_v43, %v4035_v23  ;;  %3672 = vmatpush2.bf16.msra.mxu0 %v9256_v44  ;;  %v9099_v44 = vcombine.high %v291_v21, %v295_v22  ;;  %v155_v36 = vld [vmem:[#allocation2 + $0x118] sm:$0xff]  ;;  %v9098_v53 = vcombine.low %v291_v21, %v295_v22 }
 0x1c2   :  { %3673 = vmatprep.subr.bf16.mxu0 %v9249_v46  ;;  %v287_v49 = vld [vmem:[#allocation2 + $0x538] sm:$0xff] }
 0x1c3   :  { %3713 = vmatpush2.bf16.msra.mxu1 %v9384_v45  ;;  %v4140_v47 = vmax.f32 %v10512_v56, 0.0  ;;  %v10518_v61 = vadd.f32 %v4099_v48, %v4084_v57  ;;  %v159_v45 = vld [vmem:[#allocation2 + $0x138] sm:$0xff] }
 0x1c4   :  { %3714 = vmatprep.subr.bf16.mxu1 %v9377_v50  ;;  %v283_v48 = vld [vmem:[#allocation2 + $0x518] sm:$0xff]  ;;  %v8963_v54 = vcombine.high %v155_v36, %v159_v45  ;;  %v8962_v0 = vcombine.low %v155_v36, %v159_v45 }
 0x1c5   :  { %v4141_v6 = vmax.f32 %v10518_v61, 0.0  ;;  %3674 = vmatpush2.bf16.msra.mxu0 %v9248_v58  ;;  %v9091_v58 = vcombine.high %v283_v48, %v287_v49  ;;  %v131_v18 = vld [vmem:[#allocation2 + $0x58] sm:$0xff] }
 0x1c6   :  { %3725 = vmatprep.subr.bf16.mxu0 %v8987_v41  ;;  %v275_v41 = vld [vmem:[#allocation2 + $0x4d8] sm:$0xff] }
 0x1c7   :  { %3715 = vmatpush2.bf16.msra.mxu1 %v9376_v60  ;;  %v147_v60 = vld [vmem:[#allocation2 + $0xd8] sm:$0xff] }
 0x1c8   :  { %3766 = vmatprep.subr.bf16.mxu1 %v9115_v62  ;;  %v3431_v20 = vpop.f32.mrf.mxu0  ;;  %3676 = vmatmul.mubr.bf16.vlgmr.msra.gmra.mxu0 %v10436_v30  ;;  %v279_v62 = vld [vmem:[#allocation2 + $0x4f8] sm:$0xff] }
 0x1c9   :  { %v3432_v27 = vadd.f32 %v3431_v20, %v644_v7  ;;  %3726 = vmatpush1.bf16.msra.mxu0 %v8986_v9  ;;  %3757 = vmatprep.mubr.bf16.mxu0 %v10430_v25  ;;  %v151_v25 = vld [vmem:[#allocation2 + $0xf8] sm:$0xff]  ;;  %v9083_v3 = vcombine.high %v275_v41, %v279_v62 }
 0x1ca   :  { %v3472_v28 = vpop.f32.mrf.mxu1  ;;  %3717 = vmatmul.mubr.bf16.vlgmr.msra.gmra.mxu1 %v10440_v32  ;;  %v3433_v35 = vpop.f32.mrf.mxu0  ;;  %3727 = vmatprep.subr.bf16.mxu0 %v8979_v12  ;;  %v8955_v1 = vcombine.high %v147_v60, %v151_v25  ;;  %v143_v7 = vld [vmem:[#allocation2 + $0xb8] sm:$0xff]  ;;  %v8954_v12 = vcombine.low %v147_v60, %v151_v25 }
 0x1cb   :  { %3767 = vmatpush1.bf16.msra.mxu1 %v9114_v10  ;;  %v10530_v39 = vadd.f32 %v3472_v28, %v3432_v27  ;;  %v3434_v40 = vadd.f32 %v3433_v35, %v648_v13  ;;  %3798 = vmatprep.mubr.bf16.mxu1 %v10434_v29  ;;  %v9090_v29 = vcombine.low %v283_v48, %v287_v49  ;;  %v267_v9 = vld [vmem:[#allocation2 + $0x498] sm:$0xff] }
 0x1cc   :  { %v3474_v43 = vpop.f32.mrf.mxu1  ;;  %3768 = vmatprep.subr.bf16.mxu1 %v9107_v15  ;;  %v3435_v46 = vpop.f32.mrf.mxu0  ;;  %v271_v10 = vld [vmem:[#allocation2 + $0x4b8] sm:$0xff]  ;;  %v9082_v13 = vcombine.low %v275_v41, %v279_v62  ;;  %v8947_v15 = vcombine.high %v139_v4, %v143_v7  ;;  %v8946_v27 = vcombine.low %v139_v4, %v143_v7 }
 0x1cd   :  { %v10534_v23 = vadd.f32 %v3474_v43, %v3434_v40  ;;  %3728 = vmatpush1.bf16.msra.mxu0 %v8978_v34  ;;  %v9075_v16 = vcombine.high %v267_v9, %v271_v10  ;;  %v135_v20 = vld [vmem:[#allocation2 + $0x78] sm:$0xff]  ;;  %v9074_v28 = vcombine.low %v267_v9, %v271_v10 }
 0x1ce   :  { %v3476_v50 = vpop.f32.mrf.mxu1  ;;  %v3436_v38 = vpop.f32.mrf.mxu0  ;;  %3729 = vmatprep.subr.bf16.mxu0 %v8971_v19  ;;  %v259_v21 = vld [vmem:[#allocation2 + $0x458] sm:$0xff]  ;;  %v8939_v34 = vcombine.high %v131_v18, %v135_v20 }
 0x1cf   :  { %3769 = vmatpush1.bf16.msra.mxu1 %v9106_v37  ;;  %v263_v22 = vld [vmem:[#allocation2 + $0x478] sm:$0xff] }
 0x1d0   :  { %v3477_v57 = vpop.f32.mrf.mxu1  ;;  %3770 = vmatprep.subr.bf16.mxu1 %v9099_v44  ;;  %v9067_v35 = vcombine.high %v259_v21, %v263_v22  ;;  %v123_v37 = vld [vmem:[#allocation2 + $0x18] sm:$0xff]  ;;  %v8938_v44 = vcombine.low %v131_v18, %v135_v20  ;;  %v9066_v36 = vcombine.low %v259_v21, %v263_v22 }
 0x1d1   :  { %3730 = vmatpush1.bf16.msra.mxu0 %v8970_v52  ;;  %v127_v19 = vld [vmem:[#allocation2 + $0x38] sm:$0xff] }
 0x1d2   :  { %3731 = vmatprep.subr.bf16.mxu0 %v8963_v54  ;;  %v251_v40 = vld [vmem:[#allocation2 + $0x418] sm:$0xff]  ;;  %v8931_v45 = vcombine.high %v123_v37, %v127_v19  ;;  %v8930_v38 = vcombine.low %v123_v37, %v127_v19 }
 0x1d3   :  { %3771 = vmatpush1.bf16.msra.mxu1 %v9098_v53  ;;  %v255_v43 = vld [vmem:[#allocation2 + $0x438] sm:$0xff] }
 0x1d4   :  { %3772 = vmatprep.subr.bf16.mxu1 %v9091_v58  ;;  %v9059_v46 = vcombine.high %v251_v40, %v255_v43  ;;  %v243_v48 = vld [vmem:[#allocation2 + $0x3d8] sm:$0xff]  ;;  %v9058_v53 = vcombine.low %v251_v40, %v255_v43 }
 0x1d5   :  { %3732 = vmatpush1.bf16.msra.mxu0 %v8962_v0  ;;  %v247_v49 = vld [vmem:[#allocation2 + $0x3f8] sm:$0xff] }
 0x1d6   :  { %3733 = vmatprep.subr.bf16.mxu0 %v8955_v1  ;;  %v371_v50 = vld [vmem:[#allocation2 + $0x7d8] sm:$0xff]  ;;  %v9051_v54 = vcombine.high %v243_v48, %v247_v49  ;;  %v9050_v62 = vcombine.low %v243_v48, %v247_v49 }
 0x1d7   :  { %3773 = vmatpush1.bf16.msra.mxu1 %v9090_v29  ;;  %v375_v52 = vld [vmem:[#allocation2 + $0x7f8] sm:$0xff] }
 0x1d8   :  { %3774 = vmatprep.subr.bf16.mxu1 %v9083_v3  ;;  %v9179_v57 = vcombine.high %v371_v50, %v375_v52  ;;  %v235_v58 = vld [vmem:[#allocation2 + $0x398] sm:$0xff]  ;;  %v9178_v0 = vcombine.low %v371_v50, %v375_v52 }
 0x1d9   :  { %3734 = vmatpush1.bf16.msra.mxu0 %v8954_v12  ;;  %v239_v60 = vld [vmem:[#allocation2 + $0x3b8] sm:$0xff] }
 0x1da   :  { %3735 = vmatprep.subr.bf16.mxu0 %v8947_v15  ;;  %v363_v25 = vld [vmem:[#allocation2 + $0x798] sm:$0xff]  ;;  %v9043_v29 = vcombine.high %v235_v58, %v239_v60  ;;  %v9042_v10 = vcombine.low %v235_v58, %v239_v60 }
 0x1db   :  { %3775 = vmatpush1.bf16.msra.mxu1 %v9082_v13  ;;  %v367_v41 = vld [vmem:[#allocation2 + $0x7b8] sm:$0xff] }
 0x1dc   :  { %3776 = vmatprep.subr.bf16.mxu1 %v9075_v16  ;;  %v9171_v1 = vcombine.high %v363_v25, %v367_v41  ;;  %v227_v3 = vld [vmem:[#allocation2 + $0x358] sm:$0xff]  ;;  %v9170_v12 = vcombine.low %v363_v25, %v367_v41 }
 0x1dd   :  { %3736 = vmatpush1.bf16.msra.mxu0 %v8946_v27  ;;  %v231_v4 = vld [vmem:[#allocation2 + $0x378] sm:$0xff] }
 0x1de   :  { %3737 = vmatprep.subr.bf16.mxu0 %v8939_v34  ;;  %v355_v7 = vld [vmem:[#allocation2 + $0x758] sm:$0xff]  ;;  %v9035_v13 = vcombine.high %v227_v3, %v231_v4  ;;  %v9034_v22 = vcombine.low %v227_v3, %v231_v4 }
 0x1df   :  { %3777 = vmatpush1.bf16.msra.mxu1 %v9074_v28  ;;  %v359_v9 = vld [vmem:[#allocation2 + $0x778] sm:$0xff] }
 0x1e0   :  { %3778 = vmatprep.subr.bf16.mxu1 %v9067_v35  ;;  %v9163_v15 = vcombine.high %v355_v7, %v359_v9  ;;  %v219_v16 = vld [vmem:[#allocation2 + $0x318] sm:$0xff]  ;;  %v9162_v27 = vcombine.low %v355_v7, %v359_v9 }
 0x1e1   :  { %3738 = vmatpush1.bf16.msra.mxu0 %v8938_v44  ;;  %v223_v18 = vld [vmem:[#allocation2 + $0x338] sm:$0xff] }
 0x1e2   :  { %3739 = vmatprep.subr.bf16.mxu0 %v8931_v45  ;;  %v347_v20 = vld [vmem:[#allocation2 + $0x718] sm:$0xff]  ;;  %v9027_v28 = vcombine.high %v219_v16, %v223_v18  ;;  %v9026_v43 = vcombine.low %v219_v16, %v223_v18 }
 0x1e3   :  { %3779 = vmatpush1.bf16.msra.mxu1 %v9066_v36  ;;  %v351_v21 = vld [vmem:[#allocation2 + $0x738] sm:$0xff] }
 0x1e4   :  { %3780 = vmatprep.subr.bf16.mxu1 %v9059_v46  ;;  %v9155_v34 = vcombine.high %v347_v20, %v351_v21  ;;  %v211_v35 = vld [vmem:[#allocation2 + $0x2d8] sm:$0xff]  ;;  %v9154_v44 = vcombine.low %v347_v20, %v351_v21 }
 0x1e5   :  { %3740 = vmatpush1.bf16.msra.mxu0 %v8930_v38  ;;  %v215_v37 = vld [vmem:[#allocation2 + $0x2f8] sm:$0xff] }
 0x1e6   :  { %3741 = vmatprep.subr.bf16.mxu0 %v9051_v54  ;;  %v339_v19 = vld [vmem:[#allocation2 + $0x6d8] sm:$0xff]  ;;  %v9019_v36 = vcombine.high %v211_v35, %v215_v37  ;;  %v9018_v52 = vcombine.low %v211_v35, %v215_v37 }
 0x1e7   :  { %3781 = vmatpush1.bf16.msra.mxu1 %v9058_v53  ;;  %v343_v40 = vld [vmem:[#allocation2 + $0x6f8] sm:$0xff] }
 0x1e8   :  { %3782 = vmatprep.subr.bf16.mxu1 %v9179_v57  ;;  %v9147_v45 = vcombine.high %v339_v19, %v343_v40  ;;  %v203_v46 = vld [vmem:[#allocation2 + $0x298] sm:$0xff]  ;;  %v9146_v38 = vcombine.low %v339_v19, %v343_v40 }
 0x1e9   :  { %3742 = vmatpush2.bf16.msra.mxu0 %v9050_v62  ;;  %v207_v48 = vld [vmem:[#allocation2 + $0x2b8] sm:$0xff] }
 0x1ea   :  { %3743 = vmatprep.subr.bf16.mxu0 %v9043_v29  ;;  %v331_v49 = vld [vmem:[#allocation2 + $0x698] sm:$0xff]  ;;  %v9011_v53 = vcombine.high %v203_v46, %v207_v48  ;;  %v9010_v41 = vcombine.low %v203_v46, %v207_v48 }
 0x1eb   :  { %3783 = vmatpush2.bf16.msra.mxu1 %v9178_v0  ;;  %v335_v50 = vld [vmem:[#allocation2 + $0x6b8] sm:$0xff] }
 0x1ec   :  { %3784 = vmatprep.subr.bf16.mxu1 %v9171_v1  ;;  %v9139_v54 = vcombine.high %v331_v49, %v335_v50  ;;  %v195_v57 = vld [vmem:[#allocation2 + $0x258] sm:$0xff]  ;;  %v9138_v62 = vcombine.low %v331_v49, %v335_v50 }
 0x1ed   :  { %3744 = vmatpush2.bf16.msra.mxu0 %v9042_v10  ;;  %v199_v58 = vld [vmem:[#allocation2 + $0x278] sm:$0xff] }
 0x1ee   :  { %3745 = vmatprep.subr.bf16.mxu0 %v9035_v13  ;;  %v323_v60 = vld [vmem:[#allocation2 + $0x658] sm:$0xff]  ;;  %v9003_v0 = vcombine.high %v195_v57, %v199_v58  ;;  %v9002_v9 = vcombine.low %v195_v57, %v199_v58 }
 0x1ef   :  { %3785 = vmatpush2.bf16.msra.mxu1 %v9170_v12  ;;  %v327_v25 = vld [vmem:[#allocation2 + $0x678] sm:$0xff] }
 0x1f0   :  { %3786 = vmatprep.subr.bf16.mxu1 %v9163_v15  ;;  %v9131_v29 = vcombine.high %v323_v60, %v327_v25  ;;  %v187_v1 = vld [vmem:[#allocation2 + $0x218] sm:$0xff]  ;;  %v9130_v10 = vcombine.low %v323_v60, %v327_v25 }
 0x1f1   :  { %3746 = vmatpush2.bf16.msra.mxu0 %v9034_v22  ;;  %v191_v3 = vld [vmem:[#allocation2 + $0x238] sm:$0xff] }
 0x1f2   :  { %3747 = vmatprep.subr.bf16.mxu0 %v9027_v28  ;;  %v315_v4 = vld [vmem:[#allocation2 + $0x618] sm:$0xff]  ;;  %v8995_v12 = vcombine.high %v187_v1, %v191_v3  ;;  %v8994_v21 = vcombine.low %v187_v1, %v191_v3 }
 0x1f3   :  { %3787 = vmatpush2.bf16.msra.mxu1 %v9162_v27  ;;  %v319_v7 = vld [vmem:[#allocation2 + $0x638] sm:$0xff] }
 0x1f4   :  { %3788 = vmatprep.subr.bf16.mxu1 %v9155_v34  ;;  %v9123_v13 = vcombine.high %v315_v4, %v319_v7  ;;  %v435_v15 = vld [vmem:[#allocation2 + $0x9d8] sm:$0xff]  ;;  %v9122_v22 = vcombine.low %v315_v4, %v319_v7 }
 0x1f5   :  { %3748 = vmatpush2.bf16.msra.mxu0 %v9026_v43  ;;  %v439_v16 = vld [vmem:[#allocation2 + $0x9f8] sm:$0xff] }
 0x1f6   :  { %3749 = vmatprep.subr.bf16.mxu0 %v9019_v36  ;;  %v563_v18 = vld [vmem:[#allocation2 + $0xdd8] sm:$0xff]  ;;  %v9243_v27 = vcombine.high %v435_v15, %v439_v16  ;;  %v9242_v40 = vcombine.low %v435_v15, %v439_v16 }
 0x1f7   :  { %3789 = vmatpush2.bf16.msra.mxu1 %v9154_v44  ;;  %v567_v20 = vld [vmem:[#allocation2 + $0xdf8] sm:$0xff] }
 0x1f8   :  { %3790 = vmatprep.subr.bf16.mxu1 %v9147_v45  ;;  %v9371_v28 = vcombine.high %v563_v18, %v567_v20  ;;  %v427_v34 = vld [vmem:[#allocation2 + $0x998] sm:$0xff]  ;;  %v9370_v43 = vcombine.low %v563_v18, %v567_v20 }
 0x1f9   :  { %3750 = vmatpush2.bf16.msra.mxu0 %v9018_v52  ;;  %v431_v35 = vld [vmem:[#allocation2 + $0x9b8] sm:$0xff] }
 0x1fa   :  { %3751 = vmatprep.subr.bf16.mxu0 %v9011_v53  ;;  %v555_v37 = vld [vmem:[#allocation2 + $0xd98] sm:$0xff]  ;;  %v9235_v44 = vcombine.high %v427_v34, %v431_v35  ;;  %v9234_v53 = vcombine.low %v427_v34, %v431_v35 }
 0x1fb   :  { %3791 = vmatpush2.bf16.msra.mxu1 %v9146_v38  ;;  %v559_v19 = vld [vmem:[#allocation2 + $0xdb8] sm:$0xff] }
 0x1fc   :  { %3792 = vmatprep.subr.bf16.mxu1 %v9139_v54  ;;  %v9363_v36 = vcombine.high %v555_v37, %v559_v19  ;;  %v419_v45 = vld [vmem:[#allocation2 + $0x958] sm:$0xff]  ;;  %v9362_v57 = vcombine.low %v555_v37, %v559_v19 }
 0x1fd   :  { %3752 = vmatpush2.bf16.msra.mxu0 %v9010_v41  ;;  %v423_v46 = vld [vmem:[#allocation2 + $0x978] sm:$0xff] }
 0x1fe   :  { %3753 = vmatprep.subr.bf16.mxu0 %v9003_v0  ;;  %v547_v49 = vld [vmem:[#allocation2 + $0xd58] sm:$0xff]  ;;  %v9227_v58 = vcombine.high %v419_v45, %v423_v46  ;;  %v9226_v7 = vcombine.low %v419_v45, %v423_v46 }
 0x1ff   :  { %3793 = vmatpush2.bf16.msra.mxu1 %v9138_v62  ;;  %v551_v50 = vld [vmem:[#allocation2 + $0xd78] sm:$0xff] }
 0x200   :  { %3794 = vmatprep.subr.bf16.mxu1 %v9131_v29  ;;  %v411_v62 = vld [vmem:[#allocation2 + $0x918] sm:$0xff] }
 0x201   :  { %3754 = vmatpush2.bf16.msra.mxu0 %v9002_v9  ;;  %v415_v0 = vld [vmem:[#allocation2 + $0x938] sm:$0xff]  ;;  %v9354_v9 = vcombine.low %v547_v49, %v551_v50 }
 0x202   :  { %3755 = vmatprep.subr.bf16.mxu0 %v8995_v12  ;;  %v543_v29 = vld [vmem:[#allocation2 + $0xd38] sm:$0xff] }
 0x203   :  { %3795 = vmatpush2.bf16.msra.mxu1 %v9130_v10  ;;  %v9219_v10 = vcombine.high %v411_v62, %v415_v0  ;;  %v407_v16 = vld [vmem:[#allocation2 + $0x8f8] sm:$0xff] }
 0x204   :  { %3796 = vmatprep.subr.bf16.mxu1 %v9123_v13  ;;  %v531_v18 = vld [vmem:[#allocation2 + $0xcd8] sm:$0xff] }
 0x205   :  { %3756 = vmatpush2.bf16.msra.mxu0 %v8994_v21  ;;  %v535_v20 = vld [vmem:[#allocation2 + $0xcf8] sm:$0xff] }
 0x206   :  { %3807 = vmatprep.subr.bf16.mxu0 %v9243_v27  ;;  %v9218_v27 = vcombine.low %v411_v62, %v415_v0  ;;  %v9339_v19 = vcombine.high %v531_v18, %v535_v20 }
 0x207   :  { %3797 = vmatpush2.bf16.msra.mxu1 %v9122_v22 }
 0x208   :  { %3848 = vmatprep.subr.bf16.mxu1 %v9371_v28  ;;  %v3513_v48 = vpop.f32.mrf.mxu0  ;;  %3758 = vmatmul.mubr.bf16.vlgmr.msra.gmra.mxu0 %v10428_v24  ;;  %v9355_v24 = vcombine.high %v547_v49, %v551_v50  ;;  %v9338_v49 = vcombine.low %v531_v18, %v535_v20  ;;  %v499_v18 = vld [vmem:[#allocation2 + $0xbd8] sm:$0xff] }
 0x209   :  { %v3514_v52 = vadd.f32 %v3513_v48, %v10530_v39  ;;  %3808 = vmatpush1.bf16.msra.mxu0 %v9242_v40  ;;  %3839 = vmatprep.mubr.bf16.mxu0 %v10438_v31  ;;  %v395_v40 = vld [vmem:[#allocation2 + $0x898] sm:$0xff] }
 0x20a   :  { %v3554_v38 = vpop.f32.mrf.mxu1  ;;  %3799 = vmatmul.mubr.bf16.vlgmr.msra.gmra.mxu1 %v10432_v26  ;;  %v3515_v54 = vpop.f32.mrf.mxu0  ;;  %3809 = vmatprep.subr.bf16.mxu0 %v9235_v44  ;;  %v539_v26 = vld [vmem:[#allocation2 + $0xd18] sm:$0xff] }
 0x20b   :  { %3849 = vmatpush1.bf16.msra.mxu1 %v9370_v43  ;;  %v10539_v60 = vadd.f32 %v3554_v38, %v3514_v52  ;;  %v3516_v25 = vadd.f32 %v3515_v54, %v10534_v23  ;;  %3880 = vmatprep.mubr.bf16.mxu1 %v10442_v33  ;;  %v9347_v15 = vcombine.high %v539_v26, %v543_v29  ;;  %v403_v33 = vld [vmem:[#allocation2 + $0x8d8] sm:$0xff] }
 0x20c   :  { %v3556_v41 = vpop.f32.mrf.mxu1  ;;  %3850 = vmatprep.subr.bf16.mxu1 %v9363_v36  ;;  %v3517_v39 = vpop.f32.mrf.mxu0  ;;  %v9346_v28 = vcombine.low %v539_v26, %v543_v29  ;;  %v9211_v34 = vcombine.high %v403_v33, %v407_v16  ;;  %v399_v43 = vld [vmem:[#allocation2 + $0x8b8] sm:$0xff]  ;;  %v9210_v48 = vcombine.low %v403_v33, %v407_v16 }
 0x20d   :  { %v3901_v1 = vrot.slane %v10539_v60, 4  ;;  %v10545_v3 = vadd.f32 %v3556_v41, %v3516_v25  ;;  %3810 = vmatpush1.bf16.msra.mxu0 %v9234_v53  ;;  %v523_v44 = vld [vmem:[#allocation2 + $0xc98] sm:$0xff]  ;;  %v9203_v50 = vcombine.high %v395_v40, %v399_v43  ;;  %v9202_v62 = vcombine.low %v395_v40, %v399_v43 }
 0x20e   :  { %v3558_v4 = vpop.f32.mrf.mxu1  ;;  %v3518_v23 = vpop.f32.mrf.mxu0  ;;  %3811 = vmatprep.subr.bf16.mxu0 %v9227_v58  ;;  %v527_v36 = vld [vmem:[#allocation2 + $0xcb8] sm:$0xff] }
 0x20f   :  { %3851 = vmatpush1.bf16.msra.mxu1 %v9362_v57  ;;  %v3902_v12 = vadd.f32 %v3901_v1, %v10539_v60  ;;  %v3907_v31 = vrot.slane %v10545_v3, 4  ;;  %v9331_v53 = vcombine.high %v523_v44, %v527_v36  ;;  %v387_v54 = vld [vmem:[#allocation2 + $0x858] sm:$0xff]  ;;  %v9330_v0 = vcombine.low %v523_v44, %v527_v36 }
 0x210   :  { %v3559_v13 = vpop.f32.mrf.mxu1  ;;  %3852 = vmatprep.subr.bf16.mxu1 %v9355_v24  ;;  %v391_v57 = vld [vmem:[#allocation2 + $0x878] sm:$0xff] }
 0x211   :  { %v3903_v21 = vrot.slane %v3902_v12, 2  ;;  %v3908_v22 = vadd.f32 %v3907_v31, %v10545_v3  ;;  %3812 = vmatpush1.bf16.msra.mxu0 %v9226_v7  ;;  %v515_v58 = vld [vmem:[#allocation2 + $0xc58] sm:$0xff]  ;;  %v9195_v39 = vcombine.high %v387_v54, %v391_v57  ;;  %v9194_v31 = vcombine.low %v387_v54, %v391_v57 }
 0x212   :  { %3813 = vmatprep.subr.bf16.mxu0 %v9219_v10  ;;  %v519_v25 = vld [vmem:[#allocation2 + $0xc78] sm:$0xff] }
 0x213   :  { %3853 = vmatpush1.bf16.msra.mxu1 %v9354_v9  ;;  %v3904_v35 = vadd.f32 %v3903_v21, %v3902_v12  ;;  %v3909_v37 = vrot.slane %v3908_v22, 2  ;;  %v9323_v1 = vcombine.high %v515_v58, %v519_v25  ;;  %v379_v4 = vld [vmem:[#allocation2 + $0x818] sm:$0xff]  ;;  %v9322_v13 = vcombine.low %v515_v58, %v519_v25 }
 0x214   :  { %3854 = vmatprep.subr.bf16.mxu1 %v9347_v15  ;;  %v383_v7 = vld [vmem:[#allocation2 + $0x838] sm:$0xff] }
 0x215   :  { %v3905_v45 = vrot.slane %v3904_v35, 1  ;;  %v3910_v46 = vadd.f32 %v3909_v37, %v3908_v22  ;;  %3814 = vmatpush1.bf16.msra.mxu0 %v9218_v27  ;;  %v507_v23 = vld [vmem:[#allocation2 + $0xc18] sm:$0xff] }
 0x216   :  { %3815 = vmatprep.subr.bf16.mxu0 %v9211_v34  ;;  %v511_v9 = vld [vmem:[#allocation2 + $0xc38] sm:$0xff] }
 0x217   :  { %3855 = vmatpush1.bf16.msra.mxu1 %v9346_v28  ;;  %v3906_v52 = vadd.f32 %v3905_v45, %v3904_v35  ;;  %v3911_v38 = vrot.slane %v3910_v46, 1  ;;  %v9315_v16 = vcombine.high %v507_v23, %v511_v9  ;;  %v503_v20 = vld [vmem:[#allocation2 + $0xbf8] sm:$0xff]  ;;  %v9314_v34 = vcombine.low %v507_v23, %v511_v9 }
 0x218   :  { %3856 = vmatprep.subr.bf16.mxu1 %v9339_v19  ;;  %v627_v21 = vld [vmem:[#allocation2 + $0xfd8] sm:$0xff]  ;;  %v9307_v35 = vcombine.high %v499_v18, %v503_v20 }
 0x219   :  { %v3940_v41 = vmul.f32 0.125, %v3906_v52  ;;  %v3912_v24 = vadd.f32 %v3911_v38, %v3910_v46  ;;  %3816 = vmatpush1.bf16.msra.mxu0 %v9210_v48  ;;  %v631_v22 = vld [vmem:[#allocation2 + $0xff8] sm:$0xff] }
 0x21a   :  { %3817 = vmatprep.subr.bf16.mxu0 %v9203_v50  ;;  %v9435_v40 = vcombine.high %v627_v21, %v631_v22  ;;  %v491_v43 = vld [vmem:[#allocation2 + $0xb98] sm:$0xff]  ;;  %v9434_v50 = vcombine.low %v627_v21, %v631_v22 }
 0x21b   :  { %3857 = vmatpush1.bf16.msra.mxu1 %v9338_v49  ;;  %v10551_v26 = vsub.f32 %v10539_v60, %v3940_v41  ;;  %v3941_v29 = vmul.f32 0.125, %v3912_v24  ;;  %v9187_v60 = vcombine.high %v379_v4, %v383_v7  ;;  %v495_v44 = vld [vmem:[#allocation2 + $0xbb8] sm:$0xff]  ;;  %v9306_v49 = vcombine.low %v499_v18, %v503_v20 }
 0x21c   :  { %3858 = vmatprep.subr.bf16.mxu1 %v9331_v53  ;;  %v619_v36 = vld [vmem:[#allocation2 + $0xf98] sm:$0xff]  ;;  %v9299_v52 = vcombine.high %v491_v43, %v495_v44 }
 0x21d   :  { %v3956_v10 = vmul.f32 %v10551_v26, %v10551_v26  ;;  %v10556_v12 = vsub.f32 %v10545_v3, %v3941_v29  ;;  %3818 = vmatpush1.bf16.msra.mxu0 %v9202_v62  ;;  %v9186_v3 = vcombine.low %v379_v4, %v383_v7  ;;  %v623_v45 = vld [vmem:[#allocation2 + $0xfb8] sm:$0xff] }
 0x21e   :  { %3819 = vmatprep.subr.bf16.mxu0 %v9195_v39  ;;  %v9427_v54 = vcombine.high %v619_v36, %v623_v45  ;;  %v483_v57 = vld [vmem:[#allocation2 + $0xb58] sm:$0xff]  ;;  %v9426_v39 = vcombine.low %v619_v36, %v623_v45 }
 0x21f   :  { %3859 = vmatpush1.bf16.msra.mxu1 %v9330_v0  ;;  %v3974_v15 = vrot.slane %v3956_v10, 4  ;;  %v3957_v33 = vmul.f32 %v10556_v12, %v10556_v12  ;;  %v487_v58 = vld [vmem:[#allocation2 + $0xb78] sm:$0xff]  ;;  %v9298_v0 = vcombine.low %v491_v43, %v495_v44 }
 0x220   :  { %3860 = vmatprep.subr.bf16.mxu1 %v9323_v1  ;;  %v611_v25 = vld [vmem:[#allocation2 + $0xf58] sm:$0xff]  ;;  %v9291_v29 = vcombine.high %v483_v57, %v487_v58 }
 0x221   :  { %v3975_v27 = vadd.f32 %v3974_v15, %v3956_v10  ;;  %v3980_v28 = vrot.slane %v3957_v33, 4  ;;  %3820 = vmatpush1.bf16.msra.mxu0 %v9194_v31  ;;  %v615_v41 = vld [vmem:[#allocation2 + $0xf78] sm:$0xff]  ;;  %v9290_v15 = vcombine.low %v483_v57, %v487_v58  ;;  %v4054_v58 = vrot.slane %v10418_v5, %v10515_v59 }
 0x222   :  { %3821 = vmatprep.subr.bf16.mxu0 %v9187_v60  ;;  %v9419_v7 = vcombine.high %v611_v25, %v615_v41  ;;  %v475_v23 = vld [vmem:[#allocation2 + $0xb18] sm:$0xff] }
 0x223   :  { %3861 = vmatpush1.bf16.msra.mxu1 %v9322_v13  ;;  %v3976_v37 = vrot.slane %v3975_v27, 2  ;;  %v3981_v19 = vadd.f32 %v3980_v28, %v3957_v33  ;;  %v479_v9 = vld [vmem:[#allocation2 + $0xb38] sm:$0xff]  ;;  %v9418_v33 = vcombine.low %v611_v25, %v615_v41 }
 0x224   :  { %3862 = vmatprep.subr.bf16.mxu1 %v9315_v16  ;;  %v603_v10 = vld [vmem:[#allocation2 + $0xf18] sm:$0xff]  ;;  %v9283_v16 = vcombine.high %v475_v23, %v479_v9 }
 0x225   :  { %v3977_v46 = vadd.f32 %v3976_v37, %v3975_v27  ;;  %v3982_v48 = vrot.slane %v3981_v19, 2  ;;  %3822 = vmatpush1.bf16.msra.mxu0 %v9186_v3  ;;  %v607_v31 = vld [vmem:[#allocation2 + $0xf38] sm:$0xff]  ;;  %v9282_v3 = vcombine.low %v475_v23, %v479_v9 }
 0x226   :  { %3823 = vmatprep.subr.bf16.mxu0 %v9307_v35  ;;  %v9411_v20 = vcombine.high %v603_v10, %v607_v31  ;;  %v467_v21 = vld [vmem:[#allocation2 + $0xad8] sm:$0xff] }
 0x227   :  { %3863 = vmatpush1.bf16.msra.mxu1 %v9314_v34  ;;  %v3978_v38 = vrot.slane %v3977_v46, 1  ;;  %v3983_v53 = vadd.f32 %v3982_v48, %v3981_v19  ;;  %v471_v22 = vld [vmem:[#allocation2 + $0xaf8] sm:$0xff]  ;;  %v9410_v34 = vcombine.low %v603_v10, %v607_v31  ;;  %v4107_v31 = vrot.slane %v10420_v8, %v10521_v63 }
 0x228   :  { %3864 = vmatprep.subr.bf16.mxu1 %v9435_v40  ;;  %v595_v27 = vld [vmem:[#allocation2 + $0xed8] sm:$0xff]  ;;  %v9275_v35 = vcombine.high %v467_v21, %v471_v22  ;;  %v9274_v36 = vcombine.low %v467_v21, %v471_v22 }
 0x229   :  { %v3979_v24 = vadd.f32 %v3978_v38, %v3977_v46  ;;  %v3984_v62 = vrot.slane %v3983_v53, 1  ;;  %3824 = vmatpush2.bf16.msra.mxu0 %v9306_v49  ;;  %v599_v28 = vld [vmem:[#allocation2 + $0xef8] sm:$0xff] }
 0x22a   :  { %3825 = vmatprep.subr.bf16.mxu0 %v9299_v52  ;;  %v9403_v37 = vcombine.high %v595_v27, %v599_v28  ;;  %v459_v19 = vld [vmem:[#allocation2 + $0xa98] sm:$0xff]  ;;  %v9402_v45 = vcombine.low %v595_v27, %v599_v28 }
 0x22b   :  { %3865 = vmatpush2.bf16.msra.mxu1 %v9434_v50  ;;  %v4012_v1 = vmul.f32 0.125, %v3979_v24  ;;  %v3985_v4 = vadd.f32 %v3984_v62, %v3983_v53  ;;  %v463_v40 = vld [vmem:[#allocation2 + $0xab8] sm:$0xff] }
 0x22c   :  { %3866 = vmatprep.subr.bf16.mxu1 %v9427_v54  ;;  %v587_v43 = vld [vmem:[#allocation2 + $0xe98] sm:$0xff]  ;;  %v9267_v46 = vcombine.high %v459_v19, %v463_v40  ;;  %v9266_v53 = vcombine.low %v459_v19, %v463_v40 }
 0x22d   :  { %v4020_v13 = vadd.f32 1e-05, %v4012_v1  ;;  %v4013_v60 = vmul.f32 0.125, %v3985_v4  ;;  %3826 = vmatpush2.bf16.msra.mxu0 %v9298_v0  ;;  %v591_v44 = vld [vmem:[#allocation2 + $0xeb8] sm:$0xff]  ;;  %v4058_v4 = vrot.slane %v10418_v5, %v10521_v63 }
 0x22e   :  { %3827 = vmatprep.subr.bf16.mxu0 %v9291_v29  ;;  %v9395_v48 = vcombine.high %v587_v43, %v591_v44  ;;  %v451_v49 = vld [vmem:[#allocation2 + $0xa58] sm:$0xff]  ;;  %v9394_v54 = vcombine.low %v587_v43, %v591_v44  ;;  %v4103_v29 = vrot.slane %v10420_v8, %v10515_v59 }
 0x22f   :  { %3867 = vmatpush2.bf16.msra.mxu1 %v9426_v39  ;;  %10115 = vrsqrt.f32 %v4020_v13  ;;  %v4021_v18 = vadd.f32 1e-05, %v4013_v60  ;;  %v455_v50 = vld [vmem:[#allocation2 + $0xa78] sm:$0xff] }
 0x230   :  { %3868 = vmatprep.subr.bf16.mxu1 %v9419_v7  ;;  %v579_v52 = vld [vmem:[#allocation2 + $0xe58] sm:$0xff]  ;;  %v9259_v57 = vcombine.high %v451_v49, %v455_v50  ;;  %v9258_v7 = vcombine.low %v451_v49, %v455_v50 }
 0x231   :  { %10117 = vrsqrt.f32 %v4021_v18  ;;  %3828 = vmatpush2.bf16.msra.mxu0 %v9290_v15  ;;  %v583_v38 = vld [vmem:[#allocation2 + $0xe78] sm:$0xff]  ;;  %v10573_v18 = vsub.s32 4, %v10458_v42 }
 0x232   :  { %3829 = vmatprep.subr.bf16.mxu0 %v9283_v16  ;;  %v9387_v25 = vcombine.high %v579_v52, %v583_v38  ;;  %v443_v41 = vld [vmem:[#allocation2 + $0xa18] sm:$0xff]  ;;  %v9386_v9 = vcombine.low %v579_v52, %v583_v38 }
 0x233   :  { %3869 = vmatpush2.bf16.msra.mxu1 %v9418_v33  ;;  %v447_v24 = vld [vmem:[#allocation2 + $0xa38] sm:$0xff]  ;;  %v652_v28 = vrot.slane %v10416_v2, %v10573_v18 }
 0x234   :  { %3870 = vmatprep.subr.bf16.mxu1 %v9411_v20  ;;  %v571_v0 = vld [vmem:[#allocation2 + $0xe18] sm:$0xff]  ;;  %v9251_v10 = vcombine.high %v443_v41, %v447_v24  ;;  %v9250_v16 = vcombine.low %v443_v41, %v447_v24 }
 0x235   :  { %3830 = vmatpush2.bf16.msra.mxu0 %v9282_v3  ;;  %v575_v39 = vld [vmem:[#allocation2 + $0xe38] sm:$0xff] }
 0x236   :  { %3831 = vmatprep.subr.bf16.mxu0 %v9275_v35  ;;  %v9379_v15 = vcombine.high %v571_v0, %v575_v39  ;;  %v9378_v20 = vcombine.low %v571_v0, %v575_v39 }
 0x237   :  { %3871 = vmatpush2.bf16.msra.mxu1 %v9410_v34 }
 0x238   :  { %3872 = vmatprep.subr.bf16.mxu1 %v9403_v37 }
 0x239   :  { %3832 = vmatpush2.bf16.msra.mxu0 %v9274_v36 }
 0x23a   :  { %3833 = vmatprep.subr.bf16.mxu0 %v9267_v46 }
 0x23b   :  { %3873 = vmatpush2.bf16.msra.mxu1 %v9402_v45 }
 0x23c   :  { %3874 = vmatprep.subr.bf16.mxu1 %v9395_v48  ;;  %v10116_v62 = vpop.eup %10115 }
 0x23d   :  { %v4036_v1 = vmul.f32 %v10116_v62, %v10551_v26  ;;  %3834 = vmatpush2.bf16.msra.mxu0 %v9266_v53 }
 0x23e   :  { %v10118_v23 = vpop.eup %10117  ;;  %3835 = vmatprep.subr.bf16.mxu0 %v9259_v57 }
 0x23f   :  { %3875 = vmatpush2.bf16.msra.mxu1 %v9394_v54  ;;  %v4085_v13 = vmul.f32 %v4054_v58, %v4036_v1  ;;  %v4037_v60 = vmul.f32 %v10118_v23, %v10556_v12  ;;  %v10579_v12 = vsub.s32 5, %v10458_v42 }
 0x240   :  { %3876 = vmatprep.subr.bf16.mxu1 %v9387_v25 }
 0x241   :  { %v10570_v33 = vadd.f32 %v4103_v29, %v4085_v13  ;;  %v4086_v26 = vmul.f32 %v4058_v4, %v4037_v60  ;;  %3836 = vmatpush2.bf16.msra.mxu0 %v9258_v7  ;;  %v656_v3 = vrot.slane %v10416_v2, %v10579_v12 }
 0x242   :  { %3837 = vmatprep.subr.bf16.mxu0 %v9251_v10 }
 0x243   :  { %3877 = vmatpush2.bf16.msra.mxu1 %v9386_v9  ;;  %v4142_v21 = vmax.f32 %v10570_v33, 0.0  ;;  %v10576_v22 = vadd.f32 %v4107_v31, %v4086_v26 }
 0x244   :  { %3878 = vmatprep.subr.bf16.mxu1 %v9379_v15 }
 0x245   :  { %v4143_v27 = vmax.f32 %v10576_v22, 0.0  ;;  %3838 = vmatpush2.bf16.msra.mxu0 %v9250_v16 }
 0x247   :  { %3879 = vmatpush2.bf16.msra.mxu1 %v9378_v20 }
 0x248   :  { %v3595_v34 = vpop.f32.mrf.mxu0  ;;  %3840 = vmatmul.mubr.bf16.vlgmr.msra.gmra.mxu0 %v10436_v30 }
 0x249   :  { %v3596_v35 = vadd.f32 %v3595_v34, %v652_v28 }
 0x24a   :  { %v3636_v37 = vpop.f32.mrf.mxu1  ;;  %3881 = vmatmul.mubr.bf16.vlgmr.msra.gmra.mxu1 %v10440_v32  ;;  %v3597_v19 = vpop.f32.mrf.mxu0 }
 0x24b   :  { %v3637_v40 = vadd.f32 %v3636_v37, %v3596_v35  ;;  %v3598_v43 = vadd.f32 %v3597_v19, %v656_v3 }
 0x24c   :  { %v3638_v44 = vpop.f32.mrf.mxu1  ;;  %v3599_v36 = vpop.f32.mrf.mxu0 }
 0x24d   :  { %v3639_v45 = vadd.f32 %v3638_v44, %v3598_v43 }
 0x24e   :  { %v3640_v46 = vpop.f32.mrf.mxu1  ;;  %v3600_v48 = vpop.f32.mrf.mxu0 }
 0x250   :  { %v3641_v49 = vpop.f32.mrf.mxu1 }
 0x288   :  { %v3677_v50 = vpop.f32.mrf.mxu0 }
 0x289   :  { %v3678_v52 = vadd.f32 %v3677_v50, %v3637_v40 }
 0x28a   :  { %v3718_v38 = vpop.f32.mrf.mxu1  ;;  %v3679_v53 = vpop.f32.mrf.mxu0 }
 0x28b   :  { %v3719_v54 = vadd.f32 %v3718_v38, %v3678_v52  ;;  %v3680_v57 = vadd.f32 %v3679_v53, %v3639_v45  ;;  %v4062_v53 = vrot.slane %v10418_v5, %v10573_v18 }
 0x28c   :  { %v3720_v30 = vpop.f32.mrf.mxu1  ;;  %v3681_v58 = vpop.f32.mrf.mxu0 }
 0x28d   :  { %v3913_v25 = vrot.slane %v3719_v54, 4  ;;  %v3721_v41 = vadd.f32 %v3720_v30, %v3680_v57  ;;  %v4111_v57 = vrot.slane %v10420_v8, %v10573_v18  ;;  %v4066_v58 = vrot.slane %v10418_v5, %v10579_v12 }
 0x28e   :  { %v3722_v32 = vpop.f32.mrf.mxu1  ;;  %v3682_v24 = vpop.f32.mrf.mxu0 }
 0x28f   :  { %v3914_v62 = vadd.f32 %v3913_v25, %v3719_v54  ;;  %v3919_v0 = vrot.slane %v3721_v41, 4 }
 0x290   :  { %v3723_v39 = vpop.f32.mrf.mxu1 }
 0x291   :  { %v3915_v29 = vrot.slane %v3914_v62, 2  ;;  %v3920_v1 = vadd.f32 %v3919_v0, %v3721_v41 }
 0x293   :  { %v3916_v4 = vadd.f32 %v3915_v29, %v3914_v62  ;;  %v3921_v7 = vrot.slane %v3920_v1, 2 }
 0x295   :  { %v3917_v23 = vrot.slane %v3916_v4, 1  ;;  %v3922_v9 = vadd.f32 %v3921_v7, %v3920_v1 }
 0x297   :  { %v3918_v10 = vadd.f32 %v3917_v23, %v3916_v4  ;;  %v3923_v31 = vrot.slane %v3922_v9, 1 }
 0x299   :  { %v3942_v13 = vmul.f32 0.125, %v3918_v10  ;;  %v3924_v60 = vadd.f32 %v3923_v31, %v3922_v9 }
 0x29b   :  { %v3950_v15 = vsub.f32 %v3719_v54, %v3942_v13  ;;  %v3943_v26 = vmul.f32 0.125, %v3924_v60 }
 0x29d   :  { %v3958_v16 = vmul.f32 %v3950_v15, %v3950_v15  ;;  %v3951_v20 = vsub.f32 %v3721_v41, %v3943_v26  ;;  %v4115_v41 = vrot.slane %v10420_v8, %v10579_v12  ;;  %v10606_v26 = vsub.s32 7, %v10458_v42 }
 0x29f   :  { %v3986_v28 = vrot.slane %v3958_v16, 4  ;;  %v3959_v3 = vmul.f32 %v3951_v20, %v3951_v20 }
 0x2a1   :  { %v3987_v34 = vadd.f32 %v3986_v28, %v3958_v16  ;;  %v3992_v35 = vrot.slane %v3959_v3, 4 }
 0x2a3   :  { %v3988_v37 = vrot.slane %v3987_v34, 2  ;;  %v3993_v19 = vadd.f32 %v3992_v35, %v3959_v3 }
 0x2a5   :  { %v3989_v40 = vadd.f32 %v3988_v37, %v3987_v34  ;;  %v3994_v43 = vrot.slane %v3993_v19, 2 }
 0x2a7   :  { %v3990_v44 = vrot.slane %v3989_v40, 1  ;;  %v3995_v36 = vadd.f32 %v3994_v43, %v3993_v19 }
 0x2a9   :  { %v3991_v45 = vadd.f32 %v3990_v44, %v3989_v40  ;;  %v3996_v46 = vrot.slane %v3995_v36, 1 }
 0x2ab   :  { %v4014_v48 = vmul.f32 0.125, %v3991_v45  ;;  %v3997_v49 = vadd.f32 %v3996_v46, %v3995_v36 }
 0x2ad   :  { %v4022_v50 = vadd.f32 1e-05, %v4014_v48  ;;  %v4015_v52 = vmul.f32 0.125, %v3997_v49 }
 0x2af   :  { %10119 = vrsqrt.f32 %v4022_v50  ;;  %v4023_v38 = vadd.f32 1e-05, %v4015_v52 }
 0x2b1   :  { %10121 = vrsqrt.f32 %v4023_v38 }
 0x2bc   :  { %v10120_v54 = vpop.eup %10119 }
 0x2bd   :  { %v4038_v30 = vmul.f32 %v10120_v54, %v3950_v15  ;;  %v10603_v15 = vsub.s32 6, %v10458_v42 }
 0x2be   :  { %v10122_v25 = vpop.eup %10121 }
 0x2bf   :  { %v4087_v32 = vmul.f32 %v4062_v53, %v4038_v30  ;;  %v4039_v24 = vmul.f32 %v10122_v25, %v3951_v20  ;;  %v660_v16 = vrot.slane %v10416_v2, %v10603_v15  ;;  %v664_v20 = vrot.slane %v10416_v2, %v10606_v26 }
 0x2c1   :  { %v10596_v62 = vadd.f32 %v4111_v57, %v4087_v32  ;;  %v4088_v0 = vmul.f32 %v4066_v58, %v4039_v24 }
 0x2c3   :  { %v4144_v39 = vmax.f32 %v10596_v62, 0.0  ;;  %v10599_v29 = vadd.f32 %v4115_v41, %v4088_v0 }
 0x2c5   :  { %v4145_v1 = vmax.f32 %v10599_v29, 0.0 }
 0x2c8   :  { %v3759_v4 = vpop.f32.mrf.mxu0 }
 0x2c9   :  { %v3760_v28 = vadd.f32 %v3759_v4, %v660_v16 }
 0x2ca   :  { %v3800_v7 = vpop.f32.mrf.mxu1  ;;  %v3761_v23 = vpop.f32.mrf.mxu0 }
 0x2cb   :  { %v3762_v3 = vadd.f32 %v3761_v23, %v664_v20  ;;  %v3801_v34 = vadd.f32 %v3800_v7, %v3760_v28 }
 0x2cc   :  { %v3802_v9 = vpop.f32.mrf.mxu1  ;;  %v3763_v10 = vpop.f32.mrf.mxu0 }
 0x2cd   :  { %v3803_v37 = vadd.f32 %v3802_v9, %v3762_v3 }
 0x2ce   :  { %v3804_v31 = vpop.f32.mrf.mxu1  ;;  %v3764_v13 = vpop.f32.mrf.mxu0 }
 0x2d0   :  { %v3805_v60 = vpop.f32.mrf.mxu1 }
 0x308   :  { %v3841_v35 = vpop.f32.mrf.mxu0 }
 0x309   :  { %v3842_v19 = vadd.f32 %v3841_v35, %v3801_v34 }
 0x30a   :  { %v3882_v40 = vpop.f32.mrf.mxu1  ;;  %v3843_v43 = vpop.f32.mrf.mxu0 }
 0x30b   :  { %v3883_v44 = vadd.f32 %v3882_v40, %v3842_v19  ;;  %v3844_v36 = vadd.f32 %v3843_v43, %v3803_v37 }
 0x30c   :  { %v3884_v45 = vpop.f32.mrf.mxu1  ;;  %v3845_v46 = vpop.f32.mrf.mxu0 }
 0x30d   :  { %v3925_v42 = vrot.slane %v3883_v44, 4  ;;  %v3885_v48 = vadd.f32 %v3884_v45, %v3844_v36  ;;  %v4070_v46 = vrot.slane %v10418_v5, %v10603_v15 }
 0x30e   :  { %v3886_v49 = vpop.f32.mrf.mxu1  ;;  %v3846_v50 = vpop.f32.mrf.mxu0 }
 0x30f   :  { %v3926_v52 = vadd.f32 %v3925_v42, %v3883_v44  ;;  %v3931_v38 = vrot.slane %v3885_v48, 4  ;;  %v4074_v50 = vrot.slane %v10418_v5, %v10606_v26 }
 0x310   :  { %v3887_v53 = vpop.f32.mrf.mxu1 }
 0x311   :  { %v3927_v2 = vrot.slane %v3926_v52, 2  ;;  %v3932_v54 = vadd.f32 %v3931_v38, %v3885_v48  ;;  %v4123_v38 = vrot.slane %v10420_v8, %v10606_v26 }
 0x313   :  { %v3928_v57 = vadd.f32 %v3927_v2, %v3926_v52  ;;  %v3933_v30 = vrot.slane %v3932_v54, 2 }
 0x315   :  { %v3929_v58 = vrot.slane %v3928_v57, 1  ;;  %v3934_v25 = vadd.f32 %v3933_v30, %v3932_v54 }
 0x317   :  { %v3930_v41 = vadd.f32 %v3929_v58, %v3928_v57  ;;  %v3935_v32 = vrot.slane %v3934_v25, 1 }
 0x319   :  { %v3944_v24 = vmul.f32 0.125, %v3930_v41  ;;  %v3936_v0 = vadd.f32 %v3935_v32, %v3934_v25 }
 0x31b   :  { %v3952_v4 = vsub.f32 %v3883_v44, %v3944_v24  ;;  %v3945_v7 = vmul.f32 0.125, %v3936_v0 }
 0x31d   :  { %v3960_v23 = vmul.f32 %v3952_v4, %v3952_v4  ;;  %v3953_v9 = vsub.f32 %v3885_v48, %v3945_v7  ;;  %v4119_v48 = vrot.slane %v10420_v8, %v10603_v15 }
 0x31f   :  { %v3998_v10 = vrot.slane %v3960_v23, 4  ;;  %v3961_v31 = vmul.f32 %v3953_v9, %v3953_v9 }
 0x321   :  { %v3999_v13 = vadd.f32 %v3998_v10, %v3960_v23  ;;  %v4004_v60 = vrot.slane %v3961_v31, 4 }
 0x323   :  { %v4000_v16 = vrot.slane %v3999_v13, 2  ;;  %v4005_v20 = vadd.f32 %v4004_v60, %v3961_v31 }
 0x325   :  { %v4001_v28 = vadd.f32 %v4000_v16, %v3999_v13  ;;  %v4006_v3 = vrot.slane %v4005_v20, 2 }
 0x327   :  { %v4002_v34 = vrot.slane %v4001_v28, 1  ;;  %v4007_v35 = vadd.f32 %v4006_v3, %v4005_v20 }
 0x329   :  { %v4003_v37 = vadd.f32 %v4002_v34, %v4001_v28  ;;  %v4008_v19 = vrot.slane %v4007_v35, 1 }
 0x32b   :  { %v4016_v40 = vmul.f32 0.125, %v4003_v37  ;;  %v4009_v43 = vadd.f32 %v4008_v19, %v4007_v35 }
 0x32d   :  { %v4024_v36 = vadd.f32 1e-05, %v4016_v40  ;;  %v4017_v45 = vmul.f32 0.125, %v4009_v43 }
 0x32f   :  { %10123 = vrsqrt.f32 %v4024_v36  ;;  %v4025_v44 = vadd.f32 1e-05, %v4017_v45 }
 0x331   :  { %10125 = vrsqrt.f32 %v4025_v44 }
 0x33c   :  { %v10124_v42 = vpop.eup %10123 }
 0x33d   :  { %v4040_v49 = vmul.f32 %v10124_v42, %v3952_v4 }
 0x33e   :  { %v10126_v52 = vpop.eup %10125 }
 0x33f   :  { %v4089_v53 = vmul.f32 %v4070_v46, %v4040_v49  ;;  %v4041_v2 = vmul.f32 %v10126_v52, %v3953_v9 }
 0x341   :  { %v10620_v54 = vadd.f32 %v4119_v48, %v4089_v53  ;;  %v4090_v57 = vmul.f32 %v4074_v50, %v4041_v2 }
 0x343   :  { %v4146_v30 = vmax.f32 %v10620_v54, 0.0  ;;  %v10623_v58 = vadd.f32 %v4123_v38, %v4090_v57 }
 0x345   :  { %v4147_v25 = vmax.f32 %v10623_v58, 0.0 }
 0x346   :  { %10353 = dma.done.wait [#allocation5 + $0x1], 65536 }
 0x347   :  { %10354 = vsyncadd [#allocation5 + $0x1], 4294901760  ;;  %v10629_v5 = vpack.c.bf16 %v4141_v6, %v4141_v6  ;;  %v10634_v8 = vpack.c.bf16 %v4143_v27, %v4143_v27  ;;  %v4226_v41 = vld [vmem:[#allocation3 + $0x1c0] sm:$0xff]  ;;  %v4215_v62 = vld [vmem:[#allocation3 + $0x168] sm:$0xff]  ;;  %s10364_s3 = smov [#allocation4]  }
 0x348   :  { %v4230_v32 = vld [vmem:[#allocation3 + $0x1e0] sm:$0xff]  ;;  %s4158_s4 = sshll.u32 %s10364_s3, 4  ;;  %s4159_s4 = int_to_ptr.vmem [resolvable:$true] %s4158_s4 }
 0x349   :  { %7315 = vmatprep.mubr.bf16.mxu0 %v10629_v5  ;;  %7356 = vmatprep.mubr.bf16.mxu1 %v10634_v8  ;;  %v4354_v24 = vld [vmem:[#allocation3 + $0x5c0] sm:$0xff]  ;;  %v9493_v0 = vcombine.high %v4226_v41, %v4230_v32  ;;  %v9492_v7 = vcombine.low %v4226_v41, %v4230_v32  ;;  %s10315_s20 = scalar_lea.vmem %s4159_s4, 8192  ;;  %p10320_p12 = scmp.lt.s32.totalorder %s4159_s4, %s4159_s4 }
 0x34a   :  { %v4358_v4 = vld [vmem:[#allocation3 + $0x5e0] sm:$0xff]  ;;  %p10316_p11 = scmp.ne.s32.totalorder %s4159_s4, %s10315_s20  ;;  %p10321_p13 = scmp.lt.s32.totalorder %s10315_s20, %s10315_s20 }
 0x34b   :  { %v4218_v23 = vld [vmem:[#allocation3 + $0x180] sm:$0xff]  ;;  %v9621_v9 = vcombine.high %v4354_v24, %v4358_v4  ;;  %v9620_v6 = vcombine.low %v4354_v24, %v4358_v4  ;;  %7283 = vmatprep.subr.bf16.mxu0 %v9493_v0 }
 0x34c   :  { %v4222_v61 = vld [vmem:[#allocation3 + $0x1a0] sm:$0xff]  ;;  %7284 = vmatpush1.bf16.msra.mxu0 %v9492_v7  ;;  %p10322_p0 = por %p10321_p13, %p10320_p12 }
 0x34d   :  { %v9485_v10 = vcombine.high %v4218_v23, %v4222_v61  ;;  %v4346_v31 = vld [vmem:[#allocation3 + $0x580] sm:$0xff]  ;;  %7324 = vmatprep.subr.bf16.mxu1 %v9621_v9  ;;  %v9484_v28 = vcombine.low %v4218_v23, %v4222_v61 }
 0x34e   :  { %v4350_v22 = vld [vmem:[#allocation3 + $0x5a0] sm:$0xff]  ;;  %7325 = vmatpush1.bf16.msra.mxu1 %v9620_v6  ;;  %p10323_p1 = pnand %p10322_p0, %p10316_p11 }
 0x34f   :  { %v4210_v13 = vld [vmem:[#allocation3 + $0x140] sm:$0xff]  ;;  %v9613_v27 = vcombine.high %v4346_v31, %v4350_v22  ;;  %7285 = vmatprep.subr.bf16.mxu0 %v9485_v10  ;;  %v9612_v3 = vcombine.low %v4346_v31, %v4350_v22 }
 0x350   :  { %v4214_v60 = vld [vmem:[#allocation3 + $0x160] sm:$0xff]  ;;  %7286 = vmatpush1.bf16.msra.mxu0 %v9484_v28 }
 0x351   :  { %v4338_v16 = vld [vmem:[#allocation3 + $0x540] sm:$0xff]  ;;  %v9477_v34 = vcombine.high %v4210_v13, %v4214_v60  ;;  %7326 = vmatprep.subr.bf16.mxu1 %v9613_v27  ;;  %v9476_v36 = vcombine.low %v4210_v13, %v4214_v60 }
 0x352   :  { %v4342_v20 = vld [vmem:[#allocation3 + $0x560] sm:$0xff]  ;;  %7327 = vmatpush1.bf16.msra.mxu1 %v9612_v3 }
 0x353   :  { %v9605_v35 = vcombine.high %v4338_v16, %v4342_v20  ;;  %v4202_v37 = vld [vmem:[#allocation3 + $0x100] sm:$0xff]  ;;  %7287 = vmatprep.subr.bf16.mxu0 %v9477_v34  ;;  %v9604_v45 = vcombine.low %v4338_v16, %v4342_v20 }
 0x354   :  { %v4206_v19 = vld [vmem:[#allocation3 + $0x120] sm:$0xff]  ;;  %7288 = vmatpush1.bf16.msra.mxu0 %v9476_v36 }
 0x355   :  { %v4330_v40 = vld [vmem:[#allocation3 + $0x500] sm:$0xff]  ;;  %v9469_v44 = vcombine.high %v4202_v37, %v4206_v19  ;;  %7328 = vmatprep.subr.bf16.mxu1 %v9605_v35  ;;  %v9468_v52 = vcombine.low %v4202_v37, %v4206_v19 }
 0x356   :  { %v4334_v43 = vld [vmem:[#allocation3 + $0x520] sm:$0xff]  ;;  %7329 = vmatpush1.bf16.msra.mxu1 %v9604_v45 }
 0x357   :  { %v9597_v46 = vcombine.high %v4330_v40, %v4334_v43  ;;  %v4194_v42 = vld [vmem:[#allocation3 + $0xc0] sm:$0xff]  ;;  %7289 = vmatprep.subr.bf16.mxu0 %v9469_v44  ;;  %v9596_v38 = vcombine.low %v4330_v40, %v4334_v43 }
 0x358   :  { %v4198_v48 = vld [vmem:[#allocation3 + $0xe0] sm:$0xff]  ;;  %7290 = vmatpush1.bf16.msra.mxu0 %v9468_v52 }
 0x359   :  { %v4322_v49 = vld [vmem:[#allocation3 + $0x4c0] sm:$0xff]  ;;  %v9461_v53 = vcombine.high %v4194_v42, %v4198_v48  ;;  %7330 = vmatprep.subr.bf16.mxu1 %v9597_v46  ;;  %v9460_v0 = vcombine.low %v4194_v42, %v4198_v48 }
 0x35a   :  { %v4326_v50 = vld [vmem:[#allocation3 + $0x4e0] sm:$0xff]  ;;  %7331 = vmatpush1.bf16.msra.mxu1 %v9596_v38 }
 0x35b   :  { %v9589_v2 = vcombine.high %v4322_v49, %v4326_v50  ;;  %v4186_v57 = vld [vmem:[#allocation3 + $0x80] sm:$0xff]  ;;  %7291 = vmatprep.subr.bf16.mxu0 %v9461_v53  ;;  %v9588_v4 = vcombine.low %v4322_v49, %v4326_v50 }
 0x35c   :  { %v4190_v41 = vld [vmem:[#allocation3 + $0xa0] sm:$0xff]  ;;  %7292 = vmatpush1.bf16.msra.mxu0 %v9460_v0 }
 0x35d   :  { %v4314_v32 = vld [vmem:[#allocation3 + $0x480] sm:$0xff]  ;;  %v9453_v7 = vcombine.high %v4186_v57, %v4190_v41  ;;  %7332 = vmatprep.subr.bf16.mxu1 %v9589_v2  ;;  %v9452_v31 = vcombine.low %v4186_v57, %v4190_v41 }
 0x35e   :  { %v4318_v24 = vld [vmem:[#allocation3 + $0x4a0] sm:$0xff]  ;;  %7333 = vmatpush1.bf16.msra.mxu1 %v9588_v4 }
 0x35f   :  { %v9581_v23 = vcombine.high %v4314_v32, %v4318_v24  ;;  %v4178_v61 = vld [vmem:[#allocation3 + $0x40] sm:$0xff]  ;;  %7293 = vmatprep.subr.bf16.mxu0 %v9453_v7  ;;  %v9580_v22 = vcombine.low %v4314_v32, %v4318_v24 }
 0x360   :  { %v4182_v9 = vld [vmem:[#allocation3 + $0x60] sm:$0xff]  ;;  %7294 = vmatpush1.bf16.msra.mxu0 %v9452_v31 }
 0x361   :  { %v4306_v6 = vld [vmem:[#allocation3 + $0x440] sm:$0xff]  ;;  %v9445_v13 = vcombine.high %v4178_v61, %v4182_v9  ;;  %7334 = vmatprep.subr.bf16.mxu1 %v9581_v23  ;;  %v9444_v3 = vcombine.low %v4178_v61, %v4182_v9 }
 0x362   :  { %v4310_v10 = vld [vmem:[#allocation3 + $0x460] sm:$0xff]  ;;  %7335 = vmatpush1.bf16.msra.mxu1 %v9580_v22 }
 0x363   :  { %v9573_v27 = vcombine.high %v4306_v6, %v4310_v10  ;;  %v4170_v60 = vld [vmem:[#allocation3] sm:$0xff]  ;;  %7295 = vmatprep.subr.bf16.mxu0 %v9445_v13  ;;  %v9572_v34 = vcombine.low %v4306_v6, %v4310_v10 }
 0x364   :  { %v4174_v16 = vld [vmem:[#allocation3 + $0x20] sm:$0xff]  ;;  %7296 = vmatpush1.bf16.msra.mxu0 %v9444_v3 }
 0x365   :  { %v4298_v20 = vld [vmem:[#allocation3 + $0x400] sm:$0xff]  ;;  %v9437_v35 = vcombine.high %v4170_v60, %v4174_v16  ;;  %7336 = vmatprep.subr.bf16.mxu1 %v9573_v27  ;;  %v9436_v45 = vcombine.low %v4170_v60, %v4174_v16 }
 0x366   :  { %v4302_v28 = vld [vmem:[#allocation3 + $0x420] sm:$0xff]  ;;  %7337 = vmatpush1.bf16.msra.mxu1 %v9572_v34 }
 0x367   :  { %v9565_v37 = vcombine.high %v4298_v20, %v4302_v28  ;;  %v4290_v19 = vld [vmem:[#allocation3 + $0x3c0] sm:$0xff]  ;;  %7297 = vmatprep.subr.bf16.mxu0 %v9437_v35  ;;  %v9564_v44 = vcombine.low %v4298_v20, %v4302_v28 }
 0x368   :  { %v4294_v40 = vld [vmem:[#allocation3 + $0x3e0] sm:$0xff]  ;;  %7298 = vmatpush1.bf16.msra.mxu0 %v9436_v45 }
 0x369   :  { %v4418_v43 = vld [vmem:[#allocation3 + $0x7c0] sm:$0xff]  ;;  %v9557_v46 = vcombine.high %v4290_v19, %v4294_v40  ;;  %7338 = vmatprep.subr.bf16.mxu1 %v9565_v37  ;;  %v9556_v38 = vcombine.low %v4290_v19, %v4294_v40 }
 0x36a   :  { %v4422_v36 = vld [vmem:[#allocation3 + $0x7e0] sm:$0xff]  ;;  %7339 = vmatpush1.bf16.msra.mxu1 %v9564_v44 }
 0x36b   :  { %v9685_v42 = vcombine.high %v4418_v43, %v4422_v36  ;;  %v4282_v48 = vld [vmem:[#allocation3 + $0x380] sm:$0xff]  ;;  %7299 = vmatprep.subr.bf16.mxu0 %v9557_v46  ;;  %v9684_v53 = vcombine.low %v4418_v43, %v4422_v36 }
 0x36c   :  { %v4286_v49 = vld [vmem:[#allocation3 + $0x3a0] sm:$0xff]  ;;  %7300 = vmatpush2.bf16.msra.mxu0 %v9556_v38 }
 0x36d   :  { %v4410_v50 = vld [vmem:[#allocation3 + $0x780] sm:$0xff]  ;;  %v9549_v2 = vcombine.high %v4282_v48, %v4286_v49  ;;  %7340 = vmatprep.subr.bf16.mxu1 %v9685_v42  ;;  %v9548_v4 = vcombine.low %v4282_v48, %v4286_v49 }
 0x36e   :  { %v4414_v52 = vld [vmem:[#allocation3 + $0x7a0] sm:$0xff]  ;;  %7341 = vmatpush2.bf16.msra.mxu1 %v9684_v53 }
 0x36f   :  { %v9677_v57 = vcombine.high %v4410_v50, %v4414_v52  ;;  %v4274_v41 = vld [vmem:[#allocation3 + $0x340] sm:$0xff]  ;;  %7301 = vmatprep.subr.bf16.mxu0 %v9549_v2  ;;  %v9676_v7 = vcombine.low %v4410_v50, %v4414_v52 }
 0x370   :  { %v4278_v32 = vld [vmem:[#allocation3 + $0x360] sm:$0xff]  ;;  %7302 = vmatpush2.bf16.msra.mxu0 %v9548_v4 }
 0x371   :  { %v4402_v24 = vld [vmem:[#allocation3 + $0x740] sm:$0xff]  ;;  %v9541_v23 = vcombine.high %v4274_v41, %v4278_v32  ;;  %7342 = vmatprep.subr.bf16.mxu1 %v9677_v57  ;;  %v9540_v22 = vcombine.low %v4274_v41, %v4278_v32 }
 0x372   :  { %v4406_v0 = vld [vmem:[#allocation3 + $0x760] sm:$0xff]  ;;  %7343 = vmatpush2.bf16.msra.mxu1 %v9676_v7 }
 0x373   :  { %v9669_v61 = vcombine.high %v4402_v24, %v4406_v0  ;;  %v4266_v9 = vld [vmem:[#allocation3 + $0x300] sm:$0xff]  ;;  %7303 = vmatprep.subr.bf16.mxu0 %v9541_v23  ;;  %v9668_v13 = vcombine.low %v4402_v24, %v4406_v0 }
 0x374   :  { %v4270_v6 = vld [vmem:[#allocation3 + $0x320] sm:$0xff]  ;;  %7304 = vmatpush2.bf16.msra.mxu0 %v9540_v22 }
 0x375   :  { %v4394_v10 = vld [vmem:[#allocation3 + $0x700] sm:$0xff]  ;;  %v9533_v27 = vcombine.high %v4266_v9, %v4270_v6  ;;  %7344 = vmatprep.subr.bf16.mxu1 %v9669_v61  ;;  %v9532_v34 = vcombine.low %v4266_v9, %v4270_v6 }
 0x376   :  { %v4398_v31 = vld [vmem:[#allocation3 + $0x720] sm:$0xff]  ;;  %7345 = vmatpush2.bf16.msra.mxu1 %v9668_v13 }
 0x377   :  { %v9661_v60 = vcombine.high %v4394_v10, %v4398_v31  ;;  %v4258_v16 = vld [vmem:[#allocation3 + $0x2c0] sm:$0xff]  ;;  %7305 = vmatprep.subr.bf16.mxu0 %v9533_v27  ;;  %v9660_v35 = vcombine.low %v4394_v10, %v4398_v31 }
 0x378   :  { %v4262_v20 = vld [vmem:[#allocation3 + $0x2e0] sm:$0xff]  ;;  %7306 = vmatpush2.bf16.msra.mxu0 %v9532_v34 }
 0x379   :  { %v4386_v28 = vld [vmem:[#allocation3 + $0x6c0] sm:$0xff]  ;;  %v9525_v37 = vcombine.high %v4258_v16, %v4262_v20  ;;  %7346 = vmatprep.subr.bf16.mxu1 %v9661_v60  ;;  %v9524_v44 = vcombine.low %v4258_v16, %v4262_v20 }
 0x37a   :  { %v4390_v3 = vld [vmem:[#allocation3 + $0x6e0] sm:$0xff]  ;;  %7347 = vmatpush2.bf16.msra.mxu1 %v9660_v35 }
 0x37b   :  { %v9653_v19 = vcombine.high %v4386_v28, %v4390_v3  ;;  %v4250_v40 = vld [vmem:[#allocation3 + $0x280] sm:$0xff]  ;;  %7307 = vmatprep.subr.bf16.mxu0 %v9525_v37  ;;  %v9652_v46 = vcombine.low %v4386_v28, %v4390_v3  ;;  %v10641_v3 = vpack.c.bf16 %v4140_v47, %v4140_v47  ;;  %v10646_v37 = vpack.c.bf16 %v4142_v21, %v4142_v21 }
 0x37c   :  { %v4254_v43 = vld [vmem:[#allocation3 + $0x2a0] sm:$0xff]  ;;  %7308 = vmatpush2.bf16.msra.mxu0 %v9524_v44  ;;  %v10651_v47 = vpack.c.bf16 %v4145_v1, %v4145_v1  ;;  %v10657_v21 = vpack.c.bf16 %v4147_v25, %v4147_v25 }
 0x37d   :  { %v4378_v36 = vld [vmem:[#allocation3 + $0x680] sm:$0xff]  ;;  %v9517_v42 = vcombine.high %v4250_v40, %v4254_v43  ;;  %7348 = vmatprep.subr.bf16.mxu1 %v9653_v19  ;;  %v9516_v53 = vcombine.low %v4250_v40, %v4254_v43 }
 0x37e   :  { %v4382_v45 = vld [vmem:[#allocation3 + $0x6a0] sm:$0xff]  ;;  %7349 = vmatpush2.bf16.msra.mxu1 %v9652_v46 }
 0x37f   :  { %v9645_v48 = vcombine.high %v4378_v36, %v4382_v45  ;;  %v4242_v49 = vld [vmem:[#allocation3 + $0x240] sm:$0xff]  ;;  %7309 = vmatprep.subr.bf16.mxu0 %v9517_v42  ;;  %v9644_v2 = vcombine.low %v4378_v36, %v4382_v45 }
 0x380   :  { %v4246_v50 = vld [vmem:[#allocation3 + $0x260] sm:$0xff]  ;;  %7310 = vmatpush2.bf16.msra.mxu0 %v9516_v53 }
 0x381   :  { %v4370_v52 = vld [vmem:[#allocation3 + $0x640] sm:$0xff]  ;;  %v9509_v57 = vcombine.high %v4242_v49, %v4246_v50  ;;  %7350 = vmatprep.subr.bf16.mxu1 %v9645_v48  ;;  %v9508_v7 = vcombine.low %v4242_v49, %v4246_v50 }
 0x382   :  { %v4374_v38 = vld [vmem:[#allocation3 + $0x660] sm:$0xff]  ;;  %7351 = vmatpush2.bf16.msra.mxu1 %v9644_v2 }
 0x383   :  { %v9637_v41 = vcombine.high %v4370_v52, %v4374_v38  ;;  %v4234_v32 = vld [vmem:[#allocation3 + $0x200] sm:$0xff]  ;;  %7311 = vmatprep.subr.bf16.mxu0 %v9509_v57  ;;  %v9636_v23 = vcombine.low %v4370_v52, %v4374_v38 }
 0x384   :  { %v4238_v24 = vld [vmem:[#allocation3 + $0x220] sm:$0xff]  ;;  %7312 = vmatpush2.bf16.msra.mxu0 %v9508_v7 }
 0x385   :  { %v4362_v0 = vld [vmem:[#allocation3 + $0x600] sm:$0xff]  ;;  %v9501_v61 = vcombine.high %v4234_v32, %v4238_v24  ;;  %7352 = vmatprep.subr.bf16.mxu1 %v9637_v41  ;;  %v9500_v13 = vcombine.low %v4234_v32, %v4238_v24 }
 0x386   :  { %v4366_v4 = vld [vmem:[#allocation3 + $0x620] sm:$0xff]  ;;  %7353 = vmatpush2.bf16.msra.mxu1 %v9636_v23 }
 0x387   :  { %v9629_v9 = vcombine.high %v4362_v0, %v4366_v4  ;;  %v4482_v6 = vld [vmem:[#allocation3 + $0x9c0] sm:$0xff]  ;;  %7313 = vmatprep.subr.bf16.mxu0 %v9501_v61  ;;  %v9628_v27 = vcombine.low %v4362_v0, %v4366_v4 }
 0x388   :  { %v4486_v10 = vld [vmem:[#allocation3 + $0x9e0] sm:$0xff]  ;;  %7314 = vmatpush2.bf16.msra.mxu0 %v9500_v13 }
 0x389   :  { %v4610_v31 = vld [vmem:[#allocation3 + $0xdc0] sm:$0xff]  ;;  %v9749_v60 = vcombine.high %v4482_v6, %v4486_v10  ;;  %7354 = vmatprep.subr.bf16.mxu1 %v9629_v9  ;;  %v9748_v19 = vcombine.low %v4482_v6, %v4486_v10 }
 0x38a   :  { %v4614_v22 = vld [vmem:[#allocation3 + $0xde0] sm:$0xff]  ;;  %7355 = vmatpush2.bf16.msra.mxu1 %v9628_v27 }
 0x38b   :  { %v9877_v16 = vcombine.high %v4610_v31, %v4614_v22  ;;  %v4474_v20 = vld [vmem:[#allocation3 + $0x980] sm:$0xff]  ;;  %7365 = vmatprep.subr.bf16.mxu0 %v9749_v60  ;;  %v9876_v40 = vcombine.low %v4610_v31, %v4614_v22  ;;  %7316 = vmatmul.mubr.bf16.vlgmr.msra.gmra.mxu0 %v10641_v3 }
 0x38c   :  { %v4478_v28 = vld [vmem:[#allocation3 + $0x9a0] sm:$0xff]  ;;  %7366 = vmatpush1.bf16.msra.mxu0 %v9748_v19  ;;  %7397 = vmatprep.mubr.bf16.mxu0 %v10651_v47 }
 0x38d   :  { %v4602_v34 = vld [vmem:[#allocation3 + $0xd80] sm:$0xff]  ;;  %v9741_v43 = vcombine.high %v4474_v20, %v4478_v28  ;;  %7406 = vmatprep.subr.bf16.mxu1 %v9877_v16  ;;  %7357 = vmatmul.mubr.bf16.vlgmr.msra.gmra.mxu1 %v10646_v37  ;;  %v9740_v46 = vcombine.low %v4474_v20, %v4478_v28 }
 0x38e   :  { %v4606_v35 = vld [vmem:[#allocation3 + $0xda0] sm:$0xff]  ;;  %7407 = vmatpush1.bf16.msra.mxu1 %v9876_v40  ;;  %7438 = vmatprep.mubr.bf16.mxu1 %v10657_v21 }
 0x38f   :  { %v9869_v36 = vcombine.high %v4602_v34, %v4606_v35  ;;  %v4466_v45 = vld [vmem:[#allocation3 + $0x940] sm:$0xff]  ;;  %7367 = vmatprep.subr.bf16.mxu0 %v9741_v43  ;;  %v9868_v42 = vcombine.low %v4602_v34, %v4606_v35 }
 0x390   :  { %v4470_v56 = vld [vmem:[#allocation3 + $0x960] sm:$0xff]  ;;  %7368 = vmatpush1.bf16.msra.mxu0 %v9740_v46 }
 0x391   :  { %v4594_v33 = vld [vmem:[#allocation3 + $0xd40] sm:$0xff]  ;;  %v9733_v29 = vcombine.high %v4466_v45, %v4470_v56  ;;  %7408 = vmatprep.subr.bf16.mxu1 %v9869_v36  ;;  %v9732_v58 = vcombine.low %v4466_v45, %v4470_v56 }
 0x392   :  { %v4598_v44 = vld [vmem:[#allocation3 + $0xd60] sm:$0xff]  ;;  %7409 = vmatpush1.bf16.msra.mxu1 %v9868_v42 }
 0x393   :  { %v9861_v1 = vcombine.high %v4594_v33, %v4598_v44  ;;  %v4458_v48 = vld [vmem:[#allocation3 + $0x900] sm:$0xff]  ;;  %7369 = vmatprep.subr.bf16.mxu0 %v9733_v29  ;;  %v9860_v25 = vcombine.low %v4594_v33, %v4598_v44 }
 0x394   :  { %v4462_v49 = vld [vmem:[#allocation3 + $0x920] sm:$0xff]  ;;  %7370 = vmatpush1.bf16.msra.mxu0 %v9732_v58 }
 0x395   :  { %v4586_v50 = vld [vmem:[#allocation3 + $0xd00] sm:$0xff]  ;;  %v9725_v38 = vcombine.high %v4458_v48, %v4462_v49  ;;  %7410 = vmatprep.subr.bf16.mxu1 %v9861_v1  ;;  %v9724_v24 = vcombine.low %v4458_v48, %v4462_v49 }
 0x396   :  { %v4590_v52 = vld [vmem:[#allocation3 + $0xd20] sm:$0xff]  ;;  %7411 = vmatpush1.bf16.msra.mxu1 %v9860_v25 }
 0x397   :  { %v9853_v53 = vcombine.high %v4586_v50, %v4590_v52  ;;  %v4450_v2 = vld [vmem:[#allocation3 + $0x8c0] sm:$0xff]  ;;  %7371 = vmatprep.subr.bf16.mxu0 %v9725_v38  ;;  %v9852_v0 = vcombine.low %v4586_v50, %v4590_v52 }
 0x398   :  { %v4454_v57 = vld [vmem:[#allocation3 + $0x8e0] sm:$0xff]  ;;  %7372 = vmatpush1.bf16.msra.mxu0 %v9724_v24 }
 0x399   :  { %v4578_v41 = vld [vmem:[#allocation3 + $0xcc0] sm:$0xff]  ;;  %v9717_v4 = vcombine.high %v4450_v2, %v4454_v57  ;;  %7412 = vmatprep.subr.bf16.mxu1 %v9853_v53  ;;  %v9716_v10 = vcombine.low %v4450_v2, %v4454_v57 }
 0x39a   :  { %v4582_v32 = vld [vmem:[#allocation3 + $0xce0] sm:$0xff]  ;;  %7413 = vmatpush1.bf16.msra.mxu1 %v9852_v0 }
 0x39b   :  { %v9845_v7 = vcombine.high %v4578_v41, %v4582_v32  ;;  %v4442_v23 = vld [vmem:[#allocation3 + $0x880] sm:$0xff]  ;;  %7373 = vmatprep.subr.bf16.mxu0 %v9717_v4  ;;  %v9844_v31 = vcombine.low %v4578_v41, %v4582_v32 }
 0x39c   :  { %v4446_v61 = vld [vmem:[#allocation3 + $0x8a0] sm:$0xff]  ;;  %7374 = vmatpush1.bf16.msra.mxu0 %v9716_v10 }
 0x39d   :  { %v4570_v9 = vld [vmem:[#allocation3 + $0xc80] sm:$0xff]  ;;  %v9709_v22 = vcombine.high %v4442_v23, %v4446_v61  ;;  %7414 = vmatprep.subr.bf16.mxu1 %v9845_v7  ;;  %v9708_v28 = vcombine.low %v4442_v23, %v4446_v61 }
 0x39e   :  { %v4574_v6 = vld [vmem:[#allocation3 + $0xca0] sm:$0xff]  ;;  %7415 = vmatpush1.bf16.msra.mxu1 %v9844_v31 }
 0x39f   :  { %v9837_v13 = vcombine.high %v4570_v9, %v4574_v6  ;;  %v4434_v27 = vld [vmem:[#allocation3 + $0x840] sm:$0xff]  ;;  %7375 = vmatprep.subr.bf16.mxu0 %v9709_v22  ;;  %v9836_v34 = vcombine.low %v4570_v9, %v4574_v6 }
 0x3a0   :  { %v4438_v60 = vld [vmem:[#allocation3 + $0x860] sm:$0xff]  ;;  %7376 = vmatpush1.bf16.msra.mxu0 %v9708_v28 }
 0x3a1   :  { %v4562_v16 = vld [vmem:[#allocation3 + $0xc40] sm:$0xff]  ;;  %v9701_v35 = vcombine.high %v4434_v27, %v4438_v60  ;;  %7416 = vmatprep.subr.bf16.mxu1 %v9837_v13  ;;  %v9700_v56 = vcombine.low %v4434_v27, %v4438_v60 }
 0x3a2   :  { %v4566_v20 = vld [vmem:[#allocation3 + $0xc60] sm:$0xff]  ;;  %7417 = vmatpush1.bf16.msra.mxu1 %v9836_v34 }
 0x3a3   :  { %v9829_v19 = vcombine.high %v4562_v16, %v4566_v20  ;;  %v4426_v40 = vld [vmem:[#allocation3 + $0x800] sm:$0xff]  ;;  %7377 = vmatprep.subr.bf16.mxu0 %v9701_v35  ;;  %v9828_v33 = vcombine.low %v4562_v16, %v4566_v20 }
 0x3a4   :  { %v4430_v43 = vld [vmem:[#allocation3 + $0x820] sm:$0xff]  ;;  %7378 = vmatpush1.bf16.msra.mxu0 %v9700_v56 }
 0x3a5   :  { %v4554_v36 = vld [vmem:[#allocation3 + $0xc00] sm:$0xff]  ;;  %v9693_v44 = vcombine.high %v4426_v40, %v4430_v43  ;;  %7418 = vmatprep.subr.bf16.mxu1 %v9829_v19  ;;  %v9692_v49 = vcombine.low %v4426_v40, %v4430_v43 }
 0x3a6   :  { %v4558_v45 = vld [vmem:[#allocation3 + $0xc20] sm:$0xff]  ;;  %7419 = vmatpush1.bf16.msra.mxu1 %v9828_v33 }
 0x3a7   :  { %v9821_v46 = vcombine.high %v4554_v36, %v4558_v45  ;;  %v4546_v42 = vld [vmem:[#allocation3 + $0xbc0] sm:$0xff]  ;;  %7379 = vmatprep.subr.bf16.mxu0 %v9693_v44  ;;  %v9820_v50 = vcombine.low %v4554_v36, %v4558_v45 }
 0x3a8   :  { %v4550_v29 = vld [vmem:[#allocation3 + $0xbe0] sm:$0xff]  ;;  %7380 = vmatpush1.bf16.msra.mxu0 %v9692_v49 }
 0x3a9   :  { %v4674_v1 = vld [vmem:[#allocation3 + $0xfc0] sm:$0xff]  ;;  %v9813_v52 = vcombine.high %v4546_v42, %v4550_v29  ;;  %7420 = vmatprep.subr.bf16.mxu1 %v9821_v46  ;;  %v9812_v57 = vcombine.low %v4546_v42, %v4550_v29 }
 0x3aa   :  { %v4678_v48 = vld [vmem:[#allocation3 + $0xfe0] sm:$0xff]  ;;  %7421 = vmatpush1.bf16.msra.mxu1 %v9820_v50 }
 0x3ab   :  { %v9941_v58 = vcombine.high %v4674_v1, %v4678_v48  ;;  %v4538_v25 = vld [vmem:[#allocation3 + $0xb80] sm:$0xff]  ;;  %7381 = vmatprep.subr.bf16.mxu0 %v9813_v52  ;;  %v9940_v41 = vcombine.low %v4674_v1, %v4678_v48 }
 0x3ac   :  { %v4542_v38 = vld [vmem:[#allocation3 + $0xba0] sm:$0xff]  ;;  %7382 = vmatpush2.bf16.msra.mxu0 %v9812_v57 }
 0x3ad   :  { %v4666_v53 = vld [vmem:[#allocation3 + $0xf80] sm:$0xff]  ;;  %v9805_v32 = vcombine.high %v4538_v25, %v4542_v38  ;;  %7422 = vmatprep.subr.bf16.mxu1 %v9941_v58  ;;  %v9804_v61 = vcombine.low %v4538_v25, %v4542_v38 }
 0x3ae   :  { %v4670_v2 = vld [vmem:[#allocation3 + $0xfa0] sm:$0xff]  ;;  %7423 = vmatpush2.bf16.msra.mxu1 %v9940_v41 }
 0x3af   :  { %v9933_v24 = vcombine.high %v4666_v53, %v4670_v2  ;;  %v4530_v0 = vld [vmem:[#allocation3 + $0xb40] sm:$0xff]  ;;  %7383 = vmatprep.subr.bf16.mxu0 %v9805_v32  ;;  %v9932_v9 = vcombine.low %v4666_v53, %v4670_v2 }
 0x3b0   :  { %v4534_v4 = vld [vmem:[#allocation3 + $0xb60] sm:$0xff]  ;;  %7384 = vmatpush2.bf16.msra.mxu0 %v9804_v61 }
 0x3b1   :  { %v4658_v7 = vld [vmem:[#allocation3 + $0xf40] sm:$0xff]  ;;  %v9797_v6 = vcombine.high %v4530_v0, %v4534_v4  ;;  %7424 = vmatprep.subr.bf16.mxu1 %v9933_v24  ;;  %v9796_v60 = vcombine.low %v4530_v0, %v4534_v4 }
 0x3b2   :  { %v4662_v23 = vld [vmem:[#allocation3 + $0xf60] sm:$0xff]  ;;  %7425 = vmatpush2.bf16.msra.mxu1 %v9932_v9  ;;  %v4227_v9 = vld [vmem:[#allocation3 + $0x1c8] sm:$0xff] }
 0x3b3   :  { %v9925_v10 = vcombine.high %v4658_v7, %v4662_v23  ;;  %v4522_v31 = vld [vmem:[#allocation3 + $0xb00] sm:$0xff]  ;;  %7385 = vmatprep.subr.bf16.mxu0 %v9797_v6  ;;  %v9924_v16 = vcombine.low %v4658_v7, %v4662_v23  ;;  %v4231_v6 = vld [vmem:[#allocation3 + $0x1e8] sm:$0xff] }
 0x3b4   :  { %v4526_v22 = vld [vmem:[#allocation3 + $0xb20] sm:$0xff]  ;;  %7386 = vmatpush2.bf16.msra.mxu0 %v9796_v60 }
 0x3b5   :  { %v4650_v13 = vld [vmem:[#allocation3 + $0xf00] sm:$0xff]  ;;  %v9789_v20 = vcombine.high %v4522_v31, %v4526_v22  ;;  %7426 = vmatprep.subr.bf16.mxu1 %v9925_v10  ;;  %v9788_v43 = vcombine.low %v4522_v31, %v4526_v22  ;;  %v4355_v10 = vld [vmem:[#allocation3 + $0x5c8] sm:$0xff] }
 0x3b6   :  { %v4654_v27 = vld [vmem:[#allocation3 + $0xf20] sm:$0xff]  ;;  %7427 = vmatpush2.bf16.msra.mxu1 %v9924_v16  ;;  %v4359_v31 = vld [vmem:[#allocation3 + $0x5e8] sm:$0xff] }
 0x3b7   :  { %v9917_v28 = vcombine.high %v4650_v13, %v4654_v27  ;;  %v4514_v34 = vld [vmem:[#allocation3 + $0xac0] sm:$0xff]  ;;  %7387 = vmatprep.subr.bf16.mxu0 %v9789_v20  ;;  %v9916_v36 = vcombine.low %v4650_v13, %v4654_v27  ;;  %v9495_v27 = vcombine.high %v4227_v9, %v4231_v6  ;;  %v9623_v60 = vcombine.high %v4355_v10, %v4359_v31  ;;  %v4219_v16 = vld [vmem:[#allocation3 + $0x188] sm:$0xff] }
 0x3b8   :  { %v4518_v35 = vld [vmem:[#allocation3 + $0xae0] sm:$0xff]  ;;  %7388 = vmatpush2.bf16.msra.mxu0 %v9788_v43  ;;  %v4223_v20 = vld [vmem:[#allocation3 + $0x1a8] sm:$0xff]  ;;  %v9622_v43 = vcombine.low %v4355_v10, %v4359_v31 }
 0x3b9   :  { %v4642_v19 = vld [vmem:[#allocation3 + $0xec0] sm:$0xff]  ;;  %v9781_v45 = vcombine.high %v4514_v34, %v4518_v35  ;;  %7428 = vmatprep.subr.bf16.mxu1 %v9917_v28  ;;  %v9780_v29 = vcombine.low %v4514_v34, %v4518_v35  ;;  %v10665_v28 = vpack.c.bf16 %v4144_v39, %v4144_v39  ;;  %v4347_v34 = vld [vmem:[#allocation3 + $0x588] sm:$0xff]  ;;  %v9486_v54 = vcombine.low %v4219_v16, %v4223_v20 }
 0x3ba   :  { %v4646_v40 = vld [vmem:[#allocation3 + $0xee0] sm:$0xff]  ;;  %7429 = vmatpush2.bf16.msra.mxu1 %v9916_v36  ;;  %v4351_v35 = vld [vmem:[#allocation3 + $0x5a8] sm:$0xff]  ;;  %v9487_v36 = vcombine.high %v4219_v16, %v4223_v20 }
 0x3bb   :  { %v9909_v56 = vcombine.high %v4642_v19, %v4646_v40  ;;  %v4506_v33 = vld [vmem:[#allocation3 + $0xa80] sm:$0xff]  ;;  %7389 = vmatprep.subr.bf16.mxu0 %v9781_v45  ;;  %v9908_v1 = vcombine.low %v4642_v19, %v4646_v40  ;;  %v10670_v19 = vpack.c.bf16 %v4146_v30, %v4146_v30  ;;  %v9494_v40 = vcombine.low %v4227_v9, %v4231_v6  ;;  %v4339_v39 = vld [vmem:[#allocation3 + $0x548] sm:$0xff] }
 0x3bc   :  { %v4510_v44 = vld [vmem:[#allocation3 + $0xaa0] sm:$0xff]  ;;  %7390 = vmatpush2.bf16.msra.mxu0 %v9780_v29  ;;  %v9615_v45 = vcombine.high %v4347_v34, %v4351_v35  ;;  %v9614_v30 = vcombine.low %v4347_v34, %v4351_v35  ;;  %v4207_v29 = vld [vmem:[#allocation3 + $0x128] sm:$0xff] }
 0x3bd   :  { %v4634_v46 = vld [vmem:[#allocation3 + $0xe80] sm:$0xff]  ;;  %v9773_v48 = vcombine.high %v4506_v33, %v4510_v44  ;;  %7430 = vmatprep.subr.bf16.mxu1 %v9909_v56  ;;  %v9772_v38 = vcombine.low %v4506_v33, %v4510_v44  ;;  %v4211_v56 = vld [vmem:[#allocation3 + $0x148] sm:$0xff] }
 0x3be   :  { %v4638_v42 = vld [vmem:[#allocation3 + $0xea0] sm:$0xff]  ;;  %7431 = vmatpush2.bf16.msra.mxu1 %v9908_v1  ;;  %v4343_v33 = vld [vmem:[#allocation3 + $0x568] sm:$0xff]  ;;  %v9479_v44 = vcombine.high %v4211_v56, %v4215_v62 }
 0x3bf   :  { %v9901_v49 = vcombine.high %v4634_v46, %v4638_v42  ;;  %v4498_v50 = vld [vmem:[#allocation3 + $0xa40] sm:$0xff]  ;;  %7391 = vmatprep.subr.bf16.mxu0 %v9773_v48  ;;  %v9900_v53 = vcombine.low %v4634_v46, %v4638_v42  ;;  %v9607_v46 = vcombine.high %v4339_v39, %v4343_v33  ;;  %v4203_v42 = vld [vmem:[#allocation3 + $0x108] sm:$0xff] }
 0x3c0   :  { %v4502_v52 = vld [vmem:[#allocation3 + $0xa60] sm:$0xff]  ;;  %7392 = vmatpush2.bf16.msra.mxu0 %v9772_v38  ;;  %v4331_v1 = vld [vmem:[#allocation3 + $0x508] sm:$0xff] }
 0x3c1   :  { %v4626_v58 = vld [vmem:[#allocation3 + $0xe40] sm:$0xff]  ;;  %v9765_v2 = vcombine.high %v4498_v50, %v4502_v52  ;;  %7432 = vmatprep.subr.bf16.mxu1 %v9901_v49  ;;  %v9764_v4 = vcombine.low %v4498_v50, %v4502_v52  ;;  %v4335_v48 = vld [vmem:[#allocation3 + $0x528] sm:$0xff]  ;;  %v9478_v49 = vcombine.low %v4211_v56, %v4215_v62  ;;  %v9606_v50 = vcombine.low %v4339_v39, %v4343_v33 }
 0x3c2   :  { %v4630_v25 = vld [vmem:[#allocation3 + $0xe60] sm:$0xff]  ;;  %7433 = vmatpush2.bf16.msra.mxu1 %v9900_v53  ;;  %v9471_v52 = vcombine.high %v4203_v42, %v4207_v29  ;;  %v4199_v38 = vld [vmem:[#allocation3 + $0xe8] sm:$0xff] }
 0x3c3   :  { %v9893_v57 = vcombine.high %v4626_v58, %v4630_v25  ;;  %v4490_v41 = vld [vmem:[#allocation3 + $0xa00] sm:$0xff]  ;;  %7393 = vmatprep.subr.bf16.mxu0 %v9765_v2  ;;  %v9892_v7 = vcombine.low %v4626_v58, %v4630_v25  ;;  %v9599_v58 = vcombine.high %v4331_v1, %v4335_v48  ;;  %v4195_v25 = vld [vmem:[#allocation3 + $0xc8] sm:$0xff] }
 0x3c4   :  { %v4494_v32 = vld [vmem:[#allocation3 + $0xa20] sm:$0xff]  ;;  %7394 = vmatpush2.bf16.msra.mxu0 %v9764_v4  ;;  %v4323_v53 = vld [vmem:[#allocation3 + $0x4c8] sm:$0xff] }
 0x3c5   :  { %v4618_v24 = vld [vmem:[#allocation3 + $0xe00] sm:$0xff]  ;;  %v9757_v23 = vcombine.high %v4490_v41, %v4494_v32  ;;  %7434 = vmatprep.subr.bf16.mxu1 %v9893_v57  ;;  %v9756_v22 = vcombine.low %v4490_v41, %v4494_v32  ;;  %v4327_v2 = vld [vmem:[#allocation3 + $0x4e8] sm:$0xff]  ;;  %v9470_v57 = vcombine.low %v4203_v42, %v4207_v29  ;;  %v9598_v41 = vcombine.low %v4331_v1, %v4335_v48 }
 0x3c6   :  { %v4622_v0 = vld [vmem:[#allocation3 + $0xe20] sm:$0xff]  ;;  %7435 = vmatpush2.bf16.msra.mxu1 %v9892_v7  ;;  %v9463_v32 = vcombine.high %v4195_v25, %v4199_v38  ;;  %v4191_v4 = vld [vmem:[#allocation3 + $0xa8] sm:$0xff]  ;;  %v9590_v9 = vcombine.low %v4323_v53, %v4327_v2 }
 0x3c7   :  { %v9885_v61 = vcombine.high %v4618_v24, %v4622_v0  ;;  %7395 = vmatprep.subr.bf16.mxu0 %v9757_v23  ;;  %v9884_v13 = vcombine.low %v4618_v24, %v4622_v0  ;;  %v9591_v24 = vcombine.high %v4323_v53, %v4327_v2  ;;  %v4187_v0 = vld [vmem:[#allocation3 + $0x88] sm:$0xff] }
 0x3c8   :  { %7396 = vmatpush2.bf16.msra.mxu0 %v9756_v22  ;;  %v4315_v7 = vld [vmem:[#allocation3 + $0x488] sm:$0xff]  ;;  %v9455_v6 = vcombine.high %v4187_v0, %v4191_v4 }
 0x3c9   :  { %7436 = vmatprep.subr.bf16.mxu1 %v9885_v61  ;;  %7447 = vmatprep.subr.bf16.mxu0 %v9495_v27  ;;  %v4319_v23 = vld [vmem:[#allocation3 + $0x4a8] sm:$0xff]  ;;  %v9462_v61 = vcombine.low %v4195_v25, %v4199_v38 }
 0x3ca   :  { %7437 = vmatpush2.bf16.msra.mxu1 %v9884_v13  ;;  %v9583_v10 = vcombine.high %v4315_v7, %v4319_v23  ;;  %v4179_v31 = vld [vmem:[#allocation3 + $0x48] sm:$0xff]  ;;  %v9582_v16 = vcombine.low %v4315_v7, %v4319_v23 }
 0x3cb   :  { %7488 = vmatprep.subr.bf16.mxu1 %v9623_v60  ;;  %7398 = vmatmul.mubr.bf16.vlgmr.msra.gmra.mxu0 %v10665_v28  ;;  %v4183_v22 = vld [vmem:[#allocation3 + $0x68] sm:$0xff]  ;;  %v9454_v60 = vcombine.low %v4187_v0, %v4191_v4 }
 0x3cc   :  { %7448 = vmatpush1.bf16.msra.mxu0 %v9494_v40  ;;  %7479 = vmatprep.mubr.bf16.mxu0 %v10629_v5  ;;  %v4307_v13 = vld [vmem:[#allocation3 + $0x448] sm:$0xff]  ;;  %v9447_v20 = vcombine.high %v4179_v31, %v4183_v22 }
 0x3cd   :  { %7439 = vmatmul.mubr.bf16.vlgmr.msra.gmra.mxu1 %v10670_v19  ;;  %7449 = vmatprep.subr.bf16.mxu0 %v9487_v36  ;;  %v4311_v27 = vld [vmem:[#allocation3 + $0x468] sm:$0xff] }
 0x3ce   :  { %7489 = vmatpush1.bf16.msra.mxu1 %v9622_v43  ;;  %7520 = vmatprep.mubr.bf16.mxu1 %v10634_v8  ;;  %v9575_v34 = vcombine.high %v4307_v13, %v4311_v27  ;;  %v4171_v35 = vld [vmem:[#allocation3 + $0x8] sm:$0xff]  ;;  %v9574_v56 = vcombine.low %v4307_v13, %v4311_v27 }
 0x3cf   :  { %7490 = vmatprep.subr.bf16.mxu1 %v9615_v45  ;;  %v4175_v40 = vld [vmem:[#allocation3 + $0x28] sm:$0xff]  ;;  %v9446_v45 = vcombine.low %v4179_v31, %v4183_v22 }
 0x3d0   :  { %7450 = vmatpush1.bf16.msra.mxu0 %v9486_v54  ;;  %v4299_v43 = vld [vmem:[#allocation3 + $0x408] sm:$0xff]  ;;  %v9439_v62 = vcombine.high %v4171_v35, %v4175_v40 }
 0x3d1   :  { %7451 = vmatprep.subr.bf16.mxu0 %v9479_v44  ;;  %v4303_v36 = vld [vmem:[#allocation3 + $0x428] sm:$0xff] }
 0x3d2   :  { %7491 = vmatpush1.bf16.msra.mxu1 %v9614_v30  ;;  %v9567_v39 = vcombine.high %v4299_v43, %v4303_v36  ;;  %v4291_v33 = vld [vmem:[#allocation3 + $0x3c8] sm:$0xff]  ;;  %v9566_v42 = vcombine.low %v4299_v43, %v4303_v36 }
 0x3d3   :  { %7492 = vmatprep.subr.bf16.mxu1 %v9607_v46  ;;  %v4295_v54 = vld [vmem:[#allocation3 + $0x3e8] sm:$0xff]  ;;  %v9438_v46 = vcombine.low %v4171_v35, %v4175_v40 }
 0x3d4   :  { %7452 = vmatpush1.bf16.msra.mxu0 %v9478_v49  ;;  %v4419_v30 = vld [vmem:[#allocation3 + $0x7c8] sm:$0xff]  ;;  %v9559_v29 = vcombine.high %v4291_v33, %v4295_v54 }
 0x3d5   :  { %7453 = vmatprep.subr.bf16.mxu0 %v9471_v52  ;;  %v4423_v44 = vld [vmem:[#allocation3 + $0x7e8] sm:$0xff] }
 0x3d6   :  { %7493 = vmatpush1.bf16.msra.mxu1 %v9606_v50  ;;  %v9687_v1 = vcombine.high %v4419_v30, %v4423_v44  ;;  %v4283_v48 = vld [vmem:[#allocation3 + $0x388] sm:$0xff]  ;;  %v9686_v25 = vcombine.low %v4419_v30, %v4423_v44 }
 0x3d7   :  { %7494 = vmatprep.subr.bf16.mxu1 %v9599_v58  ;;  %v4287_v49 = vld [vmem:[#allocation3 + $0x3a8] sm:$0xff]  ;;  %v9558_v58 = vcombine.low %v4291_v33, %v4295_v54 }
 0x3d8   :  { %7454 = vmatpush1.bf16.msra.mxu0 %v9470_v57  ;;  %v4411_v50 = vld [vmem:[#allocation3 + $0x788] sm:$0xff]  ;;  %v9551_v38 = vcombine.high %v4283_v48, %v4287_v49 }
 0x3d9   :  { %7455 = vmatprep.subr.bf16.mxu0 %v9463_v32  ;;  %v4415_v52 = vld [vmem:[#allocation3 + $0x7a8] sm:$0xff] }
 0x3da   :  { %7495 = vmatpush1.bf16.msra.mxu1 %v9598_v41  ;;  %v9679_v53 = vcombine.high %v4411_v50, %v4415_v52  ;;  %v4275_v2 = vld [vmem:[#allocation3 + $0x348] sm:$0xff]  ;;  %v9678_v0 = vcombine.low %v4411_v50, %v4415_v52 }
 0x3db   :  { %7496 = vmatprep.subr.bf16.mxu1 %v9591_v24  ;;  %v4279_v57 = vld [vmem:[#allocation3 + $0x368] sm:$0xff]  ;;  %v9550_v24 = vcombine.low %v4283_v48, %v4287_v49 }
 0x3dc   :  { %7456 = vmatpush1.bf16.msra.mxu0 %v9462_v61  ;;  %v4403_v41 = vld [vmem:[#allocation3 + $0x748] sm:$0xff]  ;;  %v9543_v4 = vcombine.high %v4275_v2, %v4279_v57 }
 0x3dd   :  { %7457 = vmatprep.subr.bf16.mxu0 %v9455_v6  ;;  %v4407_v32 = vld [vmem:[#allocation3 + $0x768] sm:$0xff] }
 0x3de   :  { %7497 = vmatpush1.bf16.msra.mxu1 %v9590_v9  ;;  %v9671_v7 = vcombine.high %v4403_v41, %v4407_v32  ;;  %v4267_v23 = vld [vmem:[#allocation3 + $0x308] sm:$0xff]  ;;  %v9670_v31 = vcombine.low %v4403_v41, %v4407_v32 }
 0x3df   :  { %7498 = vmatprep.subr.bf16.mxu1 %v9583_v10  ;;  %v4271_v61 = vld [vmem:[#allocation3 + $0x328] sm:$0xff]  ;;  %v9542_v10 = vcombine.low %v4275_v2, %v4279_v57 }
 0x3e0   :  { %7458 = vmatpush1.bf16.msra.mxu0 %v9454_v60  ;;  %v4395_v9 = vld [vmem:[#allocation3 + $0x708] sm:$0xff]  ;;  %v9535_v22 = vcombine.high %v4267_v23, %v4271_v61 }
 0x3e1   :  { %7459 = vmatprep.subr.bf16.mxu0 %v9447_v20  ;;  %v4399_v6 = vld [vmem:[#allocation3 + $0x728] sm:$0xff] }
 0x3e2   :  { %7499 = vmatpush1.bf16.msra.mxu1 %v9582_v16  ;;  %v9663_v13 = vcombine.high %v4395_v9, %v4399_v6  ;;  %v4259_v27 = vld [vmem:[#allocation3 + $0x2c8] sm:$0xff]  ;;  %v9662_v35 = vcombine.low %v4395_v9, %v4399_v6 }
 0x3e3   :  { %7500 = vmatprep.subr.bf16.mxu1 %v9575_v34  ;;  %v4263_v60 = vld [vmem:[#allocation3 + $0x2e8] sm:$0xff]  ;;  %v9534_v34 = vcombine.low %v4267_v23, %v4271_v61 }
 0x3e4   :  { %7460 = vmatpush1.bf16.msra.mxu0 %v9446_v45  ;;  %v4387_v16 = vld [vmem:[#allocation3 + $0x6c8] sm:$0xff]  ;;  %v9527_v40 = vcombine.high %v4259_v27, %v4263_v60 }
 0x3e5   :  { %7461 = vmatprep.subr.bf16.mxu0 %v9439_v62  ;;  %v4391_v20 = vld [vmem:[#allocation3 + $0x6e8] sm:$0xff] }
 0x3e6   :  { %7501 = vmatpush1.bf16.msra.mxu1 %v9574_v56  ;;  %v9655_v43 = vcombine.high %v4387_v16, %v4391_v20  ;;  %v4251_v36 = vld [vmem:[#allocation3 + $0x288] sm:$0xff]  ;;  %v9654_v33 = vcombine.low %v4387_v16, %v4391_v20 }
 0x3e7   :  { %7502 = vmatprep.subr.bf16.mxu1 %v9567_v39  ;;  %v4255_v45 = vld [vmem:[#allocation3 + $0x2a8] sm:$0xff]  ;;  %v9526_v39 = vcombine.low %v4259_v27, %v4263_v60 }
 0x3e8   :  { %7462 = vmatpush1.bf16.msra.mxu0 %v9438_v46  ;;  %v4379_v56 = vld [vmem:[#allocation3 + $0x688] sm:$0xff]  ;;  %v9519_v54 = vcombine.high %v4251_v36, %v4255_v45 }
 0x3e9   :  { %7463 = vmatprep.subr.bf16.mxu0 %v9559_v29  ;;  %v4383_v62 = vld [vmem:[#allocation3 + $0x6a8] sm:$0xff] }
 0x3ea   :  { %7503 = vmatpush1.bf16.msra.mxu1 %v9566_v42  ;;  %v9647_v30 = vcombine.high %v4379_v56, %v4383_v62  ;;  %v4243_v44 = vld [vmem:[#allocation3 + $0x248] sm:$0xff]  ;;  %v9646_v48 = vcombine.low %v4379_v56, %v4383_v62 }
 0x3eb   :  { %7504 = vmatprep.subr.bf16.mxu1 %v9687_v1  ;;  %v4247_v46 = vld [vmem:[#allocation3 + $0x268] sm:$0xff]  ;;  %v9518_v1 = vcombine.low %v4251_v36, %v4255_v45 }
 0x3ec   :  { %7464 = vmatpush2.bf16.msra.mxu0 %v9558_v58  ;;  %v4371_v42 = vld [vmem:[#allocation3 + $0x648] sm:$0xff]  ;;  %v9511_v49 = vcombine.high %v4243_v44, %v4247_v46 }
 0x3ed   :  { %7465 = vmatprep.subr.bf16.mxu0 %v9551_v38  ;;  %v4375_v29 = vld [vmem:[#allocation3 + $0x668] sm:$0xff] }
 0x3ee   :  { %7505 = vmatpush2.bf16.msra.mxu1 %v9686_v25  ;;  %v9639_v50 = vcombine.high %v4371_v42, %v4375_v29  ;;  %v4235_v52 = vld [vmem:[#allocation3 + $0x208] sm:$0xff]  ;;  %v9638_v2 = vcombine.low %v4371_v42, %v4375_v29 }
 0x3ef   :  { %7506 = vmatprep.subr.bf16.mxu1 %v9679_v53  ;;  %v4239_v58 = vld [vmem:[#allocation3 + $0x228] sm:$0xff]  ;;  %v9510_v53 = vcombine.low %v4243_v44, %v4247_v46 }
 0x3f0   :  { %7466 = vmatpush2.bf16.msra.mxu0 %v9550_v24  ;;  %v4363_v25 = vld [vmem:[#allocation3 + $0x608] sm:$0xff]  ;;  %v9503_v57 = vcombine.high %v4235_v52, %v4239_v58 }
 0x3f1   :  { %7467 = vmatprep.subr.bf16.mxu0 %v9543_v4  ;;  %v4367_v38 = vld [vmem:[#allocation3 + $0x628] sm:$0xff] }
 0x3f2   :  { %7507 = vmatpush2.bf16.msra.mxu1 %v9678_v0  ;;  %v9631_v41 = vcombine.high %v4363_v25, %v4367_v38  ;;  %v4483_v32 = vld [vmem:[#allocation3 + $0x9c8] sm:$0xff]  ;;  %v9630_v23 = vcombine.low %v4363_v25, %v4367_v38 }
 0x3f3   :  { %7508 = vmatprep.subr.bf16.mxu1 %v9671_v7  ;;  %v4487_v24 = vld [vmem:[#allocation3 + $0x9e8] sm:$0xff]  ;;  %v9502_v7 = vcombine.low %v4235_v52, %v4239_v58 }
 0x3f4   :  { %7468 = vmatpush2.bf16.msra.mxu0 %v9542_v10  ;;  %v4611_v0 = vld [vmem:[#allocation3 + $0xdc8] sm:$0xff]  ;;  %v9751_v61 = vcombine.high %v4483_v32, %v4487_v24 }
 0x3f5   :  { %7469 = vmatprep.subr.bf16.mxu0 %v9535_v22  ;;  %v4615_v4 = vld [vmem:[#allocation3 + $0xde8] sm:$0xff] }
 0x3f6   :  { %7509 = vmatpush2.bf16.msra.mxu1 %v9670_v31  ;;  %v9879_v9 = vcombine.high %v4611_v0, %v4615_v4  ;;  %v4475_v6 = vld [vmem:[#allocation3 + $0x988] sm:$0xff]  ;;  %v9878_v27 = vcombine.low %v4611_v0, %v4615_v4 }
 0x3f7   :  { %7510 = vmatprep.subr.bf16.mxu1 %v9663_v13  ;;  %v4479_v10 = vld [vmem:[#allocation3 + $0x9a8] sm:$0xff]  ;;  %v9750_v13 = vcombine.low %v4483_v32, %v4487_v24 }
 0x3f8   :  { %7470 = vmatpush2.bf16.msra.mxu0 %v9534_v34  ;;  %v4603_v31 = vld [vmem:[#allocation3 + $0xd88] sm:$0xff]  ;;  %v9743_v60 = vcombine.high %v4475_v6, %v4479_v10 }
 0x3f9   :  { %7471 = vmatprep.subr.bf16.mxu0 %v9527_v40  ;;  %v4607_v22 = vld [vmem:[#allocation3 + $0xda8] sm:$0xff] }
 0x3fa   :  { %7511 = vmatpush2.bf16.msra.mxu1 %v9662_v35  ;;  %v9871_v16 = vcombine.high %v4603_v31, %v4607_v22  ;;  %v4467_v20 = vld [vmem:[#allocation3 + $0x948] sm:$0xff]  ;;  %v9870_v36 = vcombine.low %v4603_v31, %v4607_v22 }
 0x3fb   :  { %7512 = vmatprep.subr.bf16.mxu1 %v9655_v43  ;;  %v4471_v34 = vld [vmem:[#allocation3 + $0x968] sm:$0xff]  ;;  %v9742_v43 = vcombine.low %v4475_v6, %v4479_v10 }
 0x3fc   :  { %7472 = vmatpush2.bf16.msra.mxu0 %v9526_v39  ;;  %v4595_v35 = vld [vmem:[#allocation3 + $0xd48] sm:$0xff]  ;;  %v9735_v45 = vcombine.high %v4467_v20, %v4471_v34 }
 0x3fd   :  { %7473 = vmatprep.subr.bf16.mxu0 %v9519_v54  ;;  %v4599_v40 = vld [vmem:[#allocation3 + $0xd68] sm:$0xff] }
 0x3fe   :  { %7513 = vmatpush2.bf16.msra.mxu1 %v9654_v33  ;;  %v9863_v56 = vcombine.high %v4595_v35, %v4599_v40  ;;  %v4459_v62 = vld [vmem:[#allocation3 + $0x908] sm:$0xff]  ;;  %v9862_v44 = vcombine.low %v4595_v35, %v4599_v40 }
 0x3ff   :  { %7514 = vmatprep.subr.bf16.mxu1 %v9647_v30  ;;  %v4463_v39 = vld [vmem:[#allocation3 + $0x928] sm:$0xff]  ;;  %v9734_v30 = vcombine.low %v4467_v20, %v4471_v34 }
 0x400   :  { %7474 = vmatpush2.bf16.msra.mxu0 %v9518_v1  ;;  %v4587_v33 = vld [vmem:[#allocation3 + $0xd08] sm:$0xff]  ;;  %v9727_v46 = vcombine.high %v4459_v62, %v4463_v39 }
 0x401   :  { %7475 = vmatprep.subr.bf16.mxu0 %v9511_v49  ;;  %v4591_v54 = vld [vmem:[#allocation3 + $0xd28] sm:$0xff] }
 0x402   :  { %7515 = vmatpush2.bf16.msra.mxu1 %v9646_v48  ;;  %v9855_v42 = vcombine.high %v4587_v33, %v4591_v54  ;;  %v4451_v29 = vld [vmem:[#allocation3 + $0x8c8] sm:$0xff]  ;;  %v9854_v52 = vcombine.low %v4587_v33, %v4591_v54 }
 0x403   :  { %7516 = vmatprep.subr.bf16.mxu1 %v9639_v50  ;;  %v4455_v1 = vld [vmem:[#allocation3 + $0x8e8] sm:$0xff]  ;;  %v9726_v50 = vcombine.low %v4459_v62, %v4463_v39 }
 0x404   :  { %7476 = vmatpush2.bf16.msra.mxu0 %v9510_v53  ;;  %v4579_v48 = vld [vmem:[#allocation3 + $0xcc8] sm:$0xff]  ;;  %v9719_v58 = vcombine.high %v4451_v29, %v4455_v1 }
 0x405   :  { %7477 = vmatprep.subr.bf16.mxu0 %v9503_v57  ;;  %v4583_v49 = vld [vmem:[#allocation3 + $0xce8] sm:$0xff] }
 0x406   :  { %7517 = vmatpush2.bf16.msra.mxu1 %v9638_v2  ;;  %v9847_v25 = vcombine.high %v4579_v48, %v4583_v49  ;;  %v4443_v38 = vld [vmem:[#allocation3 + $0x888] sm:$0xff]  ;;  %v9846_v32 = vcombine.low %v4579_v48, %v4583_v49 }
 0x407   :  { %7518 = vmatprep.subr.bf16.mxu1 %v9631_v41  ;;  %v4447_v53 = vld [vmem:[#allocation3 + $0x8a8] sm:$0xff]  ;;  %v9718_v41 = vcombine.low %v4451_v29, %v4455_v1 }
 0x408   :  { %7478 = vmatpush2.bf16.msra.mxu0 %v9502_v7  ;;  %v4571_v2 = vld [vmem:[#allocation3 + $0xc88] sm:$0xff]  ;;  %v9711_v24 = vcombine.high %v4443_v38, %v4447_v53 }
 0x409   :  { %7529 = vmatprep.subr.bf16.mxu0 %v9751_v61  ;;  %v4575_v57 = vld [vmem:[#allocation3 + $0xca8] sm:$0xff] }
 0x40a   :  { %7519 = vmatpush2.bf16.msra.mxu1 %v9630_v23  ;;  %v9839_v0 = vcombine.high %v4571_v2, %v4575_v57  ;;  %v4435_v4 = vld [vmem:[#allocation3 + $0x848] sm:$0xff]  ;;  %v9838_v6 = vcombine.low %v4571_v2, %v4575_v57 }
 0x40b   :  { %7570 = vmatprep.subr.bf16.mxu1 %v9879_v9  ;;  %7480 = vmatmul.mubr.bf16.vlgmr.msra.gmra.mxu0 %v10641_v3  ;;  %v4439_v7 = vld [vmem:[#allocation3 + $0x868] sm:$0xff]  ;;  %v9710_v9 = vcombine.low %v4443_v38, %v4447_v53 }
 0x40c   :  { %7530 = vmatpush1.bf16.msra.mxu0 %v9750_v13  ;;  %7561 = vmatprep.mubr.bf16.mxu0 %v10651_v47  ;;  %v4563_v23 = vld [vmem:[#allocation3 + $0xc48] sm:$0xff]  ;;  %v9703_v10 = vcombine.high %v4435_v4, %v4439_v7 }
 0x40d   :  { %7521 = vmatmul.mubr.bf16.vlgmr.msra.gmra.mxu1 %v10646_v37  ;;  %7531 = vmatprep.subr.bf16.mxu0 %v9743_v60  ;;  %v4567_v61 = vld [vmem:[#allocation3 + $0xc68] sm:$0xff] }
 0x40e   :  { %7571 = vmatpush1.bf16.msra.mxu1 %v9878_v27  ;;  %7602 = vmatprep.mubr.bf16.mxu1 %v10657_v21  ;;  %v9831_v31 = vcombine.high %v4563_v23, %v4567_v61  ;;  %v4427_v22 = vld [vmem:[#allocation3 + $0x808] sm:$0xff]  ;;  %v9830_v20 = vcombine.low %v4563_v23, %v4567_v61 }
 0x40f   :  { %7572 = vmatprep.subr.bf16.mxu1 %v9871_v16  ;;  %v4431_v13 = vld [vmem:[#allocation3 + $0x828] sm:$0xff]  ;;  %v9702_v16 = vcombine.low %v4435_v4, %v4439_v7 }
 0x410   :  { %7532 = vmatpush1.bf16.msra.mxu0 %v9742_v43  ;;  %v4555_v27 = vld [vmem:[#allocation3 + $0xc08] sm:$0xff]  ;;  %v9695_v34 = vcombine.high %v4427_v22, %v4431_v13 }
 0x411   :  { %7533 = vmatprep.subr.bf16.mxu0 %v9735_v45  ;;  %v4559_v60 = vld [vmem:[#allocation3 + $0xc28] sm:$0xff] }
 0x412   :  { %7573 = vmatpush1.bf16.msra.mxu1 %v9870_v36  ;;  %v9823_v35 = vcombine.high %v4555_v27, %v4559_v60  ;;  %v4547_v40 = vld [vmem:[#allocation3 + $0xbc8] sm:$0xff]  ;;  %v9822_v62 = vcombine.low %v4555_v27, %v4559_v60 }
 0x413   :  { %7574 = vmatprep.subr.bf16.mxu1 %v9863_v56  ;;  %v4551_v43 = vld [vmem:[#allocation3 + $0xbe8] sm:$0xff]  ;;  %v9694_v56 = vcombine.low %v4427_v22, %v4431_v13 }
 0x414   :  { %7534 = vmatpush1.bf16.msra.mxu0 %v9734_v30  ;;  %v4675_v36 = vld [vmem:[#allocation3 + $0xfc8] sm:$0xff]  ;;  %v9815_v39 = vcombine.high %v4547_v40, %v4551_v43 }
 0x415   :  { %7535 = vmatprep.subr.bf16.mxu0 %v9727_v46  ;;  %v4679_v45 = vld [vmem:[#allocation3 + $0xfe8] sm:$0xff] }
 0x416   :  { %7575 = vmatpush1.bf16.msra.mxu1 %v9862_v44  ;;  %v9943_v33 = vcombine.high %v4675_v36, %v4679_v45  ;;  %v4539_v54 = vld [vmem:[#allocation3 + $0xb88] sm:$0xff]  ;;  %v9942_v29 = vcombine.low %v4675_v36, %v4679_v45 }
 0x417   :  { %7576 = vmatprep.subr.bf16.mxu1 %v9855_v42  ;;  %v4543_v30 = vld [vmem:[#allocation3 + $0xba8] sm:$0xff]  ;;  %v9814_v42 = vcombine.low %v4547_v40, %v4551_v43 }
 0x418   :  { %7536 = vmatpush1.bf16.msra.mxu0 %v9726_v50  ;;  %v4667_v44 = vld [vmem:[#allocation3 + $0xf88] sm:$0xff]  ;;  %v9807_v1 = vcombine.high %v4539_v54, %v4543_v30 }
 0x419   :  { %7537 = vmatprep.subr.bf16.mxu0 %v9719_v58  ;;  %v4671_v46 = vld [vmem:[#allocation3 + $0xfa8] sm:$0xff] }
 0x41a   :  { %7577 = vmatpush1.bf16.msra.mxu1 %v9854_v52  ;;  %v9935_v48 = vcombine.high %v4667_v44, %v4671_v46  ;;  %v4531_v49 = vld [vmem:[#allocation3 + $0xb48] sm:$0xff]  ;;  %v9934_v38 = vcombine.low %v4667_v44, %v4671_v46 }
 0x41b   :  { %7578 = vmatprep.subr.bf16.mxu1 %v9847_v25  ;;  %v4535_v50 = vld [vmem:[#allocation3 + $0xb68] sm:$0xff]  ;;  %v9806_v25 = vcombine.low %v4539_v54, %v4543_v30 }
 0x41c   :  { %7538 = vmatpush1.bf16.msra.mxu0 %v9718_v41  ;;  %v4659_v52 = vld [vmem:[#allocation3 + $0xf48] sm:$0xff]  ;;  %v9799_v53 = vcombine.high %v4531_v49, %v4535_v50 }
 0x41d   :  { %7539 = vmatprep.subr.bf16.mxu0 %v9711_v24  ;;  %v4663_v58 = vld [vmem:[#allocation3 + $0xf68] sm:$0xff] }
 0x41e   :  { %7579 = vmatpush1.bf16.msra.mxu1 %v9846_v32  ;;  %v9927_v2 = vcombine.high %v4659_v52, %v4663_v58  ;;  %v4523_v57 = vld [vmem:[#allocation3 + $0xb08] sm:$0xff]  ;;  %v9926_v4 = vcombine.low %v4659_v52, %v4663_v58  ;;  %v4228_v58 = vld [vmem:[#allocation3 + $0x1d0] sm:$0xff] }
 0x41f   :  { %7580 = vmatprep.subr.bf16.mxu1 %v9839_v0  ;;  %v4527_v41 = vld [vmem:[#allocation3 + $0xb28] sm:$0xff]  ;;  %v9798_v0 = vcombine.low %v4531_v49, %v4535_v50 }
 0x420   :  { %7540 = vmatpush1.bf16.msra.mxu0 %v9710_v9  ;;  %v4651_v32 = vld [vmem:[#allocation3 + $0xf08] sm:$0xff]  ;;  %v9791_v7 = vcombine.high %v4523_v57, %v4527_v41 }
 0x421   :  { %7541 = vmatprep.subr.bf16.mxu0 %v9703_v10  ;;  %v4655_v24 = vld [vmem:[#allocation3 + $0xf28] sm:$0xff] }
 0x422   :  { %7581 = vmatpush1.bf16.msra.mxu1 %v9838_v6  ;;  %v9919_v23 = vcombine.high %v4651_v32, %v4655_v24  ;;  %v4515_v61 = vld [vmem:[#allocation3 + $0xac8] sm:$0xff]  ;;  %v9918_v22 = vcombine.low %v4651_v32, %v4655_v24  ;;  %v4220_v24 = vld [vmem:[#allocation3 + $0x190] sm:$0xff] }
 0x423   :  { %7582 = vmatprep.subr.bf16.mxu1 %v9831_v31  ;;  %v4519_v9 = vld [vmem:[#allocation3 + $0xae8] sm:$0xff]  ;;  %v9790_v31 = vcombine.low %v4523_v57, %v4527_v41 }
 0x424   :  { %7542 = vmatpush1.bf16.msra.mxu0 %v9702_v16  ;;  %v4643_v6 = vld [vmem:[#allocation3 + $0xec8] sm:$0xff]  ;;  %v9783_v13 = vcombine.high %v4515_v61, %v4519_v9 }
 0x425   :  { %7543 = vmatprep.subr.bf16.mxu0 %v9695_v34  ;;  %v4647_v10 = vld [vmem:[#allocation3 + $0xee8] sm:$0xff] }
 0x426   :  { %7583 = vmatpush1.bf16.msra.mxu1 %v9830_v20  ;;  %v9911_v27 = vcombine.high %v4643_v6, %v4647_v10  ;;  %v4507_v60 = vld [vmem:[#allocation3 + $0xa88] sm:$0xff]  ;;  %v9910_v40 = vcombine.low %v4643_v6, %v4647_v10  ;;  %v4690_v10 = vrot.slane %v10422_v11, %v10464_v55 }
 0x427   :  { %7584 = vmatprep.subr.bf16.mxu1 %v9823_v35  ;;  %v4511_v16 = vld [vmem:[#allocation3 + $0xaa8] sm:$0xff]  ;;  %v9782_v35 = vcombine.low %v4515_v61, %v4519_v9 }
 0x428   :  { %7544 = vmatpush1.bf16.msra.mxu0 %v9694_v56  ;;  %v4635_v20 = vld [vmem:[#allocation3 + $0xe88] sm:$0xff]  ;;  %v9775_v43 = vcombine.high %v4507_v60, %v4511_v16 }
 0x429   :  { %7545 = vmatprep.subr.bf16.mxu0 %v9815_v39  ;;  %v4639_v34 = vld [vmem:[#allocation3 + $0xea8] sm:$0xff] }
 0x42a   :  { %7585 = vmatpush1.bf16.msra.mxu1 %v9822_v62  ;;  %v9903_v36 = vcombine.high %v4635_v20, %v4639_v34  ;;  %v4499_v45 = vld [vmem:[#allocation3 + $0xa48] sm:$0xff]  ;;  %v9902_v54 = vcombine.low %v4635_v20, %v4639_v34 }
 0x42b   :  { %7586 = vmatprep.subr.bf16.mxu1 %v9943_v33  ;;  %v4503_v56 = vld [vmem:[#allocation3 + $0xa68] sm:$0xff]  ;;  %v9774_v33 = vcombine.low %v4507_v60, %v4511_v16  ;;  %v4340_v60 = vld [vmem:[#allocation3 + $0x550] sm:$0xff] }
 0x42c   :  { %7546 = vmatpush2.bf16.msra.mxu0 %v9814_v42  ;;  %v4627_v62 = vld [vmem:[#allocation3 + $0xe48] sm:$0xff]  ;;  %v9767_v30 = vcombine.high %v4499_v45, %v4503_v56  ;;  %v4344_v16 = vld [vmem:[#allocation3 + $0x570] sm:$0xff] }
 0x42d   :  { %7547 = vmatprep.subr.bf16.mxu0 %v9807_v1  ;;  %v4631_v39 = vld [vmem:[#allocation3 + $0xe68] sm:$0xff] }
 0x42e   :  { %7587 = vmatpush2.bf16.msra.mxu1 %v9942_v29  ;;  %v9895_v44 = vcombine.high %v4627_v62, %v4631_v39  ;;  %v4491_v46 = vld [vmem:[#allocation3 + $0xa08] sm:$0xff]  ;;  %v9894_v49 = vcombine.low %v4627_v62, %v4631_v39  ;;  %v9609_v39 = vcombine.high %v4340_v60, %v4344_v16 }
 0x42f   :  { %7588 = vmatprep.subr.bf16.mxu1 %v9935_v48  ;;  %v4495_v42 = vld [vmem:[#allocation3 + $0xa28] sm:$0xff]  ;;  %v9766_v48 = vcombine.low %v4499_v45, %v4503_v56 }
 0x430   :  { %7548 = vmatpush2.bf16.msra.mxu0 %v9806_v25  ;;  %v4619_v29 = vld [vmem:[#allocation3 + $0xe08] sm:$0xff]  ;;  %v9759_v50 = vcombine.high %v4491_v46, %v4495_v42  ;;  %v4232_v25 = vld [vmem:[#allocation3 + $0x1f0] sm:$0xff] }
 0x431   :  { %7549 = vmatprep.subr.bf16.mxu0 %v9799_v53  ;;  %v4623_v1 = vld [vmem:[#allocation3 + $0xe28] sm:$0xff]  ;;  %v4360_v53 = vld [vmem:[#allocation3 + $0x5f0] sm:$0xff]  ;;  %v9497_v41 = vcombine.high %v4228_v58, %v4232_v25  ;;  %v9496_v61 = vcombine.low %v4228_v58, %v4232_v25 }
 0x432   :  { %7589 = vmatpush2.bf16.msra.mxu1 %v9934_v38  ;;  %v9887_v52 = vcombine.high %v4619_v29, %v4623_v1  ;;  %v4356_v38 = vld [vmem:[#allocation3 + $0x5d0] sm:$0xff]  ;;  %v9886_v57 = vcombine.low %v4619_v29, %v4623_v1 }
 0x433   :  { %7590 = vmatprep.subr.bf16.mxu1 %v9927_v2  ;;  %v9758_v2 = vcombine.low %v4491_v46, %v4495_v42  ;;  %v9625_v32 = vcombine.high %v4356_v38, %v4360_v53  ;;  %v9624_v9 = vcombine.low %v4356_v38, %v4360_v53  ;;  %v4336_v46 = vld [vmem:[#allocation3 + $0x530] sm:$0xff] }
 0x434   :  { %7550 = vmatpush2.bf16.msra.mxu0 %v9798_v0  ;;  %v4224_v0 = vld [vmem:[#allocation3 + $0x1b0] sm:$0xff] }
 0x435   :  { %7551 = vmatprep.subr.bf16.mxu0 %v9791_v7  ;;  %v4352_v7 = vld [vmem:[#allocation3 + $0x5b0] sm:$0xff]  ;;  %v9489_v6 = vcombine.high %v4220_v24, %v4224_v0 }
 0x436   :  { %7591 = vmatpush2.bf16.msra.mxu1 %v9926_v4  ;;  %v4348_v4 = vld [vmem:[#allocation3 + $0x590] sm:$0xff] }
 0x437   :  { %7592 = vmatprep.subr.bf16.mxu1 %v9919_v23  ;;  %v4686_v23 = vrot.slane %v10422_v11, %v10461_v51  ;;  %v4196_v25 = vld [vmem:[#allocation3 + $0xd0] sm:$0xff] }
 0x438   :  { %7552 = vmatpush2.bf16.msra.mxu0 %v9790_v31  ;;  %v9617_v31 = vcombine.high %v4348_v4, %v4352_v7  ;;  %v4200_v38 = vld [vmem:[#allocation3 + $0xf0] sm:$0xff] }
 0x439   :  { %7553 = vmatprep.subr.bf16.mxu0 %v9783_v13  ;;  %v4216_v13 = vld [vmem:[#allocation3 + $0x170] sm:$0xff] }
 0x43a   :  { %7593 = vmatpush2.bf16.msra.mxu1 %v9918_v22  ;;  %v4212_v22 = vld [vmem:[#allocation3 + $0x150] sm:$0xff] }
 0x43b   :  { %7594 = vmatprep.subr.bf16.mxu1 %v9911_v27  ;;  %v9480_v1 = vcombine.low %v4212_v22, %v4216_v13  ;;  %v4324_v53 = vld [vmem:[#allocation3 + $0x4d0] sm:$0xff] }
 0x43c   :  { %7554 = vmatpush2.bf16.msra.mxu0 %v9782_v35  ;;  %v9488_v35 = vcombine.low %v4220_v24, %v4224_v0  ;;  %v4188_v0 = vld [vmem:[#allocation3 + $0x90] sm:$0xff] }
 0x43d   :  { %7555 = vmatprep.subr.bf16.mxu0 %v9775_v43  ;;  %v9616_v43 = vcombine.low %v4348_v4, %v4352_v7  ;;  %v4192_v4 = vld [vmem:[#allocation3 + $0xb0] sm:$0xff] }
 0x43e   :  { %7595 = vmatpush2.bf16.msra.mxu1 %v9910_v40  ;;  %v4316_v7 = vld [vmem:[#allocation3 + $0x490] sm:$0xff] }
 0x43f   :  { %7596 = vmatprep.subr.bf16.mxu1 %v9903_v36  ;;  %v9481_v36 = vcombine.high %v4212_v22, %v4216_v13  ;;  %v4184_v22 = vld [vmem:[#allocation3 + $0x70] sm:$0xff] }
 0x440   :  { %7556 = vmatpush2.bf16.msra.mxu0 %v9774_v33  ;;  %v4204_v33 = vld [vmem:[#allocation3 + $0x110] sm:$0xff] }
 0x441   :  { %7557 = vmatprep.subr.bf16.mxu0 %v9767_v30  ;;  %v4308_v13 = vld [vmem:[#allocation3 + $0x450] sm:$0xff] }
 0x442   :  { %7597 = vmatpush2.bf16.msra.mxu1 %v9902_v54  ;;  %v4208_v54 = vld [vmem:[#allocation3 + $0x130] sm:$0xff] }
 0x443   :  { %7598 = vmatprep.subr.bf16.mxu1 %v9895_v44  ;;  %v4332_v44 = vld [vmem:[#allocation3 + $0x510] sm:$0xff] }
 0x444   :  { %7558 = vmatpush2.bf16.msra.mxu0 %v9766_v48  ;;  %v9601_v58 = vcombine.high %v4332_v44, %v4336_v46 }
 0x445   :  { %7559 = vmatprep.subr.bf16.mxu0 %v9759_v50  ;;  %v9473_v50 = vcombine.high %v4204_v33, %v4208_v54 }
 0x446   :  { %7599 = vmatpush2.bf16.msra.mxu1 %v9894_v49  ;;  %v9608_v49 = vcombine.low %v4340_v60, %v4344_v16  ;;  %v9456_v60 = vcombine.low %v4188_v0, %v4192_v4 }
 0x447   :  { %7600 = vmatprep.subr.bf16.mxu1 %v9887_v52 }
 0x448   :  { %7560 = vmatpush2.bf16.msra.mxu0 %v9758_v2  ;;  %v4328_v2 = vld [vmem:[#allocation3 + $0x4f0] sm:$0xff] }
 0x449   :  { %7611 = vmatprep.subr.bf16.mxu0 %v9497_v41  ;;  %v9600_v41 = vcombine.low %v4332_v44, %v4336_v46  ;;  %v9593_v24 = vcombine.high %v4324_v53, %v4328_v2  ;;  %v4420_v44 = vld [vmem:[#allocation3 + $0x7d0] sm:$0xff] }
 0x44a   :  { %7601 = vmatpush2.bf16.msra.mxu1 %v9886_v57  ;;  %v9472_v57 = vcombine.low %v4204_v33, %v4208_v54  ;;  %v4292_v54 = vld [vmem:[#allocation3 + $0x3d0] sm:$0xff] }
 0x44b   :  { %7652 = vmatprep.subr.bf16.mxu1 %v9625_v32  ;;  %v7317_v27 = vpop.f32.mrf.mxu0  ;;  %7562 = vmatmul.mubr.bf16.vlgmr.msra.gmra.mxu0 %v10665_v28  ;;  %v9465_v32 = vcombine.high %v4196_v25, %v4200_v38  ;;  %v4424_v46 = vld [vmem:[#allocation3 + $0x7f0] sm:$0xff] }
 0x44c   :  { %v7318_v20 = vadd.f32 %v7317_v27, %v4686_v23  ;;  %7612 = vmatpush1.bf16.msra.mxu0 %v9496_v61  ;;  %7643 = vmatprep.mubr.bf16.mxu0 %v10629_v5  ;;  %v4320_v23 = vld [vmem:[#allocation3 + $0x4b0] sm:$0xff]  ;;  %v9464_v61 = vcombine.low %v4196_v25, %v4200_v38 }
 0x44d   :  { %v7358_v34 = vpop.f32.mrf.mxu1  ;;  %7603 = vmatmul.mubr.bf16.vlgmr.msra.gmra.mxu1 %v10670_v19  ;;  %v7319_v40 = vpop.f32.mrf.mxu0  ;;  %7613 = vmatprep.subr.bf16.mxu0 %v9489_v6  ;;  %v9457_v6 = vcombine.high %v4188_v0, %v4192_v4  ;;  %v4312_v27 = vld [vmem:[#allocation3 + $0x470] sm:$0xff]  ;;  %v9584_v16 = vcombine.low %v4316_v7, %v4320_v23 }
 0x44e   :  { %7653 = vmatpush1.bf16.msra.mxu1 %v9624_v9  ;;  %v10686_v45 = vadd.f32 %v7358_v34, %v7318_v20  ;;  %v7320_v56 = vadd.f32 %v7319_v40, %v4690_v10  ;;  %7684 = vmatprep.mubr.bf16.mxu1 %v10634_v8  ;;  %v9592_v9 = vcombine.low %v4324_v53, %v4328_v2  ;;  %v4176_v40 = vld [vmem:[#allocation3 + $0x30] sm:$0xff] }
 0x44f   :  { %v7360_v62 = vpop.f32.mrf.mxu1  ;;  %7654 = vmatprep.subr.bf16.mxu1 %v9617_v31  ;;  %v7321_v30 = vpop.f32.mrf.mxu0  ;;  %v9585_v10 = vcombine.high %v4316_v7, %v4320_v23  ;;  %v4180_v31 = vld [vmem:[#allocation3 + $0x50] sm:$0xff]  ;;  %v9577_v34 = vcombine.high %v4308_v13, %v4312_v27  ;;  %v9688_v53 = vcombine.low %v4420_v44, %v4424_v46 }
 0x450   :  { %v10690_v42 = vadd.f32 %v7360_v62, %v7320_v56  ;;  %7614 = vmatpush1.bf16.msra.mxu0 %v9488_v35  ;;  %v9449_v20 = vcombine.high %v4180_v31, %v4184_v22  ;;  %v4172_v35 = vld [vmem:[#allocation3 + $0x10] sm:$0xff]  ;;  %v9448_v56 = vcombine.low %v4180_v31, %v4184_v22  ;;  %v9576_v62 = vcombine.low %v4308_v13, %v4312_v27 }
 0x451   :  { %v7362_v29 = vpop.f32.mrf.mxu1  ;;  %v7322_v48 = vpop.f32.mrf.mxu0  ;;  %7615 = vmatprep.subr.bf16.mxu0 %v9481_v36  ;;  %v4304_v36 = vld [vmem:[#allocation3 + $0x430] sm:$0xff] }
 0x452   :  { %7655 = vmatpush1.bf16.msra.mxu1 %v9616_v43  ;;  %v4300_v43 = vld [vmem:[#allocation3 + $0x410] sm:$0xff]  ;;  %v9440_v29 = vcombine.low %v4172_v35, %v4176_v40 }
 0x453   :  { %v7363_v52 = vpop.f32.mrf.mxu1  ;;  %7656 = vmatprep.subr.bf16.mxu1 %v9609_v39  ;;  %v9441_v39 = vcombine.high %v4172_v35, %v4176_v40  ;;  %v9569_v33 = vcombine.high %v4300_v43, %v4304_v36  ;;  %v4296_v30 = vld [vmem:[#allocation3 + $0x3f0] sm:$0xff] }
 0x454   :  { %7616 = vmatpush1.bf16.msra.mxu0 %v9480_v1  ;;  %v9568_v1 = vcombine.low %v4300_v43, %v4304_v36  ;;  %v9561_v48 = vcombine.high %v4292_v54, %v4296_v30  ;;  %v4288_v52 = vld [vmem:[#allocation3 + $0x3b0] sm:$0xff]  ;;  %v9560_v38 = vcombine.low %v4292_v54, %v4296_v30 }
 0x455   :  { %7617 = vmatprep.subr.bf16.mxu0 %v9473_v50  ;;  %v4284_v50 = vld [vmem:[#allocation3 + $0x390] sm:$0xff] }
 0x456   :  { %7657 = vmatpush1.bf16.msra.mxu1 %v9608_v49  ;;  %v9689_v49 = vcombine.high %v4420_v44, %v4424_v46  ;;  %v4416_v25 = vld [vmem:[#allocation3 + $0x7b0] sm:$0xff]  ;;  %v9553_v2 = vcombine.high %v4284_v50, %v4288_v52  ;;  %v9552_v4 = vcombine.low %v4284_v50, %v4288_v52 }
 0x457   :  { %7658 = vmatprep.subr.bf16.mxu1 %v9601_v58  ;;  %v4412_v58 = vld [vmem:[#allocation3 + $0x790] sm:$0xff] }
 0x458   :  { %7618 = vmatpush1.bf16.msra.mxu0 %v9472_v57  ;;  %v9681_v57 = vcombine.high %v4412_v58, %v4416_v25  ;;  %v4408_v0 = vld [vmem:[#allocation3 + $0x770] sm:$0xff]  ;;  %v9680_v7 = vcombine.low %v4412_v58, %v4416_v25 }
 0x459   :  { %7619 = vmatprep.subr.bf16.mxu0 %v9465_v32  ;;  %v4280_v32 = vld [vmem:[#allocation3 + $0x370] sm:$0xff] }
 0x45a   :  { %7659 = vmatpush1.bf16.msra.mxu1 %v9600_v41  ;;  %v4276_v41 = vld [vmem:[#allocation3 + $0x350] sm:$0xff] }
 0x45b   :  { %7660 = vmatprep.subr.bf16.mxu1 %v9593_v24  ;;  %v4404_v24 = vld [vmem:[#allocation3 + $0x750] sm:$0xff]  ;;  %v9545_v23 = vcombine.high %v4276_v41, %v4280_v32  ;;  %v9544_v22 = vcombine.low %v4276_v41, %v4280_v32 }
 0x45c   :  { %7620 = vmatpush1.bf16.msra.mxu0 %v9464_v61  ;;  %v9673_v61 = vcombine.high %v4404_v24, %v4408_v0  ;;  %v4400_v31 = vld [vmem:[#allocation3 + $0x730] sm:$0xff]  ;;  %v9672_v13 = vcombine.low %v4404_v24, %v4408_v0 }
 0x45d   :  { %7621 = vmatprep.subr.bf16.mxu0 %v9457_v6  ;;  %v4272_v6 = vld [vmem:[#allocation3 + $0x330] sm:$0xff] }
 0x45e   :  { %7661 = vmatpush1.bf16.msra.mxu1 %v9592_v9  ;;  %v4268_v9 = vld [vmem:[#allocation3 + $0x310] sm:$0xff] }
 0x45f   :  { %7662 = vmatprep.subr.bf16.mxu1 %v9585_v10  ;;  %v4396_v10 = vld [vmem:[#allocation3 + $0x710] sm:$0xff]  ;;  %v9537_v27 = vcombine.high %v4268_v9, %v4272_v6  ;;  %v9536_v40 = vcombine.low %v4268_v9, %v4272_v6 }
 0x460   :  { %7622 = vmatpush1.bf16.msra.mxu0 %v9456_v60  ;;  %v9665_v60 = vcombine.high %v4396_v10, %v4400_v31  ;;  %v4392_v35 = vld [vmem:[#allocation3 + $0x6f0] sm:$0xff]  ;;  %v9664_v43 = vcombine.low %v4396_v10, %v4400_v31 }
 0x461   :  { %7623 = vmatprep.subr.bf16.mxu0 %v9449_v20  ;;  %v4264_v20 = vld [vmem:[#allocation3 + $0x2f0] sm:$0xff] }
 0x462   :  { %7663 = vmatpush1.bf16.msra.mxu1 %v9584_v16  ;;  %v4260_v16 = vld [vmem:[#allocation3 + $0x2d0] sm:$0xff] }
 0x463   :  { %7664 = vmatprep.subr.bf16.mxu1 %v9577_v34  ;;  %v4388_v34 = vld [vmem:[#allocation3 + $0x6d0] sm:$0xff]  ;;  %v9529_v36 = vcombine.high %v4260_v16, %v4264_v20  ;;  %v9528_v30 = vcombine.low %v4260_v16, %v4264_v20 }
 0x464   :  { %7624 = vmatpush1.bf16.msra.mxu0 %v9448_v56  ;;  %v9657_v56 = vcombine.high %v4388_v34, %v4392_v35  ;;  %v4384_v54 = vld [vmem:[#allocation3 + $0x6b0] sm:$0xff]  ;;  %v9656_v44 = vcombine.low %v4388_v34, %v4392_v35 }
 0x465   :  { %7625 = vmatprep.subr.bf16.mxu0 %v9441_v39  ;;  %v4256_v39 = vld [vmem:[#allocation3 + $0x2b0] sm:$0xff] }
 0x466   :  { %7665 = vmatpush1.bf16.msra.mxu1 %v9576_v62  ;;  %v4252_v62 = vld [vmem:[#allocation3 + $0x290] sm:$0xff] }
 0x467   :  { %7666 = vmatprep.subr.bf16.mxu1 %v9569_v33  ;;  %v4380_v33 = vld [vmem:[#allocation3 + $0x690] sm:$0xff]  ;;  %v9521_v46 = vcombine.high %v4252_v62, %v4256_v39  ;;  %v9520_v52 = vcombine.low %v4252_v62, %v4256_v39 }
 0x468   :  { %7626 = vmatpush1.bf16.msra.mxu0 %v9440_v29  ;;  %v9649_v29 = vcombine.high %v4380_v33, %v4384_v54  ;;  %v4376_v50 = vld [vmem:[#allocation3 + $0x670] sm:$0xff]  ;;  %v9648_v58 = vcombine.low %v4380_v33, %v4384_v54 }
 0x469   :  { %7627 = vmatprep.subr.bf16.mxu0 %v9561_v48  ;;  %v4248_v48 = vld [vmem:[#allocation3 + $0x270] sm:$0xff] }
 0x46a   :  { %7667 = vmatpush1.bf16.msra.mxu1 %v9568_v1  ;;  %v4244_v1 = vld [vmem:[#allocation3 + $0x250] sm:$0xff] }
 0x46b   :  { %7668 = vmatprep.subr.bf16.mxu1 %v9689_v49  ;;  %v4372_v49 = vld [vmem:[#allocation3 + $0x650] sm:$0xff]  ;;  %v9513_v25 = vcombine.high %v4244_v1, %v4248_v48  ;;  %v9512_v32 = vcombine.low %v4244_v1, %v4248_v48 }
 0x46c   :  { %7628 = vmatpush2.bf16.msra.mxu0 %v9560_v38  ;;  %v9641_v38 = vcombine.high %v4372_v49, %v4376_v50  ;;  %v4368_v41 = vld [vmem:[#allocation3 + $0x630] sm:$0xff]  ;;  %v9640_v24 = vcombine.low %v4372_v49, %v4376_v50 }
 0x46d   :  { %7629 = vmatprep.subr.bf16.mxu0 %v9553_v2  ;;  %v4240_v2 = vld [vmem:[#allocation3 + $0x230] sm:$0xff] }
 0x46e   :  { %7669 = vmatpush2.bf16.msra.mxu1 %v9688_v53  ;;  %v4236_v53 = vld [vmem:[#allocation3 + $0x210] sm:$0xff] }
 0x46f   :  { %7670 = vmatprep.subr.bf16.mxu1 %v9681_v57  ;;  %v4364_v57 = vld [vmem:[#allocation3 + $0x610] sm:$0xff]  ;;  %v9505_v0 = vcombine.high %v4236_v53, %v4240_v2  ;;  %v9504_v6 = vcombine.low %v4236_v53, %v4240_v2 }
 0x470   :  { %7630 = vmatpush2.bf16.msra.mxu0 %v9552_v4  ;;  %v9633_v4 = vcombine.high %v4364_v57, %v4368_v41  ;;  %v4616_v9 = vld [vmem:[#allocation3 + $0xdf0] sm:$0xff]  ;;  %v9632_v10 = vcombine.low %v4364_v57, %v4368_v41 }
 0x471   :  { %7631 = vmatprep.subr.bf16.mxu0 %v9545_v23  ;;  %v4488_v23 = vld [vmem:[#allocation3 + $0x9f0] sm:$0xff] }
 0x472   :  { %7671 = vmatpush2.bf16.msra.mxu1 %v9680_v7  ;;  %v4484_v7 = vld [vmem:[#allocation3 + $0x9d0] sm:$0xff] }
 0x473   :  { %7672 = vmatprep.subr.bf16.mxu1 %v9673_v61  ;;  %v4612_v61 = vld [vmem:[#allocation3 + $0xdd0] sm:$0xff]  ;;  %v9753_v31 = vcombine.high %v4484_v7, %v4488_v23  ;;  %v9752_v20 = vcombine.low %v4484_v7, %v4488_v23 }
 0x474   :  { %7632 = vmatpush2.bf16.msra.mxu0 %v9544_v22  ;;  %v9881_v22 = vcombine.high %v4612_v61, %v4616_v9  ;;  %v4608_v16 = vld [vmem:[#allocation3 + $0xdb0] sm:$0xff]  ;;  %v9880_v34 = vcombine.low %v4612_v61, %v4616_v9 }
 0x475   :  { %7633 = vmatprep.subr.bf16.mxu0 %v9537_v27  ;;  %v4480_v27 = vld [vmem:[#allocation3 + $0x9b0] sm:$0xff] }
 0x476   :  { %7673 = vmatpush2.bf16.msra.mxu1 %v9672_v13  ;;  %v4476_v13 = vld [vmem:[#allocation3 + $0x990] sm:$0xff] }
 0x477   :  { %7674 = vmatprep.subr.bf16.mxu1 %v9665_v60  ;;  %v4604_v60 = vld [vmem:[#allocation3 + $0xd90] sm:$0xff]  ;;  %v9745_v35 = vcombine.high %v4476_v13, %v4480_v27 }
 0x478   :  { %7634 = vmatpush2.bf16.msra.mxu0 %v9536_v40  ;;  %v9873_v40 = vcombine.high %v4604_v60, %v4608_v16  ;;  %v4596_v62 = vld [vmem:[#allocation3 + $0xd50] sm:$0xff] }
 0x479   :  { %7635 = vmatprep.subr.bf16.mxu0 %v9529_v36  ;;  %v4472_v36 = vld [vmem:[#allocation3 + $0x970] sm:$0xff] }
 0x47a   :  { %7675 = vmatpush2.bf16.msra.mxu1 %v9664_v43  ;;  %v4468_v43 = vld [vmem:[#allocation3 + $0x950] sm:$0xff] }
 0x47b   :  { %7676 = vmatprep.subr.bf16.mxu1 %v9657_v56  ;;  %v4600_v39 = vld [vmem:[#allocation3 + $0xd70] sm:$0xff]  ;;  %v9736_v41 = vcombine.low %v4468_v43, %v4472_v36 }
 0x47c   :  { %7636 = vmatpush2.bf16.msra.mxu0 %v9528_v30  ;;  %v9744_v30 = vcombine.low %v4476_v13, %v4480_v27  ;;  %v9865_v50 = vcombine.high %v4596_v62, %v4600_v39  ;;  %v4452_v61 = vld [vmem:[#allocation3 + $0x8d0] sm:$0xff] }
 0x47d   :  { %7637 = vmatprep.subr.bf16.mxu0 %v9521_v46  ;;  %v9872_v46 = vcombine.low %v4604_v60, %v4608_v16  ;;  %v4456_v9 = vld [vmem:[#allocation3 + $0x8f0] sm:$0xff] }
 0x47e   :  { %7677 = vmatpush2.bf16.msra.mxu1 %v9656_v44  ;;  %v9721_v60 = vcombine.high %v4452_v61, %v4456_v9 }
 0x47f   :  { %7678 = vmatprep.subr.bf16.mxu1 %v9649_v29  ;;  %v9737_v29 = vcombine.high %v4468_v43, %v4472_v36  ;;  %v4572_v43 = vld [vmem:[#allocation3 + $0xc90] sm:$0xff] }
 0x480   :  { %7638 = vmatpush2.bf16.msra.mxu0 %v9520_v52  ;;  %v4460_v52 = vld [vmem:[#allocation3 + $0x910] sm:$0xff] }
 0x481   :  { %7639 = vmatprep.subr.bf16.mxu0 %v9513_v25  ;;  %v4588_v25 = vld [vmem:[#allocation3 + $0xd10] sm:$0xff] }
 0x482   :  { %7679 = vmatpush2.bf16.msra.mxu1 %v9648_v58  ;;  %v4464_v58 = vld [vmem:[#allocation3 + $0x930] sm:$0xff] }
 0x483   :  { %7680 = vmatprep.subr.bf16.mxu1 %v9641_v38  ;;  %v4592_v38 = vld [vmem:[#allocation3 + $0xd30] sm:$0xff]  ;;  %v9728_v13 = vcombine.low %v4460_v52, %v4464_v58 }
 0x484   :  { %7640 = vmatpush2.bf16.msra.mxu0 %v9512_v32  ;;  %v9864_v32 = vcombine.low %v4596_v62, %v4600_v39  ;;  %v9857_v23 = vcombine.high %v4588_v25, %v4592_v38  ;;  %v9856_v27 = vcombine.low %v4588_v25, %v4592_v38  ;;  %v4576_v36 = vld [vmem:[#allocation3 + $0xcb0] sm:$0xff]  ;;  %v9720_v39 = vcombine.low %v4452_v61, %v4456_v9 }
 0x485   :  { %7641 = vmatprep.subr.bf16.mxu0 %v9505_v0  ;;  %v9840_v25 = vcombine.low %v4572_v43, %v4576_v36 }
 0x486   :  { %7681 = vmatpush2.bf16.msra.mxu1 %v9640_v24  ;;  %v9729_v24 = vcombine.high %v4460_v52, %v4464_v58 }
 0x487   :  { %7682 = vmatprep.subr.bf16.mxu1 %v9633_v4 }
 0x488   :  { %7642 = vmatpush2.bf16.msra.mxu0 %v9504_v6  ;;  %v4580_v6 = vld [vmem:[#allocation3 + $0xcd0] sm:$0xff] }
 0x489   :  { %7693 = vmatprep.subr.bf16.mxu0 %v9753_v31 }
 0x48a   :  { %7683 = vmatpush2.bf16.msra.mxu1 %v9632_v10  ;;  %v4584_v10 = vld [vmem:[#allocation3 + $0xcf0] sm:$0xff] }
 0x48b   :  { %7734 = vmatprep.subr.bf16.mxu1 %v9881_v22  ;;  %v7399_v56 = vpop.f32.mrf.mxu0  ;;  %7644 = vmatmul.mubr.bf16.vlgmr.msra.gmra.mxu0 %v10641_v3 }
 0x48c   :  { %v7400_v33 = vadd.f32 %v7399_v56, %v10686_v45  ;;  %7694 = vmatpush1.bf16.msra.mxu0 %v9752_v20  ;;  %7725 = vmatprep.mubr.bf16.mxu0 %v10651_v47 }
 0x48d   :  { %v7440_v54 = vpop.f32.mrf.mxu1  ;;  %7685 = vmatmul.mubr.bf16.vlgmr.msra.gmra.mxu1 %v10646_v37  ;;  %v7401_v44 = vpop.f32.mrf.mxu0  ;;  %7695 = vmatprep.subr.bf16.mxu0 %v9745_v35  ;;  %v4444_v35 = vld [vmem:[#allocation3 + $0x890] sm:$0xff] }
 0x48e   :  { %7735 = vmatpush1.bf16.msra.mxu1 %v9880_v34  ;;  %v10695_v1 = vadd.f32 %v7440_v54, %v7400_v33  ;;  %v7402_v48 = vadd.f32 %v7401_v44, %v10690_v42  ;;  %7766 = vmatprep.mubr.bf16.mxu1 %v10657_v21  ;;  %v9849_v34 = vcombine.high %v4580_v6, %v4584_v10 }
 0x48f   :  { %v7442_v49 = vpop.f32.mrf.mxu1  ;;  %7736 = vmatprep.subr.bf16.mxu1 %v9873_v40  ;;  %v7403_v45 = vpop.f32.mrf.mxu0  ;;  %v4448_v40 = vld [vmem:[#allocation3 + $0x8b0] sm:$0xff]  ;;  %v9848_v33 = vcombine.low %v4580_v6, %v4584_v10 }
 0x490   :  { %v7939_v53 = vrot.slane %v10695_v1, 4  ;;  %v10701_v2 = vadd.f32 %v7442_v49, %v7402_v48  ;;  %7696 = vmatpush1.bf16.msra.mxu0 %v9744_v30  ;;  %v9713_v54 = vcombine.high %v4444_v35, %v4448_v40  ;;  %v4440_v48 = vld [vmem:[#allocation3 + $0x870] sm:$0xff]  ;;  %v9712_v45 = vcombine.low %v4444_v35, %v4448_v40 }
 0x491   :  { %v7444_v57 = vpop.f32.mrf.mxu1  ;;  %v7404_v42 = vpop.f32.mrf.mxu0  ;;  %7697 = vmatprep.subr.bf16.mxu0 %v9737_v29  ;;  %v4436_v29 = vld [vmem:[#allocation3 + $0x850] sm:$0xff] }
 0x492   :  { %7737 = vmatpush1.bf16.msra.mxu1 %v9872_v46  ;;  %v7940_v0 = vadd.f32 %v7939_v53, %v10695_v1  ;;  %v7945_v4 = vrot.slane %v10701_v2, 4  ;;  %v9841_v46 = vcombine.high %v4572_v43, %v4576_v36  ;;  %v4564_v49 = vld [vmem:[#allocation3 + $0xc50] sm:$0xff]  ;;  %v9705_v38 = vcombine.high %v4436_v29, %v4440_v48 }
 0x493   :  { %v7445_v7 = vpop.f32.mrf.mxu1  ;;  %7738 = vmatprep.subr.bf16.mxu1 %v9865_v50  ;;  %v4568_v50 = vld [vmem:[#allocation3 + $0xc70] sm:$0xff] }
 0x494   :  { %v7941_v31 = vrot.slane %v7940_v0, 2  ;;  %v7946_v22 = vadd.f32 %v7945_v4, %v10701_v2  ;;  %7698 = vmatpush1.bf16.msra.mxu0 %v9736_v41  ;;  %v9833_v41 = vcombine.high %v4564_v49, %v4568_v50  ;;  %v4428_v42 = vld [vmem:[#allocation3 + $0x810] sm:$0xff]  ;;  %v9832_v61 = vcombine.low %v4564_v49, %v4568_v50 }
 0x495   :  { %7699 = vmatprep.subr.bf16.mxu0 %v9729_v24  ;;  %v4556_v24 = vld [vmem:[#allocation3 + $0xc10] sm:$0xff] }
 0x496   :  { %7739 = vmatpush1.bf16.msra.mxu1 %v9864_v32  ;;  %v7942_v16 = vadd.f32 %v7941_v31, %v7940_v0  ;;  %v7947_v20 = vrot.slane %v7946_v22, 2  ;;  %v4432_v32 = vld [vmem:[#allocation3 + $0x830] sm:$0xff] }
 0x497   :  { %7740 = vmatprep.subr.bf16.mxu1 %v9857_v23  ;;  %v4560_v0 = vld [vmem:[#allocation3 + $0xc30] sm:$0xff]  ;;  %v9704_v23 = vcombine.low %v4436_v29, %v4440_v48 }
 0x498   :  { %v7943_v56 = vrot.slane %v7942_v16, 1  ;;  %v7948_v62 = vadd.f32 %v7947_v20, %v7946_v22  ;;  %7700 = vmatpush1.bf16.msra.mxu0 %v9728_v13  ;;  %v9825_v10 = vcombine.high %v4556_v24, %v4560_v0  ;;  %v4548_v31 = vld [vmem:[#allocation3 + $0xbd0] sm:$0xff]  ;;  %v9824_v20 = vcombine.low %v4556_v24, %v4560_v0 }
 0x499   :  { %7701 = vmatprep.subr.bf16.mxu0 %v9721_v60  ;;  %v4552_v22 = vld [vmem:[#allocation3 + $0xbf0] sm:$0xff] }
 0x49a   :  { %7741 = vmatpush1.bf16.msra.mxu1 %v9856_v27  ;;  %v7944_v30 = vadd.f32 %v7943_v56, %v7942_v16  ;;  %v7949_v44 = vrot.slane %v7948_v62, 1  ;;  %v4676_v13 = vld [vmem:[#allocation3 + $0xfd0] sm:$0xff] }
 0x49b   :  { %7742 = vmatprep.subr.bf16.mxu1 %v9849_v34  ;;  %v4680_v27 = vld [vmem:[#allocation3 + $0xff0] sm:$0xff]  ;;  %v9817_v34 = vcombine.high %v4548_v31, %v4552_v22 }
 0x49c   :  { %v7987_v52 = vmul.f32 0.125, %v7944_v30  ;;  %v7950_v58 = vadd.f32 %v7949_v44, %v7948_v62  ;;  %7702 = vmatpush1.bf16.msra.mxu0 %v9720_v39  ;;  %v9945_v43 = vcombine.high %v4676_v13, %v4680_v27  ;;  %v4540_v36 = vld [vmem:[#allocation3 + $0xb90] sm:$0xff]  ;;  %v9816_v30 = vcombine.low %v4548_v31, %v4552_v22 }
 0x49d   :  { %7703 = vmatprep.subr.bf16.mxu0 %v9713_v54  ;;  %v4544_v56 = vld [vmem:[#allocation3 + $0xbb0] sm:$0xff]  ;;  %v9944_v44 = vcombine.low %v4676_v13, %v4680_v27 }
 0x49e   :  { %7743 = vmatpush1.bf16.msra.mxu1 %v9848_v33  ;;  %v10707_v53 = vsub.f32 %v10695_v1, %v7987_v52  ;;  %v7988_v57 = vmul.f32 0.125, %v7950_v58  ;;  %v9697_v1 = vcombine.high %v4428_v42, %v4432_v32  ;;  %v4668_v62 = vld [vmem:[#allocation3 + $0xf90] sm:$0xff] }
 0x49f   :  { %7744 = vmatprep.subr.bf16.mxu1 %v9841_v46  ;;  %v4672_v39 = vld [vmem:[#allocation3 + $0xfb0] sm:$0xff]  ;;  %v9809_v46 = vcombine.high %v4540_v36, %v4544_v56 }
 0x4a0   :  { %v8003_v4 = vmul.f32 %v10707_v53, %v10707_v53  ;;  %v10712_v7 = vsub.f32 %v10701_v2, %v7988_v57  ;;  %7704 = vmatpush1.bf16.msra.mxu0 %v9712_v45  ;;  %v9696_v2 = vcombine.low %v4428_v42, %v4432_v32  ;;  %v9937_v49 = vcombine.high %v4668_v62, %v4672_v39  ;;  %v4532_v50 = vld [vmem:[#allocation3 + $0xb50] sm:$0xff] }
 0x4a1   :  { %7705 = vmatprep.subr.bf16.mxu0 %v9705_v38  ;;  %v4536_v52 = vld [vmem:[#allocation3 + $0xb70] sm:$0xff]  ;;  %v9808_v57 = vcombine.low %v4540_v36, %v4544_v56 }
 0x4a2   :  { %7745 = vmatpush1.bf16.msra.mxu1 %v9840_v25  ;;  %v8011_v9 = vrot.slane %v8003_v4, 4  ;;  %v8004_v6 = vmul.f32 %v10712_v7, %v10712_v7  ;;  %v4660_v58 = vld [vmem:[#allocation3 + $0xf50] sm:$0xff]  ;;  %v9801_v42 = vcombine.high %v4532_v50, %v4536_v52 }
 0x4a3   :  { %7746 = vmatprep.subr.bf16.mxu1 %v9833_v41  ;;  %v4664_v45 = vld [vmem:[#allocation3 + $0xf70] sm:$0xff]  ;;  %v9936_v41 = vcombine.low %v4668_v62, %v4672_v39 }
 0x4a4   :  { %v8012_v60 = vadd.f32 %v8011_v9, %v8003_v4  ;;  %v8017_v16 = vrot.slane %v8004_v6, 4  ;;  %7706 = vmatpush1.bf16.msra.mxu0 %v9704_v23  ;;  %v9929_v0 = vcombine.high %v4660_v58, %v4664_v45  ;;  %v4524_v4 = vld [vmem:[#allocation3 + $0xb10] sm:$0xff]  ;;  %v9928_v31 = vcombine.low %v4660_v58, %v4664_v45 }
 0x4a5   :  { %7707 = vmatprep.subr.bf16.mxu0 %v9697_v1  ;;  %v4528_v23 = vld [vmem:[#allocation3 + $0xb30] sm:$0xff]  ;;  %v8095_v45 = vrot.slane %v10424_v14, %v10461_v51 }
 0x4a6   :  { %7747 = vmatpush1.bf16.msra.mxu1 %v9832_v61  ;;  %v8013_v35 = vrot.slane %v8012_v60, 2  ;;  %v8018_v40 = vadd.f32 %v8017_v16, %v8004_v6  ;;  %v4652_v61 = vld [vmem:[#allocation3 + $0xf10] sm:$0xff]  ;;  %v9793_v22 = vcombine.high %v4524_v4, %v4528_v23 }
 0x4a7   :  { %7748 = vmatprep.subr.bf16.mxu1 %v9825_v10  ;;  %v4656_v1 = vld [vmem:[#allocation3 + $0xf30] sm:$0xff]  ;;  %v9800_v10 = vcombine.low %v4532_v50, %v4536_v52 }
 0x4a8   :  { %v8014_v33 = vadd.f32 %v8013_v35, %v8012_v60  ;;  %v8019_v54 = vrot.slane %v8018_v40, 2  ;;  %7708 = vmatpush1.bf16.msra.mxu0 %v9696_v2  ;;  %v9921_v27 = vcombine.high %v4652_v61, %v4656_v1  ;;  %v4516_v60 = vld [vmem:[#allocation3 + $0xad0] sm:$0xff]  ;;  %v9920_v35 = vcombine.low %v4652_v61, %v4656_v1 }
 0x4a9   :  { %7709 = vmatprep.subr.bf16.mxu0 %v9817_v34  ;;  %v4520_v16 = vld [vmem:[#allocation3 + $0xaf0] sm:$0xff]  ;;  %v9792_v34 = vcombine.low %v4524_v4, %v4528_v23  ;;  %v8099_v4 = vrot.slane %v10424_v14, %v10464_v55 }
 0x4aa   :  { %7749 = vmatpush1.bf16.msra.mxu1 %v9824_v20  ;;  %v8015_v29 = vrot.slane %v8014_v33, 1  ;;  %v8020_v48 = vadd.f32 %v8019_v54, %v8018_v40  ;;  %v4644_v2 = vld [vmem:[#allocation3 + $0xed0] sm:$0xff]  ;;  %v9785_v40 = vcombine.high %v4516_v60, %v4520_v16 }
 0x4ab   :  { %7750 = vmatprep.subr.bf16.mxu1 %v9945_v43  ;;  %v4648_v20 = vld [vmem:[#allocation3 + $0xef0] sm:$0xff] }
 0x4ac   :  { %v8016_v25 = vadd.f32 %v8015_v29, %v8014_v33  ;;  %v8021_v38 = vrot.slane %v8020_v48, 1  ;;  %7710 = vmatpush2.bf16.msra.mxu0 %v9816_v30  ;;  %v9913_v43 = vcombine.high %v4644_v2, %v4648_v20  ;;  %v4508_v36 = vld [vmem:[#allocation3 + $0xa90] sm:$0xff]  ;;  %v9784_v33 = vcombine.low %v4516_v60, %v4520_v16 }
 0x4ad   :  { %7711 = vmatprep.subr.bf16.mxu0 %v9809_v46  ;;  %v4512_v56 = vld [vmem:[#allocation3 + $0xab0] sm:$0xff]  ;;  %v9912_v54 = vcombine.low %v4644_v2, %v4648_v20 }
 0x4ae   :  { %7751 = vmatpush2.bf16.msra.mxu1 %v9944_v44  ;;  %v8059_v32 = vmul.f32 0.125, %v8016_v25  ;;  %v8022_v24 = vadd.f32 %v8021_v38, %v8020_v48  ;;  %v4636_v62 = vld [vmem:[#allocation3 + $0xe90] sm:$0xff]  ;;  %v9777_v30 = vcombine.high %v4508_v36, %v4512_v56  ;;  %v9776_v50 = vcombine.low %v4508_v36, %v4512_v56  ;;  %v4349_v36 = vld [vmem:[#allocation3 + $0x598] sm:$0xff] }
 0x4af   :  { %7752 = vmatprep.subr.bf16.mxu1 %v9937_v49  ;;  %v4640_v39 = vld [vmem:[#allocation3 + $0xeb0] sm:$0xff]  ;;  %v4353_v56 = vld [vmem:[#allocation3 + $0x5b8] sm:$0xff] }
 0x4b0   :  { %v8067_v9 = vadd.f32 1e-05, %v8059_v32  ;;  %v8060_v6 = vmul.f32 0.125, %v8022_v24  ;;  %7712 = vmatpush2.bf16.msra.mxu0 %v9808_v57  ;;  %v9905_v44 = vcombine.high %v4636_v62, %v4640_v39  ;;  %v4500_v46 = vld [vmem:[#allocation3 + $0xa50] sm:$0xff]  ;;  %v9904_v52 = vcombine.low %v4636_v62, %v4640_v39 }
 0x4b1   :  { %7713 = vmatprep.subr.bf16.mxu0 %v9801_v42  ;;  %v4504_v29 = vld [vmem:[#allocation3 + $0xa70] sm:$0xff]  ;;  %v4694_v39 = vrot.slane %v10422_v11, %v10515_v59 }
 0x4b2   :  { %7753 = vmatpush2.bf16.msra.mxu1 %v9936_v41  ;;  %10127 = vrsqrt.f32 %v8067_v9  ;;  %v8068_v13 = vadd.f32 1e-05, %v8060_v6  ;;  %v4628_v48 = vld [vmem:[#allocation3 + $0xe50] sm:$0xff]  ;;  %v9769_v58 = vcombine.high %v4500_v46, %v4504_v29  ;;  %v9768_v23 = vcombine.low %v4500_v46, %v4504_v29  ;;  %v4213_v29 = vld [vmem:[#allocation3 + $0x158] sm:$0xff] }
 0x4b3   :  { %7754 = vmatprep.subr.bf16.mxu1 %v9929_v0  ;;  %v4632_v49 = vld [vmem:[#allocation3 + $0xe70] sm:$0xff]  ;;  %v8144_v0 = vrot.slane %v10426_v17, %v10461_v51  ;;  %v4233_v51 = vld [vmem:[#allocation3 + $0x1f8] sm:$0xff]  ;;  %v9619_v46 = vcombine.high %v4349_v36, %v4353_v56 }
 0x4b4   :  { %10129 = vrsqrt.f32 %v8068_v13  ;;  %7714 = vmatpush2.bf16.msra.mxu0 %v9800_v10  ;;  %v9897_v25 = vcombine.high %v4628_v48, %v4632_v49  ;;  %v4492_v38 = vld [vmem:[#allocation3 + $0xa10] sm:$0xff]  ;;  %v9896_v1 = vcombine.low %v4628_v48, %v4632_v49  ;;  %v4357_v13 = vld [vmem:[#allocation3 + $0x5d8] sm:$0xff] }
 0x4b5   :  { %7715 = vmatprep.subr.bf16.mxu0 %v9793_v22  ;;  %v4496_v57 = vld [vmem:[#allocation3 + $0xa30] sm:$0xff]  ;;  %v4229_v22 = vld [vmem:[#allocation3 + $0x1d8] sm:$0xff] }
 0x4b6   :  { %7755 = vmatpush2.bf16.msra.mxu1 %v9928_v31  ;;  %v4620_v42 = vld [vmem:[#allocation3 + $0xe10] sm:$0xff]  ;;  %v9761_v9 = vcombine.high %v4492_v38, %v4496_v57  ;;  %v8148_v31 = vrot.slane %v10426_v17, %v10464_v55  ;;  %v9760_v2 = vcombine.low %v4492_v38, %v4496_v57  ;;  %v4217_v48 = vld [vmem:[#allocation3 + $0x178] sm:$0xff]  ;;  %v9618_v57 = vcombine.low %v4349_v36, %v4353_v56 }
 0x4b7   :  { %7756 = vmatprep.subr.bf16.mxu1 %v9921_v27  ;;  %v4624_v32 = vld [vmem:[#allocation3 + $0xe30] sm:$0xff]  ;;  %v4361_v27 = vld [vmem:[#allocation3 + $0x5f8] sm:$0xff] }
 0x4b8   :  { %7716 = vmatpush2.bf16.msra.mxu0 %v9792_v34  ;;  %v9888_v20 = vcombine.low %v4620_v42, %v4624_v32  ;;  %v9499_v34 = vcombine.high %v4229_v22, %v4233_v51  ;;  %v9627_v55 = vcombine.high %v4357_v13, %v4361_v27  ;;  %v4193_v36 = vld [vmem:[#allocation3 + $0xb8] sm:$0xff] }
 0x4b9   :  { %7717 = vmatprep.subr.bf16.mxu0 %v9785_v40  ;;  %v4221_v40 = vld [vmem:[#allocation3 + $0x198] sm:$0xff] }
 0x4ba   :  { %7757 = vmatpush2.bf16.msra.mxu1 %v9920_v35  ;;  %v4317_v56 = vld [vmem:[#allocation3 + $0x498] sm:$0xff] }
 0x4bb   :  { %7758 = vmatprep.subr.bf16.mxu1 %v9913_v43  ;;  %v4225_v43 = vld [vmem:[#allocation3 + $0x1b8] sm:$0xff] }
 0x4bc   :  { %7718 = vmatpush2.bf16.msra.mxu0 %v9784_v33  ;;  %v9498_v33 = vcombine.low %v4229_v22, %v4233_v51 }
 0x4bd   :  { %7719 = vmatprep.subr.bf16.mxu0 %v9777_v30  ;;  %v9491_v30 = vcombine.high %v4221_v40, %v4225_v43 }
 0x4be   :  { %7759 = vmatpush2.bf16.msra.mxu1 %v9912_v54  ;;  %v9626_v54 = vcombine.low %v4357_v13, %v4361_v27 }
 0x4bf   :  { %7760 = vmatprep.subr.bf16.mxu1 %v9905_v44  ;;  %v10128_v41 = vpop.eup %10127  ;;  %v4698_v44 = vrot.slane %v10422_v11, %v10521_v63 }
 0x4c0   :  { %v8083_v24 = vmul.f32 %v10128_v41, %v10707_v53  ;;  %7720 = vmatpush2.bf16.msra.mxu0 %v9776_v50  ;;  %v9889_v53 = vcombine.high %v4620_v42, %v4624_v32  ;;  %v4341_v50 = vld [vmem:[#allocation3 + $0x558] sm:$0xff]  ;;  %v9483_v41 = vcombine.high %v4213_v29, %v4217_v48 }
 0x4c1   :  { %v10130_v61 = vpop.eup %10129  ;;  %7721 = vmatprep.subr.bf16.mxu0 %v9769_v58 }
 0x4c2   :  { %7761 = vmatpush2.bf16.msra.mxu1 %v9904_v52  ;;  %v8132_v6 = vmul.f32 %v8095_v45, %v8083_v24  ;;  %v8084_v10 = vmul.f32 %v10130_v61, %v10712_v7  ;;  %v4345_v52 = vld [vmem:[#allocation3 + $0x578] sm:$0xff] }
 0x4c3   :  { %7762 = vmatprep.subr.bf16.mxu1 %v9897_v25  ;;  %v9490_v25 = vcombine.low %v4221_v40, %v4225_v43  ;;  %v9610_v22 = vcombine.low %v4341_v50, %v4345_v52  ;;  %v4189_v43 = vld [vmem:[#allocation3 + $0x98] sm:$0xff] }
 0x4c4   :  { %v10726_v60 = vadd.f32 %v8144_v0, %v8132_v6  ;;  %v8133_v16 = vmul.f32 %v8099_v4, %v8084_v10  ;;  %7722 = vmatpush2.bf16.msra.mxu0 %v9768_v23  ;;  %v9611_v0 = vcombine.high %v4341_v50, %v4345_v52  ;;  %v4205_v4 = vld [vmem:[#allocation3 + $0x118] sm:$0xff]  ;;  %v9458_v50 = vcombine.low %v4189_v43, %v4193_v36 }
 0x4c5   :  { %7723 = vmatprep.subr.bf16.mxu0 %v9761_v9  ;;  %v4209_v23 = vld [vmem:[#allocation3 + $0x138] sm:$0xff] }
 0x4c6   :  { %7763 = vmatpush2.bf16.msra.mxu1 %v9896_v1  ;;  %v8189_v7 = vmax.f32 %v10726_v60, 0.0  ;;  %v10729_v35 = vadd.f32 %v8148_v31, %v8133_v16  ;;  %v4333_v1 = vld [vmem:[#allocation3 + $0x518] sm:$0xff]  ;;  %v9482_v31 = vcombine.low %v4213_v29, %v4217_v48  ;;  %v9475_v51 = vcombine.high %v4205_v4, %v4209_v23 }
 0x4c7   :  { %7764 = vmatprep.subr.bf16.mxu1 %v9889_v53  ;;  %v4337_v9 = vld [vmem:[#allocation3 + $0x538] sm:$0xff] }
 0x4c8   :  { %v8190_v62 = vmax.f32 %v10729_v35, 0.0  ;;  %7724 = vmatpush2.bf16.msra.mxu0 %v9760_v2  ;;  %v9603_v27 = vcombine.high %v4333_v1, %v4337_v9  ;;  %v4197_v16 = vld [vmem:[#allocation3 + $0xd8] sm:$0xff] }
 0x4c9   :  { %7775 = vmatprep.subr.bf16.mxu0 %v9499_v34  ;;  %v4325_v2 = vld [vmem:[#allocation3 + $0x4d8] sm:$0xff]  ;;  %v9474_v34 = vcombine.low %v4205_v4, %v4209_v23 }
 0x4ca   :  { %7765 = vmatpush2.bf16.msra.mxu1 %v9888_v20  ;;  %v4329_v20 = vld [vmem:[#allocation3 + $0x4f8] sm:$0xff] }
 0x4cb   :  { %7816 = vmatprep.subr.bf16.mxu1 %v9627_v55  ;;  %v7481_v49 = vpop.f32.mrf.mxu0  ;;  %7726 = vmatmul.mubr.bf16.vlgmr.msra.gmra.mxu0 %v10665_v28  ;;  %v9595_v40 = vcombine.high %v4325_v2, %v4329_v20  ;;  %v4185_v29 = vld [vmem:[#allocation3 + $0x78] sm:$0xff] }
 0x4cc   :  { %v7482_v58 = vadd.f32 %v7481_v49, %v4694_v39  ;;  %7776 = vmatpush1.bf16.msra.mxu0 %v9498_v33  ;;  %7807 = vmatprep.mubr.bf16.mxu0 %v10629_v5  ;;  %v4201_v5 = vld [vmem:[#allocation3 + $0xf8] sm:$0xff] }
 0x4cd   :  { %v7522_v45 = vpop.f32.mrf.mxu1  ;;  %7767 = vmatmul.mubr.bf16.vlgmr.msra.gmra.mxu1 %v10670_v19  ;;  %v7483_v38 = vpop.f32.mrf.mxu0  ;;  %7777 = vmatprep.subr.bf16.mxu0 %v9491_v30  ;;  %v9467_v55 = vcombine.high %v4197_v16, %v4201_v5  ;;  %v4321_v39 = vld [vmem:[#allocation3 + $0x4b8] sm:$0xff]  ;;  %v9466_v33 = vcombine.low %v4197_v16, %v4201_v5  ;;  %v9459_v30 = vcombine.high %v4189_v43, %v4193_v36 }
 0x4ce   :  { %7817 = vmatpush1.bf16.msra.mxu1 %v9626_v54  ;;  %v10738_v42 = vadd.f32 %v7522_v45, %v7482_v58  ;;  %v7484_v32 = vadd.f32 %v7483_v38, %v4698_v44  ;;  %7848 = vmatprep.mubr.bf16.mxu1 %v10634_v8  ;;  %v9602_v8 = vcombine.low %v4333_v1, %v4337_v9  ;;  %v4309_v48 = vld [vmem:[#allocation3 + $0x458] sm:$0xff] }
 0x4cf   :  { %v7524_v24 = vpop.f32.mrf.mxu1  ;;  %7818 = vmatprep.subr.bf16.mxu1 %v9619_v46  ;;  %v7485_v61 = vpop.f32.mrf.mxu0  ;;  %v9594_v54 = vcombine.low %v4325_v2, %v4329_v20  ;;  %v9587_v44 = vcombine.high %v4317_v56, %v4321_v39  ;;  %v4181_v46 = vld [vmem:[#allocation3 + $0x58] sm:$0xff]  ;;  %v9586_v52 = vcombine.low %v4317_v56, %v4321_v39 }
 0x4d0   :  { %v10742_v6 = vadd.f32 %v7524_v24, %v7484_v32  ;;  %7778 = vmatpush1.bf16.msra.mxu0 %v9490_v25  ;;  %v4313_v49 = vld [vmem:[#allocation3 + $0x478] sm:$0xff]  ;;  %v9451_v58 = vcombine.high %v4181_v46, %v4185_v29  ;;  %v9450_v32 = vcombine.low %v4181_v46, %v4185_v29 }
 0x4d1   :  { %v7526_v10 = vpop.f32.mrf.mxu1  ;;  %v7486_v53 = vpop.f32.mrf.mxu0  ;;  %7779 = vmatprep.subr.bf16.mxu0 %v9483_v41  ;;  %v9579_v45 = vcombine.high %v4309_v48, %v4313_v49  ;;  %v4173_v25 = vld [vmem:[#allocation3 + $0x18] sm:$0xff]  ;;  %v9578_v24 = vcombine.low %v4309_v48, %v4313_v49 }
 0x4d2   :  { %7819 = vmatpush1.bf16.msra.mxu1 %v9618_v57  ;;  %v4177_v38 = vld [vmem:[#allocation3 + $0x38] sm:$0xff] }
 0x4d3   :  { %v7527_v13 = vpop.f32.mrf.mxu1  ;;  %7820 = vmatprep.subr.bf16.mxu1 %v9611_v0  ;;  %v4301_v57 = vld [vmem:[#allocation3 + $0x418] sm:$0xff]  ;;  %v9443_v0 = vcombine.high %v4173_v25, %v4177_v38  ;;  %v9442_v10 = vcombine.low %v4173_v25, %v4177_v38 }
 0x4d4   :  { %7780 = vmatpush1.bf16.msra.mxu0 %v9482_v31  ;;  %v4305_v41 = vld [vmem:[#allocation3 + $0x438] sm:$0xff] }
 0x4d5   :  { %7781 = vmatprep.subr.bf16.mxu0 %v9475_v51  ;;  %v9571_v4 = vcombine.high %v4301_v57, %v4305_v41  ;;  %v4293_v23 = vld [vmem:[#allocation3 + $0x3d8] sm:$0xff]  ;;  %v9570_v31 = vcombine.low %v4301_v57, %v4305_v41 }
 0x4d6   :  { %7821 = vmatpush1.bf16.msra.mxu1 %v9610_v22  ;;  %v4297_v61 = vld [vmem:[#allocation3 + $0x3f8] sm:$0xff] }
 0x4d7   :  { %7822 = vmatprep.subr.bf16.mxu1 %v9603_v27  ;;  %v4421_v1 = vld [vmem:[#allocation3 + $0x7d8] sm:$0xff]  ;;  %v9563_v53 = vcombine.high %v4293_v23, %v4297_v61  ;;  %v9562_v5 = vcombine.low %v4293_v23, %v4297_v61 }
 0x4d8   :  { %7782 = vmatpush1.bf16.msra.mxu0 %v9474_v34  ;;  %v4425_v9 = vld [vmem:[#allocation3 + $0x7f8] sm:$0xff] }
 0x4d9   :  { %7783 = vmatprep.subr.bf16.mxu0 %v9467_v55  ;;  %v9691_v22 = vcombine.high %v4421_v1, %v4425_v9  ;;  %v4285_v51 = vld [vmem:[#allocation3 + $0x398] sm:$0xff]  ;;  %v9690_v2 = vcombine.low %v4421_v1, %v4425_v9 }
 0x4da   :  { %7823 = vmatpush1.bf16.msra.mxu1 %v9602_v8  ;;  %v4289_v13 = vld [vmem:[#allocation3 + $0x3b8] sm:$0xff] }
 0x4db   :  { %7824 = vmatprep.subr.bf16.mxu1 %v9595_v40  ;;  %v4413_v27 = vld [vmem:[#allocation3 + $0x798] sm:$0xff]  ;;  %v9555_v20 = vcombine.high %v4285_v51, %v4289_v13  ;;  %v9554_v36 = vcombine.low %v4285_v51, %v4289_v13 }
 0x4dc   :  { %7784 = vmatpush1.bf16.msra.mxu0 %v9466_v33  ;;  %v4417_v16 = vld [vmem:[#allocation3 + $0x7b8] sm:$0xff] }
 0x4dd   :  { %7785 = vmatprep.subr.bf16.mxu0 %v9459_v30  ;;  %v9683_v34 = vcombine.high %v4413_v27, %v4417_v16  ;;  %v4277_v8 = vld [vmem:[#allocation3 + $0x358] sm:$0xff]  ;;  %v9682_v56 = vcombine.low %v4413_v27, %v4417_v16 }
 0x4de   :  { %7825 = vmatpush1.bf16.msra.mxu1 %v9594_v54  ;;  %v4281_v55 = vld [vmem:[#allocation3 + $0x378] sm:$0xff] }
 0x4df   :  { %7826 = vmatprep.subr.bf16.mxu1 %v9587_v44  ;;  %v4405_v40 = vld [vmem:[#allocation3 + $0x758] sm:$0xff]  ;;  %v9547_v39 = vcombine.high %v4277_v8, %v4281_v55  ;;  %v9546_v29 = vcombine.low %v4277_v8, %v4281_v55 }
 0x4e0   :  { %7786 = vmatpush1.bf16.msra.mxu0 %v9458_v50  ;;  %v4409_v43 = vld [vmem:[#allocation3 + $0x778] sm:$0xff] }
 0x4e1   :  { %7787 = vmatprep.subr.bf16.mxu0 %v9451_v58  ;;  %v9675_v33 = vcombine.high %v4405_v40, %v4409_v43  ;;  %v4269_v54 = vld [vmem:[#allocation3 + $0x318] sm:$0xff]  ;;  %v9674_v48 = vcombine.low %v4405_v40, %v4409_v43 }
 0x4e2   :  { %7827 = vmatpush1.bf16.msra.mxu1 %v9586_v52  ;;  %v4273_v30 = vld [vmem:[#allocation3 + $0x338] sm:$0xff] }
 0x4e3   :  { %7828 = vmatprep.subr.bf16.mxu1 %v9579_v45  ;;  %v4397_v44 = vld [vmem:[#allocation3 + $0x718] sm:$0xff]  ;;  %v9539_v49 = vcombine.high %v4269_v54, %v4273_v30  ;;  %v9538_v38 = vcombine.low %v4269_v54, %v4273_v30 }
 0x4e4   :  { %7788 = vmatpush1.bf16.msra.mxu0 %v9450_v32  ;;  %v4401_v46 = vld [vmem:[#allocation3 + $0x738] sm:$0xff] }
 0x4e5   :  { %7789 = vmatprep.subr.bf16.mxu0 %v9443_v0  ;;  %v9667_v50 = vcombine.high %v4397_v44, %v4401_v46  ;;  %v4261_v52 = vld [vmem:[#allocation3 + $0x2d8] sm:$0xff]  ;;  %v9666_v57 = vcombine.low %v4397_v44, %v4401_v46 }
 0x4e6   :  { %7829 = vmatpush1.bf16.msra.mxu1 %v9578_v24  ;;  %v4265_v58 = vld [vmem:[#allocation3 + $0x2f8] sm:$0xff] }
 0x4e7   :  { %7830 = vmatprep.subr.bf16.mxu1 %v9571_v4  ;;  %v4389_v45 = vld [vmem:[#allocation3 + $0x6d8] sm:$0xff]  ;;  %v9531_v41 = vcombine.high %v4261_v52, %v4265_v58  ;;  %v9530_v61 = vcombine.low %v4261_v52, %v4265_v58 }
 0x4e8   :  { %7790 = vmatpush1.bf16.msra.mxu0 %v9442_v10  ;;  %v4393_v25 = vld [vmem:[#allocation3 + $0x6f8] sm:$0xff] }
 0x4e9   :  { %7791 = vmatprep.subr.bf16.mxu0 %v9563_v53  ;;  %v9659_v32 = vcombine.high %v4389_v45, %v4393_v25  ;;  %v4253_v24 = vld [vmem:[#allocation3 + $0x298] sm:$0xff]  ;;  %v9658_v1 = vcombine.low %v4389_v45, %v4393_v25 }
 0x4ea   :  { %7831 = vmatpush1.bf16.msra.mxu1 %v9570_v31  ;;  %v4257_v0 = vld [vmem:[#allocation3 + $0x2b8] sm:$0xff] }
 0x4eb   :  { %7832 = vmatprep.subr.bf16.mxu1 %v9691_v22  ;;  %v4381_v4 = vld [vmem:[#allocation3 + $0x698] sm:$0xff]  ;;  %v9523_v9 = vcombine.high %v4253_v24, %v4257_v0  ;;  %v9522_v13 = vcombine.low %v4253_v24, %v4257_v0 }
 0x4ec   :  { %7792 = vmatpush2.bf16.msra.mxu0 %v9562_v5  ;;  %v4385_v23 = vld [vmem:[#allocation3 + $0x6b8] sm:$0xff] }
 0x4ed   :  { %7793 = vmatprep.subr.bf16.mxu0 %v9555_v20  ;;  %v9651_v10 = vcombine.high %v4381_v4, %v4385_v23  ;;  %v4245_v31 = vld [vmem:[#allocation3 + $0x258] sm:$0xff]  ;;  %v9650_v27 = vcombine.low %v4381_v4, %v4385_v23 }
 0x4ee   :  { %7833 = vmatpush2.bf16.msra.mxu1 %v9690_v2  ;;  %v4249_v53 = vld [vmem:[#allocation3 + $0x278] sm:$0xff] }
 0x4ef   :  { %7834 = vmatprep.subr.bf16.mxu1 %v9683_v34  ;;  %v4373_v22 = vld [vmem:[#allocation3 + $0x658] sm:$0xff]  ;;  %v9515_v16 = vcombine.high %v4245_v31, %v4249_v53  ;;  %v9514_v55 = vcombine.low %v4245_v31, %v4249_v53 }
 0x4f0   :  { %7794 = vmatpush2.bf16.msra.mxu0 %v9554_v36  ;;  %v4377_v51 = vld [vmem:[#allocation3 + $0x678] sm:$0xff] }
 0x4f1   :  { %7795 = vmatprep.subr.bf16.mxu0 %v9547_v39  ;;  %v9643_v5 = vcombine.high %v4373_v22, %v4377_v51  ;;  %v4237_v2 = vld [vmem:[#allocation3 + $0x218] sm:$0xff]  ;;  %v9642_v40 = vcombine.low %v4373_v22, %v4377_v51 }
 0x4f2   :  { %7835 = vmatpush2.bf16.msra.mxu1 %v9682_v56  ;;  %v4241_v20 = vld [vmem:[#allocation3 + $0x238] sm:$0xff] }
 0x4f3   :  { %7836 = vmatprep.subr.bf16.mxu1 %v9675_v33  ;;  %v4365_v34 = vld [vmem:[#allocation3 + $0x618] sm:$0xff]  ;;  %v9507_v43 = vcombine.high %v4237_v2, %v4241_v20  ;;  %v9506_v30 = vcombine.low %v4237_v2, %v4241_v20 }
 0x4f4   :  { %7796 = vmatpush2.bf16.msra.mxu0 %v9546_v29  ;;  %v4369_v8 = vld [vmem:[#allocation3 + $0x638] sm:$0xff] }
 0x4f5   :  { %7797 = vmatprep.subr.bf16.mxu0 %v9539_v49  ;;  %v9635_v36 = vcombine.high %v4365_v34, %v4369_v8  ;;  %v4485_v56 = vld [vmem:[#allocation3 + $0x9d8] sm:$0xff]  ;;  %v9634_v44 = vcombine.low %v4365_v34, %v4369_v8 }
 0x4f6   :  { %7837 = vmatpush2.bf16.msra.mxu1 %v9674_v48  ;;  %v4489_v39 = vld [vmem:[#allocation3 + $0x9f8] sm:$0xff] }
 0x4f7   :  { %7838 = vmatprep.subr.bf16.mxu1 %v9667_v50  ;;  %v4613_v33 = vld [vmem:[#allocation3 + $0xdd8] sm:$0xff]  ;;  %v9755_v46 = vcombine.high %v4485_v56, %v4489_v39  ;;  %v9754_v58 = vcombine.low %v4485_v56, %v4489_v39 }
 0x4f8   :  { %7798 = vmatpush2.bf16.msra.mxu0 %v9538_v38  ;;  %v4617_v54 = vld [vmem:[#allocation3 + $0xdf8] sm:$0xff] }
 0x4f9   :  { %7799 = vmatprep.subr.bf16.mxu0 %v9531_v41  ;;  %v9883_v29 = vcombine.high %v4613_v33, %v4617_v54  ;;  %v4477_v48 = vld [vmem:[#allocation3 + $0x998] sm:$0xff]  ;;  %v9882_v45 = vcombine.low %v4613_v33, %v4617_v54 }
 0x4fa   :  { %7839 = vmatpush2.bf16.msra.mxu1 %v9666_v57  ;;  %v4481_v49 = vld [vmem:[#allocation3 + $0x9b8] sm:$0xff] }
 0x4fb   :  { %7840 = vmatprep.subr.bf16.mxu1 %v9659_v32  ;;  %v4605_v50 = vld [vmem:[#allocation3 + $0xd98] sm:$0xff]  ;;  %v9747_v25 = vcombine.high %v4477_v48, %v4481_v49 }
 0x4fc   :  { %7800 = vmatpush2.bf16.msra.mxu0 %v9530_v61  ;;  %v4609_v52 = vld [vmem:[#allocation3 + $0xdb8] sm:$0xff]  ;;  %v9746_v61 = vcombine.low %v4477_v48, %v4481_v49 }
 0x4fd   :  { %7801 = vmatprep.subr.bf16.mxu0 %v9523_v9  ;;  %v9875_v38 = vcombine.high %v4605_v50, %v4609_v52  ;;  %v4469_v57 = vld [vmem:[#allocation3 + $0x958] sm:$0xff]  ;;  %v9874_v9 = vcombine.low %v4605_v50, %v4609_v52 }
 0x4fe   :  { %7841 = vmatpush2.bf16.msra.mxu1 %v9658_v1  ;;  %v4473_v41 = vld [vmem:[#allocation3 + $0x978] sm:$0xff] }
 0x4ff   :  { %7842 = vmatprep.subr.bf16.mxu1 %v9651_v10  ;;  %v4597_v24 = vld [vmem:[#allocation3 + $0xd58] sm:$0xff]  ;;  %v9739_v10 = vcombine.high %v4469_v57, %v4473_v41  ;;  %v9738_v20 = vcombine.low %v4469_v57, %v4473_v41 }
 0x500   :  { %7802 = vmatpush2.bf16.msra.mxu0 %v9522_v13  ;;  %v4601_v0 = vld [vmem:[#allocation3 + $0xd78] sm:$0xff] }
 0x501   :  { %7803 = vmatprep.subr.bf16.mxu0 %v9515_v16  ;;  %v4461_v51 = vld [vmem:[#allocation3 + $0x918] sm:$0xff]  ;;  %v9866_v34 = vcombine.low %v4597_v24, %v4601_v0 }
 0x502   :  { %7843 = vmatpush2.bf16.msra.mxu1 %v9650_v27  ;;  %v4465_v13 = vld [vmem:[#allocation3 + $0x938] sm:$0xff] }
 0x503   :  { %7844 = vmatprep.subr.bf16.mxu1 %v9643_v5  ;;  %v4593_v27 = vld [vmem:[#allocation3 + $0xd38] sm:$0xff]  ;;  %v9731_v8 = vcombine.high %v4461_v51, %v4465_v13 }
 0x504   :  { %7804 = vmatpush2.bf16.msra.mxu0 %v9514_v55  ;;  %v4581_v56 = vld [vmem:[#allocation3 + $0xcd8] sm:$0xff] }
 0x505   :  { %7805 = vmatprep.subr.bf16.mxu0 %v9507_v43  ;;  %v4585_v39 = vld [vmem:[#allocation3 + $0xcf8] sm:$0xff] }
 0x506   :  { %7845 = vmatpush2.bf16.msra.mxu1 %v9642_v40  ;;  %v9851_v49 = vcombine.high %v4581_v56, %v4585_v39  ;;  %v4445_v50 = vld [vmem:[#allocation3 + $0x898] sm:$0xff]  ;;  %v9850_v41 = vcombine.low %v4581_v56, %v4585_v39 }
 0x507   :  { %7846 = vmatprep.subr.bf16.mxu1 %v9635_v36  ;;  %v4457_v36 = vld [vmem:[#allocation3 + $0x8f8] sm:$0xff] }
 0x508   :  { %7806 = vmatpush2.bf16.msra.mxu0 %v9506_v30  ;;  %v9730_v30 = vcombine.low %v4461_v51, %v4465_v13  ;;  %v4449_v52 = vld [vmem:[#allocation3 + $0x8b8] sm:$0xff] }
 0x509   :  { %7857 = vmatprep.subr.bf16.mxu0 %v9755_v46  ;;  %v4677_v56 = vld [vmem:[#allocation3 + $0xfd8] sm:$0xff] }
 0x50a   :  { %7847 = vmatpush2.bf16.msra.mxu1 %v9634_v44  ;;  %v4681_v39 = vld [vmem:[#allocation3 + $0xff8] sm:$0xff] }
 0x50b   :  { %7898 = vmatprep.subr.bf16.mxu1 %v9883_v29  ;;  %v7563_v32 = vpop.f32.mrf.mxu0  ;;  %7808 = vmatmul.mubr.bf16.vlgmr.msra.gmra.mxu0 %v10641_v3  ;;  %v9867_v3 = vcombine.high %v4597_v24, %v4601_v0 }
 0x50c   :  { %v7564_v4 = vadd.f32 %v7563_v32, %v10738_v42  ;;  %7858 = vmatpush1.bf16.msra.mxu0 %v9754_v58  ;;  %7889 = vmatprep.mubr.bf16.mxu0 %v10651_v47  ;;  %v4573_v58 = vld [vmem:[#allocation3 + $0xc98] sm:$0xff]  ;;  %v9715_v32 = vcombine.high %v4445_v50, %v4449_v52 }
 0x50d   :  { %v7604_v23 = vpop.f32.mrf.mxu1  ;;  %7849 = vmatmul.mubr.bf16.vlgmr.msra.gmra.mxu1 %v10646_v37  ;;  %v7565_v1 = vpop.f32.mrf.mxu0  ;;  %7859 = vmatprep.subr.bf16.mxu0 %v9747_v25  ;;  %v4589_v37 = vld [vmem:[#allocation3 + $0xd18] sm:$0xff] }
 0x50e   :  { %7899 = vmatpush1.bf16.msra.mxu1 %v9882_v45  ;;  %v10747_v31 = vadd.f32 %v7604_v23, %v7564_v4  ;;  %v7566_v53 = vadd.f32 %v7565_v1, %v10742_v6  ;;  %7930 = vmatprep.mubr.bf16.mxu1 %v10657_v21  ;;  %v9859_v43 = vcombine.high %v4589_v37, %v4593_v27  ;;  %v4453_v21 = vld [vmem:[#allocation3 + $0x8d8] sm:$0xff] }
 0x50f   :  { %v7606_v22 = vpop.f32.mrf.mxu1  ;;  %7900 = vmatprep.subr.bf16.mxu1 %v9875_v38  ;;  %v7567_v42 = vpop.f32.mrf.mxu0  ;;  %v9858_v44 = vcombine.low %v4589_v37, %v4593_v27  ;;  %v9723_v46 = vcombine.high %v4453_v21, %v4457_v36  ;;  %v4577_v45 = vld [vmem:[#allocation3 + $0xcb8] sm:$0xff]  ;;  %v9722_v57 = vcombine.low %v4453_v21, %v4457_v36 }
 0x510   :  { %v7951_v16 = vrot.slane %v10747_v31, 4  ;;  %v10753_v5 = vadd.f32 %v7606_v22, %v7566_v53  ;;  %7860 = vmatpush1.bf16.msra.mxu0 %v9746_v61  ;;  %v9843_v4 = vcombine.high %v4573_v58, %v4577_v45  ;;  %v4437_v23 = vld [vmem:[#allocation3 + $0x858] sm:$0xff]  ;;  %v9714_v22 = vcombine.low %v4445_v50, %v4449_v52 }
 0x511   :  { %v7608_v2 = vpop.f32.mrf.mxu1  ;;  %v7568_v6 = vpop.f32.mrf.mxu0  ;;  %7861 = vmatprep.subr.bf16.mxu0 %v9739_v10  ;;  %v4441_v61 = vld [vmem:[#allocation3 + $0x878] sm:$0xff] }
 0x512   :  { %7901 = vmatpush1.bf16.msra.mxu1 %v9874_v9  ;;  %v7952_v55 = vadd.f32 %v7951_v16, %v10747_v31  ;;  %v7957_v47 = vrot.slane %v10753_v5, 4  ;;  %v4565_v1 = vld [vmem:[#allocation3 + $0xc58] sm:$0xff]  ;;  %v9707_v51 = vcombine.high %v4437_v23, %v4441_v61 }
 0x513   :  { %v7609_v40 = vpop.f32.mrf.mxu1  ;;  %7902 = vmatprep.subr.bf16.mxu1 %v9867_v3  ;;  %v4569_v9 = vld [vmem:[#allocation3 + $0xc78] sm:$0xff]  ;;  %v9842_v3 = vcombine.low %v4573_v58, %v4577_v45 }
 0x514   :  { %v7953_v33 = vrot.slane %v7952_v55, 2  ;;  %v7958_v54 = vadd.f32 %v7957_v47, %v10753_v5  ;;  %7862 = vmatpush1.bf16.msra.mxu0 %v9738_v20  ;;  %v9835_v37 = vcombine.high %v4565_v1, %v4569_v9  ;;  %v4429_v27 = vld [vmem:[#allocation3 + $0x818] sm:$0xff] }
 0x515   :  { %7863 = vmatprep.subr.bf16.mxu0 %v9731_v8  ;;  %v4433_v16 = vld [vmem:[#allocation3 + $0x838] sm:$0xff]  ;;  %v9706_v8 = vcombine.low %v4437_v23, %v4441_v61 }
 0x516   :  { %7903 = vmatpush1.bf16.msra.mxu1 %v9866_v34  ;;  %v7954_v29 = vadd.f32 %v7953_v33, %v7952_v55  ;;  %v7959_v48 = vrot.slane %v7958_v54, 2  ;;  %v4557_v2 = vld [vmem:[#allocation3 + $0xc18] sm:$0xff]  ;;  %v9834_v55 = vcombine.low %v4565_v1, %v4569_v9 }
 0x517   :  { %7904 = vmatprep.subr.bf16.mxu1 %v9859_v43  ;;  %v4561_v20 = vld [vmem:[#allocation3 + $0xc38] sm:$0xff] }
 0x518   :  { %v7955_v25 = vrot.slane %v7954_v29, 1  ;;  %v7960_v38 = vadd.f32 %v7959_v48, %v7958_v54  ;;  %7864 = vmatpush1.bf16.msra.mxu0 %v9730_v30  ;;  %v9827_v43 = vcombine.high %v4557_v2, %v4561_v20  ;;  %v4549_v21 = vld [vmem:[#allocation3 + $0xbd8] sm:$0xff]  ;;  %v9826_v30 = vcombine.low %v4557_v2, %v4561_v20 }
 0x519   :  { %7865 = vmatprep.subr.bf16.mxu0 %v9723_v46  ;;  %v4553_v36 = vld [vmem:[#allocation3 + $0xbf8] sm:$0xff]  ;;  %v9947_v48 = vcombine.high %v4677_v56, %v4681_v39 }
 0x51a   :  { %7905 = vmatpush1.bf16.msra.mxu1 %v9858_v44  ;;  %v7956_v24 = vadd.f32 %v7955_v25, %v7954_v29  ;;  %v7961_v0 = vrot.slane %v7960_v38, 1  ;;  %v9819_v44 = vcombine.high %v4549_v21, %v4553_v36  ;;  %v4545_v50 = vld [vmem:[#allocation3 + $0xbb8] sm:$0xff] }
 0x51b   :  { %7906 = vmatprep.subr.bf16.mxu1 %v9851_v49  ;;  %v4541_v49 = vld [vmem:[#allocation3 + $0xb98] sm:$0xff] }
 0x51c   :  { %v7989_v10 = vmul.f32 0.125, %v7956_v24  ;;  %v7962_v53 = vadd.f32 %v7961_v0, %v7960_v38  ;;  %7866 = vmatpush1.bf16.msra.mxu0 %v9722_v57  ;;  %v4669_v52 = vld [vmem:[#allocation3 + $0xf98] sm:$0xff]  ;;  %v9818_v38 = vcombine.low %v4549_v21, %v4553_v36  ;;  %v9946_v57 = vcombine.low %v4677_v56, %v4681_v39 }
 0x51d   :  { %7867 = vmatprep.subr.bf16.mxu0 %v9715_v32  ;;  %v4673_v58 = vld [vmem:[#allocation3 + $0xfb8] sm:$0xff] }
 0x51e   :  { %7907 = vmatpush1.bf16.msra.mxu1 %v9850_v41  ;;  %v10759_v13 = vsub.f32 %v10747_v31, %v7989_v10  ;;  %v7990_v42 = vmul.f32 0.125, %v7962_v53  ;;  %v9699_v31 = vcombine.high %v4429_v27, %v4433_v16  ;;  %v9811_v41 = vcombine.high %v4541_v49, %v4545_v50  ;;  %v4537_v23 = vld [vmem:[#allocation3 + $0xb78] sm:$0xff] }
 0x51f   :  { %7908 = vmatprep.subr.bf16.mxu1 %v9843_v4  ;;  %v9939_v0 = vcombine.high %v4669_v52, %v4673_v58  ;;  %v4533_v4 = vld [vmem:[#allocation3 + $0xb58] sm:$0xff]  ;;  %v9810_v53 = vcombine.low %v4541_v49, %v4545_v50 }
 0x520   :  { %v8005_v6 = vmul.f32 %v10759_v13, %v10759_v13  ;;  %v10764_v34 = vsub.f32 %v10753_v5, %v7990_v42  ;;  %7868 = vmatpush1.bf16.msra.mxu0 %v9714_v22  ;;  %v9698_v5 = vcombine.low %v4429_v27, %v4433_v16  ;;  %v4661_v61 = vld [vmem:[#allocation3 + $0xf58] sm:$0xff]  ;;  %v9938_v22 = vcombine.low %v4669_v52, %v4673_v58 }
 0x521   :  { %7869 = vmatprep.subr.bf16.mxu0 %v9707_v51  ;;  %v4665_v1 = vld [vmem:[#allocation3 + $0xf78] sm:$0xff] }
 0x522   :  { %7909 = vmatpush1.bf16.msra.mxu1 %v9842_v3  ;;  %v8023_v47 = vrot.slane %v8005_v6, 4  ;;  %v8006_v40 = vmul.f32 %v10764_v34, %v10764_v34  ;;  %v9803_v3 = vcombine.high %v4533_v4, %v4537_v23  ;;  %v4525_v27 = vld [vmem:[#allocation3 + $0xb18] sm:$0xff] }
 0x523   :  { %7910 = vmatprep.subr.bf16.mxu1 %v9835_v37  ;;  %v9931_v37 = vcombine.high %v4661_v61, %v4665_v1  ;;  %v4529_v16 = vld [vmem:[#allocation3 + $0xb38] sm:$0xff] }
 0x524   :  { %v8024_v33 = vadd.f32 %v8023_v47, %v8005_v6  ;;  %v8029_v54 = vrot.slane %v8006_v40, 4  ;;  %7870 = vmatpush1.bf16.msra.mxu0 %v9706_v8  ;;  %v4653_v2 = vld [vmem:[#allocation3 + $0xf18] sm:$0xff]  ;;  %v9795_v47 = vcombine.high %v4525_v27, %v4529_v16 }
 0x525   :  { %7871 = vmatprep.subr.bf16.mxu0 %v9699_v31  ;;  %v4657_v20 = vld [vmem:[#allocation3 + $0xf38] sm:$0xff]  ;;  %v9930_v31 = vcombine.low %v4661_v61, %v4665_v1 }
 0x526   :  { %7911 = vmatpush1.bf16.msra.mxu1 %v9834_v55  ;;  %v8025_v46 = vrot.slane %v8024_v33, 2  ;;  %v8030_v29 = vadd.f32 %v8029_v54, %v8006_v40  ;;  %v9802_v55 = vcombine.low %v4533_v4, %v4537_v23  ;;  %v4517_v21 = vld [vmem:[#allocation3 + $0xad8] sm:$0xff]  ;;  %v9922_v54 = vcombine.low %v4653_v2, %v4657_v20 }
 0x527   :  { %7912 = vmatprep.subr.bf16.mxu1 %v9827_v43  ;;  %v9923_v43 = vcombine.high %v4653_v2, %v4657_v20  ;;  %v4521_v36 = vld [vmem:[#allocation3 + $0xaf8] sm:$0xff]  ;;  %v8156_v20 = vrot.slane %v10426_v17, %v10521_v63 }
 0x528   :  { %v8026_v45 = vadd.f32 %v8025_v46, %v8024_v33  ;;  %v8031_v25 = vrot.slane %v8030_v29, 2  ;;  %7872 = vmatpush1.bf16.msra.mxu0 %v9698_v5  ;;  %v4645_v56 = vld [vmem:[#allocation3 + $0xed8] sm:$0xff]  ;;  %v9794_v33 = vcombine.low %v4525_v27, %v4529_v16  ;;  %v9787_v5 = vcombine.high %v4517_v21, %v4521_v36 }
 0x529   :  { %7873 = vmatprep.subr.bf16.mxu0 %v9819_v44  ;;  %v4649_v39 = vld [vmem:[#allocation3 + $0xef8] sm:$0xff]  ;;  %v9786_v49 = vcombine.low %v4517_v21, %v4521_v36 }
 0x52a   :  { %7913 = vmatpush1.bf16.msra.mxu1 %v9826_v30  ;;  %v8027_v32 = vrot.slane %v8026_v45, 1  ;;  %v8032_v24 = vadd.f32 %v8031_v25, %v8030_v29  ;;  %v9915_v30 = vcombine.high %v4645_v56, %v4649_v39  ;;  %v4509_v44 = vld [vmem:[#allocation3 + $0xa98] sm:$0xff]  ;;  %v9914_v50 = vcombine.low %v4645_v56, %v4649_v39 }
 0x52b   :  { %7914 = vmatprep.subr.bf16.mxu1 %v9947_v48  ;;  %v4513_v46 = vld [vmem:[#allocation3 + $0xab8] sm:$0xff] }
 0x52c   :  { %v8028_v9 = vadd.f32 %v8027_v32, %v8026_v45  ;;  %v8033_v10 = vrot.slane %v8032_v24, 1  ;;  %7874 = vmatpush2.bf16.msra.mxu0 %v9818_v38  ;;  %v4637_v29 = vld [vmem:[#allocation3 + $0xe98] sm:$0xff]  ;;  %v9779_v52 = vcombine.high %v4509_v44, %v4513_v46 }
 0x52d   :  { %7875 = vmatprep.subr.bf16.mxu0 %v9811_v41  ;;  %v4641_v48 = vld [vmem:[#allocation3 + $0xeb8] sm:$0xff]  ;;  %v9778_v41 = vcombine.low %v4509_v44, %v4513_v46 }
 0x52e   :  { %7915 = vmatpush2.bf16.msra.mxu1 %v9946_v57  ;;  %v8061_v51 = vmul.f32 0.125, %v8028_v9  ;;  %v8034_v42 = vadd.f32 %v8033_v10, %v8032_v24  ;;  %v9907_v58 = vcombine.high %v4637_v29, %v4641_v48  ;;  %v4501_v45 = vld [vmem:[#allocation3 + $0xa58] sm:$0xff]  ;;  %v9906_v32 = vcombine.low %v4637_v29, %v4641_v48 }
 0x52f   :  { %7916 = vmatprep.subr.bf16.mxu1 %v9939_v0  ;;  %v4505_v25 = vld [vmem:[#allocation3 + $0xa78] sm:$0xff]  ;;  %v8103_v0 = vrot.slane %v10424_v14, %v10515_v59 }
 0x530   :  { %v8069_v6 = vadd.f32 1e-05, %v8061_v51  ;;  %v8062_v8 = vmul.f32 0.125, %v8034_v42  ;;  %7876 = vmatpush2.bf16.msra.mxu0 %v9810_v53  ;;  %v4629_v38 = vld [vmem:[#allocation3 + $0xe58] sm:$0xff]  ;;  %v9771_v24 = vcombine.high %v4501_v45, %v4505_v25  ;;  %v9770_v51 = vcombine.low %v4501_v45, %v4505_v25 }
 0x531   :  { %7877 = vmatprep.subr.bf16.mxu0 %v9803_v3  ;;  %v4633_v57 = vld [vmem:[#allocation3 + $0xe78] sm:$0xff]  ;;  %v8107_v3 = vrot.slane %v10424_v14, %v10521_v63  ;;  %v4702_v63 = vrot.slane %v10422_v11, %v10573_v18 }
 0x532   :  { %7917 = vmatpush2.bf16.msra.mxu1 %v9938_v22  ;;  %10131 = vrsqrt.f32 %v8069_v6  ;;  %v8070_v40 = vadd.f32 1e-05, %v8062_v8  ;;  %v9899_v4 = vcombine.high %v4629_v38, %v4633_v57  ;;  %v4493_v23 = vld [vmem:[#allocation3 + $0xa18] sm:$0xff]  ;;  %v8152_v22 = vrot.slane %v10426_v17, %v10515_v59 }
 0x533   :  { %7918 = vmatprep.subr.bf16.mxu1 %v9931_v37  ;;  %v4497_v61 = vld [vmem:[#allocation3 + $0xa38] sm:$0xff]  ;;  %v9898_v37 = vcombine.low %v4629_v38, %v4633_v57 }
 0x534   :  { %10133 = vrsqrt.f32 %v8070_v40  ;;  %7878 = vmatpush2.bf16.msra.mxu0 %v9802_v55  ;;  %v4621_v9 = vld [vmem:[#allocation3 + $0xe18] sm:$0xff]  ;;  %v9763_v27 = vcombine.high %v4493_v23, %v4497_v61  ;;  %v9762_v8 = vcombine.low %v4493_v23, %v4497_v61  ;;  %v4706_v40 = vrot.slane %v10422_v11, %v10579_v12 }
 0x535   :  { %7879 = vmatprep.subr.bf16.mxu0 %v9795_v47  ;;  %v4625_v10 = vld [vmem:[#allocation3 + $0xe38] sm:$0xff] }
 0x536   :  { %7919 = vmatpush2.bf16.msra.mxu1 %v9930_v31  ;;  %v9890_v55 = vcombine.low %v4621_v9, %v4625_v10 }
 0x537   :  { %7920 = vmatprep.subr.bf16.mxu1 %v9923_v43 }
 0x538   :  { %7880 = vmatpush2.bf16.msra.mxu0 %v9794_v33 }
 0x539   :  { %7881 = vmatprep.subr.bf16.mxu0 %v9787_v5 }
 0x53a   :  { %7921 = vmatpush2.bf16.msra.mxu1 %v9922_v54 }
 0x53b   :  { %7922 = vmatprep.subr.bf16.mxu1 %v9915_v30 }
 0x53c   :  { %7882 = vmatpush2.bf16.msra.mxu0 %v9786_v49 }
 0x53d   :  { %7883 = vmatprep.subr.bf16.mxu0 %v9779_v52 }
 0x53e   :  { %7923 = vmatpush2.bf16.msra.mxu1 %v9914_v50 }
 0x53f   :  { %7924 = vmatprep.subr.bf16.mxu1 %v9907_v58  ;;  %v10132_v1 = vpop.eup %10131 }
 0x540   :  { %v8085_v53 = vmul.f32 %v10132_v1, %v10759_v13  ;;  %7884 = vmatpush2.bf16.msra.mxu0 %v9778_v41  ;;  %v9891_v13 = vcombine.high %v4621_v9, %v4625_v10 }
 0x541   :  { %v10134_v42 = vpop.eup %10133  ;;  %7885 = vmatprep.subr.bf16.mxu0 %v9771_v24 }
 0x542   :  { %7925 = vmatpush2.bf16.msra.mxu1 %v9906_v32  ;;  %v8134_v16 = vmul.f32 %v8103_v0, %v8085_v53  ;;  %v8086_v2 = vmul.f32 %v10134_v42, %v10764_v34 }
 0x543   :  { %7926 = vmatprep.subr.bf16.mxu1 %v9899_v4 }
 0x544   :  { %v10778_v6 = vadd.f32 %v8152_v22, %v8134_v16  ;;  %v8135_v59 = vmul.f32 %v8107_v3, %v8086_v2  ;;  %7886 = vmatpush2.bf16.msra.mxu0 %v9770_v51 }
 0x545   :  { %7887 = vmatprep.subr.bf16.mxu0 %v9763_v27 }
 0x546   :  { %7927 = vmatpush2.bf16.msra.mxu1 %v9898_v37  ;;  %v8191_v31 = vmax.f32 %v10778_v6, 0.0  ;;  %v10781_v47 = vadd.f32 %v8156_v20, %v8135_v59 }
 0x547   :  { %7928 = vmatprep.subr.bf16.mxu1 %v9891_v13 }
 0x548   :  { %v8192_v34 = vmax.f32 %v10781_v47, 0.0  ;;  %7888 = vmatpush2.bf16.msra.mxu0 %v9762_v8 }
 0x54a   :  { %7929 = vmatpush2.bf16.msra.mxu1 %v9890_v55 }
 0x54b   :  { %v7645_v43 = vpop.f32.mrf.mxu0  ;;  %7890 = vmatmul.mubr.bf16.vlgmr.msra.gmra.mxu0 %v10665_v28 }
 0x54c   :  { %v7646_v21 = vadd.f32 %v7645_v43, %v4702_v63 }
 0x54d   :  { %v7686_v36 = vpop.f32.mrf.mxu1  ;;  %7931 = vmatmul.mubr.bf16.vlgmr.msra.gmra.mxu1 %v10670_v19  ;;  %v7647_v56 = vpop.f32.mrf.mxu0 }
 0x54e   :  { %v7687_v39 = vadd.f32 %v7686_v36, %v7646_v21  ;;  %v7648_v33 = vadd.f32 %v7647_v56, %v4706_v40 }
 0x54f   :  { %v7688_v54 = vpop.f32.mrf.mxu1  ;;  %v7649_v5 = vpop.f32.mrf.mxu0 }
 0x550   :  { %v7689_v30 = vadd.f32 %v7688_v54, %v7648_v33 }
 0x551   :  { %v7690_v44 = vpop.f32.mrf.mxu1  ;;  %v7650_v46 = vpop.f32.mrf.mxu0 }
 0x552   :  { %v8111_v44 = vrot.slane %v10424_v14, %v10573_v18 }
 0x553   :  { %v7691_v29 = vpop.f32.mrf.mxu1 }
 0x58b   :  { %v7727_v48 = vpop.f32.mrf.mxu0 }
 0x58c   :  { %v7728_v49 = vadd.f32 %v7727_v48, %v7687_v39  ;;  %v8160_v48 = vrot.slane %v10426_v17, %v10573_v18 }
 0x58d   :  { %v7768_v50 = vpop.f32.mrf.mxu1  ;;  %v7729_v52 = vpop.f32.mrf.mxu0 }
 0x58e   :  { %v7769_v58 = vadd.f32 %v7768_v50, %v7728_v49  ;;  %v7730_v45 = vadd.f32 %v7729_v52, %v7689_v30  ;;  %v8115_v49 = vrot.slane %v10424_v14, %v10579_v12 }
 0x58f   :  { %v7770_v28 = vpop.f32.mrf.mxu1  ;;  %v7731_v25 = vpop.f32.mrf.mxu0 }
 0x590   :  { %v7963_v38 = vrot.slane %v7769_v58, 4  ;;  %v7771_v57 = vadd.f32 %v7770_v28, %v7730_v45  ;;  %v8164_v45 = vrot.slane %v10426_v17, %v10579_v12 }
 0x591   :  { %v7772_v19 = vpop.f32.mrf.mxu1  ;;  %v7732_v41 = vpop.f32.mrf.mxu0 }
 0x592   :  { %v7964_v32 = vadd.f32 %v7963_v38, %v7769_v58  ;;  %v7969_v24 = vrot.slane %v7771_v57, 4 }
 0x593   :  { %v7773_v0 = vpop.f32.mrf.mxu1 }
 0x594   :  { %v7965_v4 = vrot.slane %v7964_v32, 2  ;;  %v7970_v23 = vadd.f32 %v7969_v24, %v7771_v57 }
 0x596   :  { %v7966_v61 = vadd.f32 %v7965_v4, %v7964_v32  ;;  %v7971_v1 = vrot.slane %v7970_v23, 2 }
 0x598   :  { %v7967_v9 = vrot.slane %v7966_v61, 1  ;;  %v7972_v10 = vadd.f32 %v7971_v1, %v7970_v23 }
 0x59a   :  { %v7968_v53 = vadd.f32 %v7967_v9, %v7966_v61  ;;  %v7973_v22 = vrot.slane %v7972_v10, 1 }
 0x59c   :  { %v7991_v3 = vmul.f32 0.125, %v7968_v53  ;;  %v7974_v51 = vadd.f32 %v7973_v22, %v7972_v10 }
 0x59e   :  { %v7999_v42 = vsub.f32 %v7769_v58, %v7991_v3  ;;  %v7992_v37 = vmul.f32 0.125, %v7974_v51 }
 0x5a0   :  { %v8007_v27 = vmul.f32 %v7999_v42, %v7999_v42  ;;  %v8000_v16 = vsub.f32 %v7771_v57, %v7992_v37 }
 0x5a2   :  { %v8035_v2 = vrot.slane %v8007_v27, 4  ;;  %v8008_v20 = vmul.f32 %v8000_v16, %v8000_v16 }
 0x5a4   :  { %v8036_v13 = vadd.f32 %v8035_v2, %v8007_v27  ;;  %v8041_v59 = vrot.slane %v8008_v20, 4 }
 0x5a6   :  { %v8037_v8 = vrot.slane %v8036_v13, 2  ;;  %v8042_v55 = vadd.f32 %v8041_v59, %v8008_v20 }
 0x5a8   :  { %v8038_v63 = vadd.f32 %v8037_v8, %v8036_v13  ;;  %v8043_v40 = vrot.slane %v8042_v55, 2 }
 0x5aa   :  { %v8039_v43 = vrot.slane %v8038_v63, 1  ;;  %v8044_v21 = vadd.f32 %v8043_v40, %v8042_v55 }
 0x5ac   :  { %v8040_v36 = vadd.f32 %v8039_v43, %v8038_v63  ;;  %v8045_v56 = vrot.slane %v8044_v21, 1 }
 0x5ae   :  { %v8063_v39 = vmul.f32 0.125, %v8040_v36  ;;  %v8046_v33 = vadd.f32 %v8045_v56, %v8044_v21 }
 0x5b0   :  { %v8071_v54 = vadd.f32 1e-05, %v8063_v39  ;;  %v8064_v5 = vmul.f32 0.125, %v8046_v33 }
 0x5b2   :  { %10135 = vrsqrt.f32 %v8071_v54  ;;  %v8072_v30 = vadd.f32 1e-05, %v8064_v5 }
 0x5b4   :  { %10137 = vrsqrt.f32 %v8072_v30 }
 0x5bf   :  { %v10136_v46 = vpop.eup %10135 }
 0x5c0   :  { %v8087_v29 = vmul.f32 %v10136_v46, %v7999_v42 }
 0x5c1   :  { %v10138_v50 = vpop.eup %10137 }
 0x5c2   :  { %v8136_v52 = vmul.f32 %v8111_v44, %v8087_v29  ;;  %v8088_v58 = vmul.f32 %v10138_v50, %v8000_v16 }
 0x5c4   :  { %v10798_v28 = vadd.f32 %v8160_v48, %v8136_v52  ;;  %v8137_v25 = vmul.f32 %v8115_v49, %v8088_v58 }
 0x5c6   :  { %v8193_v38 = vmax.f32 %v10798_v28, 0.0  ;;  %v10801_v57 = vadd.f32 %v8164_v45, %v8137_v25 }
 0x5c8   :  { %v8194_v18 = vmax.f32 %v10801_v57, 0.0 }
 0x5c9   :  { %10326 = shalt.err (!%p10323_p1)  }
 0x5ca   :  { %4161 = dma.hbm_to_vmem [thread:$0]  %s10857_s5, 8192, %s4159_s4, [#allocation5 + $0x2]  ;;  %v4710_v61 = vrot.slane %v10422_v11, %v10603_v15  ;;  %v4714_v1 = vrot.slane %v10422_v11, %v10606_v26 }
 0x5cb   :  { %v7809_v12 = vpop.f32.mrf.mxu0 }
 0x5cc   :  { %v7810_v9 = vadd.f32 %v7809_v12, %v4710_v61 }
 0x5cd   :  { %v7850_v19 = vpop.f32.mrf.mxu1  ;;  %v7811_v41 = vpop.f32.mrf.mxu0 }
 0x5ce   :  { %v7812_v10 = vadd.f32 %v7811_v41, %v4714_v1  ;;  %v7851_v53 = vadd.f32 %v7850_v19, %v7810_v9 }
 0x5cf   :  { %v7852_v32 = vpop.f32.mrf.mxu1  ;;  %v7813_v24 = vpop.f32.mrf.mxu0 }
 0x5d0   :  { %v7853_v3 = vadd.f32 %v7852_v32, %v7812_v10 }
 0x5d1   :  { %v7854_v0 = vpop.f32.mrf.mxu1  ;;  %v7814_v4 = vpop.f32.mrf.mxu0 }
 0x5d3   :  { %v7855_v23 = vpop.f32.mrf.mxu1 }
 0x60b   :  { %v7891_v22 = vpop.f32.mrf.mxu0 }
 0x60c   :  { %v7892_v51 = vadd.f32 %v7891_v22, %v7851_v53  ;;  %v8119_v53 = vrot.slane %v10424_v14, %v10603_v15 }
 0x60d   :  { %v7932_v42 = vpop.f32.mrf.mxu1  ;;  %v7893_v37 = vpop.f32.mrf.mxu0 }
 0x60e   :  { %v7933_v27 = vadd.f32 %v7932_v42, %v7892_v51  ;;  %v7894_v16 = vadd.f32 %v7893_v37, %v7853_v3  ;;  %v8168_v51 = vrot.slane %v10426_v17, %v10603_v15  ;;  %v8123_v42 = vrot.slane %v10424_v14, %v10606_v26 }
 0x60f   :  { %v7934_v2 = vpop.f32.mrf.mxu1  ;;  %v7895_v20 = vpop.f32.mrf.mxu0 }
 0x610   :  { %v7975_v13 = vrot.slane %v7933_v27, 4  ;;  %v7935_v59 = vadd.f32 %v7934_v2, %v7894_v16  ;;  %v8172_v2 = vrot.slane %v10426_v17, %v10606_v26 }
 0x611   :  { %v7936_v8 = vpop.f32.mrf.mxu1  ;;  %v7896_v55 = vpop.f32.mrf.mxu0 }
 0x612   :  { %v7976_v63 = vadd.f32 %v7975_v13, %v7933_v27  ;;  %v7981_v40 = vrot.slane %v7935_v59, 4 }
 0x613   :  { %v7937_v43 = vpop.f32.mrf.mxu1 }
 0x614   :  { %v7977_v11 = vrot.slane %v7976_v63, 2  ;;  %v7982_v21 = vadd.f32 %v7981_v40, %v7935_v59 }
 0x616   :  { %v7978_v36 = vadd.f32 %v7977_v11, %v7976_v63  ;;  %v7983_v56 = vrot.slane %v7982_v21, 2 }
 0x618   :  { %v7979_v39 = vrot.slane %v7978_v36, 1  ;;  %v7984_v33 = vadd.f32 %v7983_v56, %v7982_v21 }
 0x61a   :  { %v7980_v54 = vadd.f32 %v7979_v39, %v7978_v36  ;;  %v7985_v5 = vrot.slane %v7984_v33, 1 }
 0x61c   :  { %v7993_v30 = vmul.f32 0.125, %v7980_v54  ;;  %v7986_v44 = vadd.f32 %v7985_v5, %v7984_v33 }
 0x61e   :  { %v8001_v46 = vsub.f32 %v7933_v27, %v7993_v30  ;;  %v7994_v29 = vmul.f32 0.125, %v7986_v44 }
 0x620   :  { %v8009_v48 = vmul.f32 %v8001_v46, %v8001_v46  ;;  %v8002_v49 = vsub.f32 %v7935_v59, %v7994_v29 }
 0x622   :  { %v8047_v50 = vrot.slane %v8009_v48, 4  ;;  %v8010_v52 = vmul.f32 %v8002_v49, %v8002_v49 }
 0x624   :  { %v8048_v58 = vadd.f32 %v8047_v50, %v8009_v48  ;;  %v8053_v45 = vrot.slane %v8010_v52, 4 }
 0x626   :  { %v8049_v25 = vrot.slane %v8048_v58, 2  ;;  %v8054_v12 = vadd.f32 %v8053_v45, %v8010_v52 }
 0x628   :  { %v8050_v19 = vadd.f32 %v8049_v25, %v8048_v58  ;;  %v8055_v41 = vrot.slane %v8054_v12, 2 }
 0x62a   :  { %v8051_v32 = vrot.slane %v8050_v19, 1  ;;  %v8056_v24 = vadd.f32 %v8055_v41, %v8054_v12 }
 0x62c   :  { %v8052_v0 = vadd.f32 %v8051_v32, %v8050_v19  ;;  %v8057_v4 = vrot.slane %v8056_v24, 1 }
 0x62e   :  { %v8065_v23 = vmul.f32 0.125, %v8052_v0  ;;  %v8058_v61 = vadd.f32 %v8057_v4, %v8056_v24 }
 0x630   :  { %v8073_v1 = vadd.f32 1e-05, %v8065_v23  ;;  %v8066_v9 = vmul.f32 0.125, %v8058_v61 }
 0x632   :  { %10139 = vrsqrt.f32 %v8073_v1  ;;  %v8074_v10 = vadd.f32 1e-05, %v8066_v9 }
 0x634   :  { %10141 = vrsqrt.f32 %v8074_v10 }
 0x63f   :  { %v10140_v22 = vpop.eup %10139 }
 0x640   :  { %v8089_v3 = vmul.f32 %v10140_v22, %v8001_v46 }
 0x641   :  { %v10142_v37 = vpop.eup %10141 }
 0x642   :  { %v8138_v27 = vmul.f32 %v8119_v53, %v8089_v3  ;;  %v8090_v16 = vmul.f32 %v10142_v37, %v8002_v49 }
 0x644   :  { %v10819_v20 = vadd.f32 %v8168_v51, %v8138_v27  ;;  %v8139_v13 = vmul.f32 %v8123_v42, %v8090_v16 }
 0x646   :  { %v8195_v59 = vmax.f32 %v10819_v20, 0.0  ;;  %v10822_v8 = vadd.f32 %v8172_v2, %v8139_v13 }
 0x648   :  { %v8196_v55 = vmax.f32 %v10822_v8, 0.0 }
 0x649   :  { %10355 = dma.done.wait [#allocation5 + $0x2], 8192 }
 0x64a   :  { %10356 = vsyncadd [#allocation5 + $0x2], 4294959104  ;;  %v8201_v14 = vpack.c.bf16 %v8190_v62, %v8190_v62  ;;  %v8203_v15 = vpack.c.bf16 %v8192_v34, %v8192_v34  ;;  %v10143_v17 = vld [vmem:[#allocation4 + $0x78] sm:$0xff]   ;;  %v10147_v43 = vld [vmem:[#allocation4 + $0x70] sm:$0xff]   ;;  %v8200_v24 = vpack.c.bf16 %v8189_v7, %v8189_v7  ;;  %v8202_v0 = vpack.c.bf16 %v8191_v31, %v8191_v31  ;;  %s10365_s5 = smov [#allocation12]  }
 0x64b   :  { %v10144_v26 = vld [vmem:[#allocation4 + $0xf8] sm:$0xff]   ;;  %10016 = vmatprep.subr.bf16.mxu0 %v10143_v17  ;;  %v10148_v11 = vld [vmem:[#allocation4 + $0xf0] sm:$0xff]   ;;  %v10151_v47 = vld [vmem:[#allocation4 + $0x68] sm:$0xff]   ;;  %v8205_v61 = vpack.c.bf16 %v8194_v18, %v8194_v18  ;;  %v8207_v60 = vpack.c.bf16 %v8196_v55, %v8196_v55  ;;  %s8894_s23 = sshll.u32 %s10365_s5, 4  ;;  %s8895_s23 = int_to_ptr.vmem [resolvable:$true] %s8894_s23 }
 0x64c   :  { %8759 = vmatprep.mubr.bf16.mxu0 %v8201_v14  ;;  %8799 = vmatprep.mubr.bf16.mxu1 %v8203_v15  ;;  %v10145_v63 = vld [vmem:[#allocation4 + $0x38] sm:$0xff]   ;;  %v10149_v35 = vld [vmem:[#allocation4 + $0x30] sm:$0xff]   ;;  %v10152_v34 = vld [vmem:[#allocation4 + $0xe8] sm:$0xff]   ;;  %s10327_s24 = scalar_lea.vmem %s8895_s23, 128  ;;  %p10332_p3 = scmp.lt.s32.totalorder %s8895_s23, %s8895_s23 }
 0x64d   :  { %10038 = vmatprep.subr.bf16.mxu1 %v10144_v26  ;;  %v10146_v40 = vld [vmem:[#allocation4 + $0xb8] sm:$0xff]   ;;  %10017 = vmatpush3.bf16.msra.mxu0 %v10145_v63  ;;  %v10150_v62 = vld [vmem:[#allocation4 + $0xb0] sm:$0xff]   ;;  %v10153_v21 = vld [vmem:[#allocation4 + $0x28] sm:$0xff]   ;;  %p10328_p2 = scmp.ne.s32.totalorder %s8895_s23, %s10327_s24  ;;  %p10333_p4 = scmp.lt.s32.totalorder %s10327_s24, %s10327_s24 }
 0x64e   :  { %10039 = vmatpush3.bf16.msra.mxu1 %v10146_v40  ;;  %10018 = vmatprep.subr.bf16.mxu0 %v10147_v43  ;;  %v10154_v36 = vld [vmem:[#allocation4 + $0xa8] sm:$0xff]   ;;  %v10155_v56 = vld [vmem:[#allocation4 + $0x60] sm:$0xff]   ;;  %v10159_v5 = vld [vmem:[#allocation4 + $0x58] sm:$0xff]  }
 0x64f   :  { %10040 = vmatprep.subr.bf16.mxu1 %v10148_v11  ;;  %v10156_v39 = vld [vmem:[#allocation4 + $0xe0] sm:$0xff]   ;;  %v10160_v30 = vld [vmem:[#allocation4 + $0xd8] sm:$0xff]   ;;  %v10163_v29 = vld [vmem:[#allocation4 + $0x50] sm:$0xff]   ;;  %p10334_p5 = por %p10333_p4, %p10332_p3 }
 0x650   :  { %v10157_v33 = vld [vmem:[#allocation4 + $0x20] sm:$0xff]   ;;  %v10161_v44 = vld [vmem:[#allocation4 + $0x18] sm:$0xff]   ;;  %v10164_v48 = vld [vmem:[#allocation4 + $0xd0] sm:$0xff]  }
 0x651   :  { %10019 = vmatpush3.bf16.msra.mxu0 %v10149_v35  ;;  %v10158_v54 = vld [vmem:[#allocation4 + $0xa0] sm:$0xff]   ;;  %v10162_v46 = vld [vmem:[#allocation4 + $0x98] sm:$0xff]   ;;  %v10165_v49 = vld [vmem:[#allocation4 + $0x10] sm:$0xff]   ;;  %p10335_p6 = pnand %p10334_p5, %p10328_p2 }
 0x652   :  { %10041 = vmatpush3.bf16.msra.mxu1 %v10150_v62  ;;  %10020 = vmatprep.subr.bf16.mxu0 %v10151_v47  ;;  %v10166_v50 = vld [vmem:[#allocation4 + $0x90] sm:$0xff]   ;;  %v10167_v52 = vld [vmem:[#allocation4 + $0x48] sm:$0xff]   ;;  %v10171_v12 = vld [vmem:[#allocation4 + $0x40] sm:$0xff]   ;;  %v8204_v47 = vpack.c.bf16 %v8193_v38, %v8193_v38 }
 0x653   :  { %10042 = vmatprep.subr.bf16.mxu1 %v10152_v34  ;;  %v10168_v58 = vld [vmem:[#allocation4 + $0xc8] sm:$0xff]   ;;  %v10172_v19 = vld [vmem:[#allocation4 + $0xc0] sm:$0xff]   ;;  %v10175_v4 = vld [vmem:[#allocation4 + $0x178] sm:$0xff]   ;;  %v8206_v34 = vpack.c.bf16 %v8195_v59, %v8195_v59 }
 0x654   :  { %v10169_v45 = vld [vmem:[#allocation4 + $0x8] sm:$0xff]   ;;  %v10173_v41 = vld [vmem:[#allocation4] sm:$0xff]   ;;  %v10176_v23 = vld [vmem:[#allocation4 + $0x1f8] sm:$0xff]  }
 0x655   :  { %10021 = vmatpush3.bf16.msra.mxu0 %v10153_v21  ;;  %v10170_v25 = vld [vmem:[#allocation4 + $0x88] sm:$0xff]   ;;  %v10174_v32 = vld [vmem:[#allocation4 + $0x80] sm:$0xff]   ;;  %v10177_v1 = vld [vmem:[#allocation4 + $0x138] sm:$0xff]  }
 0x656   :  { %10043 = vmatpush3.bf16.msra.mxu1 %v10154_v36  ;;  %10022 = vmatprep.subr.bf16.mxu0 %v10155_v56  ;;  %v10178_v7 = vld [vmem:[#allocation4 + $0x1b8] sm:$0xff]   ;;  %v10179_v6 = vld [vmem:[#allocation4 + $0x170] sm:$0xff]   ;;  %v10183_v18 = vld [vmem:[#allocation4 + $0x168] sm:$0xff]  }
 0x657   :  { %10044 = vmatprep.subr.bf16.mxu1 %v10156_v39  ;;  %v10180_v31 = vld [vmem:[#allocation4 + $0x1f0] sm:$0xff]   ;;  %v10184_v10 = vld [vmem:[#allocation4 + $0x1e8] sm:$0xff]   ;;  %v10187_v3 = vld [vmem:[#allocation4 + $0x160] sm:$0xff]  }
 0x658   :  { %v10181_v9 = vld [vmem:[#allocation4 + $0x130] sm:$0xff]   ;;  %v10185_v53 = vld [vmem:[#allocation4 + $0x128] sm:$0xff]   ;;  %v10188_v51 = vld [vmem:[#allocation4 + $0x1e0] sm:$0xff]  }
 0x659   :  { %10023 = vmatpush3.bf16.msra.mxu0 %v10157_v33  ;;  %v10182_v57 = vld [vmem:[#allocation4 + $0x1b0] sm:$0xff]   ;;  %v10186_v22 = vld [vmem:[#allocation4 + $0x1a8] sm:$0xff]   ;;  %v10189_v42 = vld [vmem:[#allocation4 + $0x120] sm:$0xff]  }
 0x65a   :  { %10045 = vmatpush3.bf16.msra.mxu1 %v10158_v54  ;;  %10024 = vmatprep.subr.bf16.mxu0 %v10159_v5  ;;  %v10190_v37 = vld [vmem:[#allocation4 + $0x1a0] sm:$0xff]   ;;  %v10191_v27 = vld [vmem:[#allocation4 + $0x158] sm:$0xff]   ;;  %v10195_v8 = vld [vmem:[#allocation4 + $0x150] sm:$0xff]  }
 0x65b   :  { %10046 = vmatprep.subr.bf16.mxu1 %v10160_v30  ;;  %v10192_v16 = vld [vmem:[#allocation4 + $0x1d8] sm:$0xff]   ;;  %v10196_v55 = vld [vmem:[#allocation4 + $0x1d0] sm:$0xff]   ;;  %v10199_v17 = vld [vmem:[#allocation4 + $0x148] sm:$0xff]  }
 0x65c   :  { %v10193_v2 = vld [vmem:[#allocation4 + $0x118] sm:$0xff]   ;;  %v10197_v14 = vld [vmem:[#allocation4 + $0x110] sm:$0xff]   ;;  %v10200_v26 = vld [vmem:[#allocation4 + $0x1c8] sm:$0xff]  }
 0x65d   :  { %10025 = vmatpush3.bf16.msra.mxu0 %v10161_v44  ;;  %v10194_v13 = vld [vmem:[#allocation4 + $0x198] sm:$0xff]   ;;  %v10198_v15 = vld [vmem:[#allocation4 + $0x190] sm:$0xff]   ;;  %v10201_v63 = vld [vmem:[#allocation4 + $0x108] sm:$0xff]  }
 0x65e   :  { %10047 = vmatpush3.bf16.msra.mxu1 %v10162_v46  ;;  %10026 = vmatprep.subr.bf16.mxu0 %v10163_v29  ;;  %v10202_v40 = vld [vmem:[#allocation4 + $0x188] sm:$0xff]   ;;  %v10203_v43 = vld [vmem:[#allocation4 + $0x140] sm:$0xff]  }
 0x65f   :  { %10048 = vmatprep.subr.bf16.mxu1 %v10164_v48  ;;  %v10204_v11 = vld [vmem:[#allocation4 + $0x1c0] sm:$0xff]  }
 0x660   :  { %v10205_v35 = vld [vmem:[#allocation4 + $0x100] sm:$0xff]  }
 0x661   :  { %10027 = vmatpush3.bf16.msra.mxu0 %v10165_v49  ;;  %v10206_v62 = vld [vmem:[#allocation4 + $0x180] sm:$0xff]  }
 0x662   :  { %10049 = vmatpush3.bf16.msra.mxu1 %v10166_v50  ;;  %10028 = vmatprep.subr.bf16.mxu0 %v10167_v52  ;;  %v9948_v28 = vld [vmem:[#allocation11] ss:$0 sm:$0xff] }
 0x663   :  { %10050 = vmatprep.subr.bf16.mxu1 %v10168_v58 }
 0x665   :  { %10029 = vmatpush3.bf16.msra.mxu0 %v10169_v45 }
 0x666   :  { %10051 = vmatpush3.bf16.msra.mxu1 %v10170_v25  ;;  %10030 = vmatprep.subr.bf16.mxu0 %v10171_v12 }
 0x667   :  { %10052 = vmatprep.subr.bf16.mxu1 %v10172_v19 }
 0x669   :  { %10031 = vmatpush3.bf16.msra.mxu0 %v10173_v41 }
 0x66a   :  { %10053 = vmatpush3.bf16.msra.mxu1 %v10174_v32  ;;  %10060 = vmatprep.subr.bf16.mxu0 %v10175_v4 }
 0x66b   :  { %10082 = vmatprep.subr.bf16.mxu1 %v10176_v23 }
 0x66c   :  { %8760 = vmatmul.mubr.bf16.vlgmr.msra.gmra.mxu0 %v8200_v24 }
 0x66d   :  { %8800 = vmatmul.mubr.bf16.vlgmr.msra.gmra.mxu1 %v8202_v0  ;;  %10061 = vmatpush3.bf16.msra.mxu0 %v10177_v1 }
 0x66e   :  { %10083 = vmatpush3.bf16.msra.mxu1 %v10178_v7  ;;  %8839 = vmatprep.mubr.bf16.mxu0 %v8205_v61 }
 0x66f   :  { %10062 = vmatprep.subr.bf16.mxu0 %v10179_v6  ;;  %8879 = vmatprep.mubr.bf16.mxu1 %v8207_v60 }
 0x670   :  { %10084 = vmatprep.subr.bf16.mxu1 %v10180_v31 }
 0x671   :  { %10063 = vmatpush3.bf16.msra.mxu0 %v10181_v9 }
 0x672   :  { %10085 = vmatpush3.bf16.msra.mxu1 %v10182_v57  ;;  %10064 = vmatprep.subr.bf16.mxu0 %v10183_v18 }
 0x673   :  { %10086 = vmatprep.subr.bf16.mxu1 %v10184_v10 }
 0x675   :  { %10065 = vmatpush3.bf16.msra.mxu0 %v10185_v53 }
 0x676   :  { %10087 = vmatpush3.bf16.msra.mxu1 %v10186_v22  ;;  %10066 = vmatprep.subr.bf16.mxu0 %v10187_v3 }
 0x677   :  { %10088 = vmatprep.subr.bf16.mxu1 %v10188_v51 }
 0x679   :  { %10067 = vmatpush3.bf16.msra.mxu0 %v10189_v42 }
 0x67a   :  { %10089 = vmatpush3.bf16.msra.mxu1 %v10190_v37  ;;  %10068 = vmatprep.subr.bf16.mxu0 %v10191_v27 }
 0x67b   :  { %10090 = vmatprep.subr.bf16.mxu1 %v10192_v16 }
 0x67d   :  { %10069 = vmatpush3.bf16.msra.mxu0 %v10193_v2 }
 0x67e   :  { %10091 = vmatpush3.bf16.msra.mxu1 %v10194_v13  ;;  %10070 = vmatprep.subr.bf16.mxu0 %v10195_v8 }
 0x67f   :  { %10092 = vmatprep.subr.bf16.mxu1 %v10196_v55 }
 0x681   :  { %10071 = vmatpush3.bf16.msra.mxu0 %v10197_v14 }
 0x682   :  { %10093 = vmatpush3.bf16.msra.mxu1 %v10198_v15  ;;  %10072 = vmatprep.subr.bf16.mxu0 %v10199_v17 }
 0x683   :  { %10094 = vmatprep.subr.bf16.mxu1 %v10200_v26 }
 0x685   :  { %10073 = vmatpush3.bf16.msra.mxu0 %v10201_v63 }
 0x686   :  { %10095 = vmatpush3.bf16.msra.mxu1 %v10202_v40  ;;  %10074 = vmatprep.subr.bf16.mxu0 %v10203_v43 }
 0x687   :  { %10096 = vmatprep.subr.bf16.mxu1 %v10204_v11 }
 0x689   :  { %10075 = vmatpush3.bf16.msra.mxu0 %v10205_v35 }
 0x68a   :  { %10097 = vmatpush3.bf16.msra.mxu1 %v10206_v62 }
 0x68c   :  { %8840 = vmatmul.mubr.bf16.vlgmr.msra.gmra.mxu0 %v8204_v47 }
 0x68d   :  { %8880 = vmatmul.mubr.bf16.vlgmr.msra.gmra.mxu1 %v8206_v34 }
 0x72c   :  { %v10032_v21 = vpop.f32.mrf.mxu0 }
 0x72d   :  { %v10054_v36 = vpop.f32.mrf.mxu1 }
 0x72e   :  { %v10033_v56 = vpop.f32.mrf.mxu0 }
 0x72f   :  { %v10055_v39 = vpop.f32.mrf.mxu1  ;;  %v10034_v44 = vadd.f32 %v10033_v56, %v10032_v21 }
 0x730   :  { %v10035_v33 = vpop.f32.mrf.mxu0  ;;  %v10056_v38 = vadd.f32 %v10055_v39, %v10054_v36 }
 0x731   :  { %v10057_v54 = vpop.f32.mrf.mxu1  ;;  %v8762_v46 = vadd.f32 %v10034_v44, %v9948_v28 }
 0x732   :  { %v10036_v5 = vpop.f32.mrf.mxu0 }
 0x733   :  { %v10058_v30 = vpop.f32.mrf.mxu1  ;;  %v8802_v49 = vadd.f32 %v10056_v38, %v8762_v46 }
 0x74c   :  { %v10076_v29 = vpop.f32.mrf.mxu0 }
 0x74d   :  { %v10098_v48 = vpop.f32.mrf.mxu1 }
 0x74e   :  { %v10077_v20 = vpop.f32.mrf.mxu0 }
 0x74f   :  { %v10078_v59 = vadd.f32 %v10077_v20, %v10076_v29  ;;  %v10099_v50 = vpop.f32.mrf.mxu1 }
 0x750   :  { %v10079_v52 = vpop.f32.mrf.mxu0  ;;  %v10100_v45 = vadd.f32 %v10099_v50, %v10098_v48 }
 0x751   :  { %v8842_v58 = vadd.f32 %v10078_v59, %v8802_v49  ;;  %v10101_v25 = vpop.f32.mrf.mxu1 }
 0x752   :  { %v10080_v12 = vpop.f32.mrf.mxu0 }
 0x753   :  { %v8882_v19 = vadd.f32 %v10100_v45, %v8842_v58  ;;  %v10102_v41 = vpop.f32.mrf.mxu1 }
 0x755   :  { %8887 = vst [vmem:[#allocation12] sm:$0xff] %v8882_v19 }
 0x756   :  { %10338 = shalt.err (!%p10335_p6)
}
 0x757   :  { %8897 = dma.vmem_to_hbm [thread:$0]  %s8895_s23, 128, %s10858_s6, [#allocation8]  }
 0x758   :  { %10357 = dma.done.wait [#allocation8], 128  }
 0x759   :  { %10358 = vsyncadd [#allocation8], 4294967168 }
 0x75a   :  { %8901 = vsyncpa [#allocation7], 1 }
 0x75b   :  { %8902 = vsyncpa [#allocation10], 1 }
 0x75c   :  { %8903 = vsyncpa [#allocation8], 1 }
 0x75d   :  { %8904 = vsyncmov [#allocation5] }
 0x760   :  { %s8905_s27 = vpop.sfrf %8904 }
 0x761   :  { %p10013_p7 = scmp.ne.s32.totalorder %s8905_s27, 0 }
 0x763   :  { %8909 = shalt.err (%p10013_p7)  }
 0x764   :  { %8911 = vsyncmov [#allocation5 + $0x1] }
 0x767   :  { %s8912_s28 = vpop.sfrf %8911 }
 0x768   :  { %p10014_p8 = scmp.ne.s32.totalorder %s8912_s28, 0 }
 0x76a   :  { %8916 = shalt.err (%p10014_p8)  }
 0x76b   :  { %8918 = vsyncmov [#allocation5 + $0x2] }
 0x76e   :  { %s8919_s29 = vpop.sfrf %8918 }
 0x76f   :  { %p10015_p9 = scmp.ne.s32.totalorder %s8919_s29, 0 }
 0x771   :  { %8923 = shalt.err (%p10015_p9)  }

</bundles_post_ra>
